<compile_context>
chip_gen: v5e
topology: v5e:2x2
jax: 0.10.0
libtpu: 0.0.40
codegen_flags: <defaults>
</compile_context>

<pallas_src>
import functools

import jax
import jax.numpy as jnp
from jax import lax
from jax.experimental import pallas as pl
from jax.experimental.pallas import tpu as pltpu


def _make_rq_kernel(with_dists: bool):
    """Build the fused residual-quantize kernel (distances variant is static)."""

    def kernel(x_ref, cb_ref, hcsq_ref, rcb_ref, hrsq_ref, *out_refs):
        if with_dists:
            q_ref, qr_ref, idx_ref, idxr_ref, d0_ref, d1_ref = out_refs
        else:
            q_ref, qr_ref, idx_ref, idxr_ref = out_refs

        f32 = jnp.float32
        x = x_ref[...]                                  # (tn, Cp), native dtype
        tn, cp = x.shape

        def nearest(v, cb, half_sq):
            """argmin_k ||v - cb[k]||^2 -> (selected rows (tn,Cp) f32, idx row (1,tn) i32)."""
            kp = cb.shape[0]
            # Cross term on the MXU.  Default precision feeds the MXU bf16 (single
            # pass) exactly like any XLA f32 matmul on TPU.
            dots = lax.dot_general(v, cb, (((1,), (1,)), ((), ())),
                                   preferred_element_type=f32)           # (tn, Kp)
            # argmin||v-c||^2 == argmax(v.c - 0.5||c||^2); the 0.5||c||^2 row is
            # precomputed in the wrapper, so no extra *2 VPU pass over (tn, Kp).
            score = dots - half_sq                                       # (tn, Kp)
            idx_col = jnp.argmax(score, axis=-1, keepdims=True).astype(jnp.int32)
            # One-hot row-select (tie-safe: derived from the argmax).  A direct
            # dynamic row gather over a (K, C) VMEM table does not lower in Mosaic,
            # so the MXU one-hot matmul is the sanctioned fallback.
            one_hot = (lax.broadcasted_iota(jnp.int32, (tn, kp), 1) == idx_col
                       ).astype(cb.dtype)                                # (tn, Kp)
            sel = lax.dot_general(one_hot, cb, (((1,), (0,)), ((), ())),
                                  preferred_element_type=f32)            # (tn, Cp) f32
            # Lane-dense (1, tn) index row: transpose idx through two tiny MXU
            # matmuls against hi/lo digit rows (values <= 127, exact in bf16), so
            # the narrow outputs are unmasked lane-dense stores instead of (tn, 1)
            # masked vst.msk columns.
            k_i = lax.broadcasted_iota(jnp.int32, (8, kp), 1)
            k_hi = (k_i >> 7).astype(cb.dtype)
            k_lo = (k_i & 127).astype(cb.dtype)
            hi = lax.dot_general(k_hi, one_hot, (((1,), (1,)), ((), ())),
                                 preferred_element_type=f32)             # (8, tn)
            lo = lax.dot_general(k_lo, one_hot, (((1,), (1,)), ((), ())),
                                 preferred_element_type=f32)             # (8, tn)
            idx_row = (128.0 * hi + lo)[0:1, :].astype(jnp.int32)        # (1, tn)
            return sel, idx_row

        def row_sumsq(r):
            """(1, tn) = sum_c r[:, c]^2, lane-dense, ~f32-accurate via hi/lo split."""
            rsq = r * r                                                  # f32, >= 0
            hi_b = rsq.astype(jnp.bfloat16)
            lo_b = (rsq - hi_b.astype(f32)).astype(jnp.bfloat16)
            ones = jnp.ones((8, cp), jnp.bfloat16)
            s = (lax.dot_general(ones, hi_b, (((1,), (1,)), ((), ())),
                                 preferred_element_type=f32)
                 + lax.dot_general(ones, lo_b, (((1,), (1,)), ((), ())),
                                   preferred_element_type=f32))          # (8, tn)
            return s[0:1, :]

        cb = cb_ref[...]
        rcb = rcb_ref[...]

        # Stage 1: quantize x against the main codebook.
        q, idx_row = nearest(x, cb, hcsq_ref[...])
        # Residuals stay in VMEM/vregs — no HBM round trip.
        res = x.astype(f32) - q
        # Stage 2: quantize the residuals against the residual codebook.
        qr, idxr_row = nearest(res.astype(x.dtype), rcb, hrsq_ref[...])

        q_ref[...] = q.astype(q_ref.dtype)
        qr_ref[...] = qr.astype(qr_ref.dtype)
        idx_ref[...] = idx_row
        idxr_ref[...] = idxr_row
        if with_dists:
            # Reported min distances from the residuals: one C-wide reduce instead
            # of a K-wide min over the (tn, K) tile, and guaranteed non-negative.
            d0_ref[...] = row_sumsq(res)
            d1_ref[...] = row_sumsq(res - qr)

    return kernel


def _round_up(v, m):
    return pl.cdiv(v, m) * m


@functools.partial(jax.jit, static_argnames=("return_dists", "exact_rows", "tn"))
def residual_quantize_forward(x, codebook, residual_codebook, *,
                              return_dists=False, exact_rows=False, tn=256):
    """Fused ResidualQuantize forward.

    x: (N, C); codebook: (K, C); residual_codebook: (Kr, C).
    Returns (codebook[idx], idx, residual_codebook[idx_r], idx_r[, d, d_r]).
    exact_rows=True re-gathers bit-exact rows (and exact dists) in the wrapper.
    """
    n, c = x.shape
    k, c_cb = codebook.shape
    kr, c_rcb = residual_codebook.shape
    assert c == c_cb == c_rcb, "channel mismatch"
    assert tn % 128 == 0, "tn must be a multiple of 128 (lane-dense index rows)"

    # Lane-dense padding: channels and codebook sizes up to multiples of 128.
    cp = _round_up(max(c, 128), 128)
    kp = _round_up(max(k, 128), 128)
    krp = _round_up(max(kr, 128), 128)
    assert max(kp, krp) <= 128 * 128, "hi/lo index decode supports K <= 16384"
    n_pad = _round_up(n, tn)

    dt = x.dtype
    x_p = jnp.pad(x, ((0, n_pad - n), (0, cp - c)))
    cb_p = jnp.pad(codebook.astype(dt), ((0, kp - k), (0, cp - c)))
    rcb_p = jnp.pad(residual_codebook.astype(dt), ((0, krp - kr), (0, cp - c)))

    # 0.5*||c||^2 rows (f32, computed once per call).  Padded entries get a huge
    # value so they can never win the argmax.
    big = jnp.float32(1e30)
    hcsq = 0.5 * jnp.sum(cb_p.astype(jnp.float32) ** 2, axis=-1)
    hcsq = jnp.where(jnp.arange(kp) < k, hcsq, big)[None, :]
    hrsq = 0.5 * jnp.sum(rcb_p.astype(jnp.float32) ** 2, axis=-1)
    hrsq = jnp.where(jnp.arange(krp) < kr, hrsq, big)[None, :]

    with_dists = bool(return_dists) and not exact_rows

    out_shape = [
        jax.ShapeDtypeStruct((n_pad, cp), codebook.dtype),            # codebook[idx]
        jax.ShapeDtypeStruct((n_pad, cp), residual_codebook.dtype),   # residual_cb[idx_r]
        jax.ShapeDtypeStruct((1, n_pad), jnp.int32),                  # idx  (lane-dense row)
        jax.ShapeDtypeStruct((1, n_pad), jnp.int32),                  # idx_r
    ]
    out_specs = [
        pl.BlockSpec((tn, cp), lambda i: (i, 0)),
        pl.BlockSpec((tn, cp), lambda i: (i, 0)),
        pl.BlockSpec((1, tn), lambda i: (0, i)),
        pl.BlockSpec((1, tn), lambda i: (0, i)),
    ]
    if with_dists:
        out_shape += [jax.ShapeDtypeStruct((1, n_pad), jnp.float32)] * 2
        out_specs += [pl.BlockSpec((1, tn), lambda i: (0, i)),
                      pl.BlockSpec((1, tn), lambda i: (0, i))]

    # Explicit VMEM budget (v5e's default scoped limit is only 16 MiB): roughly
    # double-buffered resident codebooks + per-step streams + live (tn, K)
    # intermediates, with headroom; clamped to stay valid across generations.
    bs = x.dtype.itemsize
    resident = 2 * ((kp + krp) * cp * bs + (kp + krp) * 4)
    streams = 2 * (tn * cp * bs + 2 * tn * cp * 4 + 6 * tn * 4)
    interm = 4 * tn * (kp + krp) * 4 + 8 * tn * cp * 4
    vmem_limit = int(min(max(2 * (resident + streams + interm), 32 << 20), 100 << 20))

    outs = pl.pallas_call(
        _make_rq_kernel(with_dists),
        out_shape=tuple(out_shape),
        grid_spec=pltpu.PrefetchScalarGridSpec(
            num_scalar_prefetch=0,
            grid=(n_pad // tn,),                            # grid over N only
            in_specs=[
                pl.BlockSpec((tn, cp), lambda i: (i, 0)),   # x tile
                pl.BlockSpec((kp, cp), lambda i: (0, 0)),   # codebook (VMEM resident)
                pl.BlockSpec((1, kp), lambda i: (0, 0)),    # 0.5*||codebook||^2
                pl.BlockSpec((krp, cp), lambda i: (0, 0)),  # residual codebook
                pl.BlockSpec((1, krp), lambda i: (0, 0)),   # 0.5*||residual cb||^2
                # TODO(synk): pipeline_mode=pl.Buffered(1) on the four resident
                # inputs to halve their footprint on v7x's 64 MiB VMEM.
            ],
            out_specs=out_specs,
        ),
        compiler_params=pltpu.CompilerParams(
            dimension_semantics=("parallel",),              # megacore-shards N on v7x
            vmem_limit_bytes=vmem_limit,
        ),
    )(x_p, cb_p, hcsq, rcb_p, hrsq)

    q, qr, idx_row, idxr_row = outs[:4]
    idx = idx_row[0, :n]
    idx_r = idxr_row[0, :n]

    if exact_rows:
        q_out = jnp.take(codebook, idx, axis=0)
        qr_out = jnp.take(residual_codebook, idx_r, axis=0)
    else:
        q_out = q[:n, :c]
        qr_out = qr[:n, :c]

    if not return_dists:
        return q_out, idx, qr_out, idx_r
    if exact_rows:
        xf = x.astype(jnp.float32)
        qf = q_out.astype(jnp.float32)
        qrf = qr_out.astype(jnp.float32)
        d0 = jnp.sum((xf - qf) ** 2, axis=-1)
        d1 = jnp.sum((xf - qf - qrf) ** 2, axis=-1)
    else:
        d0 = outs[4][0, :n]
        d1 = outs[5][0, :n]
    return q_out, idx, qr_out, idx_r, d0, d1


def _kaiming_uniform(key, shape, fan_in):
    # nn.init.kaiming_uniform_ default: bound = sqrt(6 / fan_in)
    bound = (6.0 / fan_in) ** 0.5
    return jax.random.uniform(key, shape, jnp.float32, -bound, bound)


if __name__ == "__main__":
    # Small, module-consistent shapes: x is (N, channels); codebooks are (K, channels).
    N, C = 300, 32
    K, KR = 512, 512          # codebook_size / residual_codebook_size (scaled from 2**12)

    key = jax.random.PRNGKey(0)
    k_x, k_cb, k_rcb = jax.random.split(key, 3)
    x = jax.random.normal(k_x, (N, C), jnp.float32)
    codebook = _kaiming_uniform(k_cb, (K, C), fan_in=C)
    residual_codebook = _kaiming_uniform(k_rcb, (KR, C), fan_in=C)

    # Full path: fused kernel also emits the min distances.
    q, idx, qr, idx_r, d0, d1 = jax.block_until_ready(
        residual_quantize_forward(x, codebook, residual_codebook,
                                  return_dists=True, tn=128))

    # ---- self-checks against pure-JAX math -----------------------------------
    assert idx.shape == (N,) and idx_r.shape == (N,)
    assert jnp.all((idx >= 0) & (idx < K)) and jnp.all((idx_r >= 0) & (idx_r < KR))
    # Returned rows match the selected codebook rows (gather runs at MXU bf16).
    assert jnp.allclose(q, codebook[idx], atol=1e-2), "quantized != codebook[idx]"
    assert jnp.allclose(qr, residual_codebook[idx_r], atol=1e-2)
    # Reported min distances match a direct recomputation for the selected entries.
    d0_direct = jnp.sum((x - codebook[idx]) ** 2, axis=-1)
    assert jnp.allclose(d0, d0_direct, atol=2e-1, rtol=2e-2), "min_dists mismatch"
    res = x - q
    d1_direct = jnp.sum((res - residual_codebook[idx_r]) ** 2, axis=-1)
    assert jnp.allclose(d1, d1_direct, atol=2e-1, rtol=2e-2), "residual dists mismatch"
    # Selected entries are (near-)optimal under squared L2.
    full0 = jnp.sum((x[:, None, :] - codebook[None, :, :]) ** 2, axis=-1)
    assert jnp.all(d0 <= full0.min(axis=-1) + 0.25), "stage-1 argmin not optimal"
    full1 = jnp.sum((res[:, None, :] - residual_codebook[None, :, :]) ** 2, axis=-1)
    assert jnp.all(d1 <= full1.min(axis=-1) + 0.25), "stage-2 argmin not optimal"

    # Default path (no distances): separate kernel variant, same indices.
    q2, idx2, qr2, idx_r2 = jax.block_until_ready(
        residual_quantize_forward(x, codebook, residual_codebook, tn=128))
    assert jnp.array_equal(idx, idx2) and jnp.array_equal(idx_r, idx_r2)

    # Exact-rows variant: bit-exact codebook rows via a wrapper-side gather.
    qe, idxe, qre, idx_re = jax.block_until_ready(
        residual_quantize_forward(x, codebook, residual_codebook,
                                  exact_rows=True, tn=128))
    assert jnp.array_equal(qe, codebook[idxe])
    assert jnp.array_equal(qre, residual_codebook[idx_re])

    print("KERNEL_OK")
</pallas_src>

<mosaic_0001>
module attributes {stable_mosaic.version = 11 : i64} {
  func.func @kernel(%arg0: i32, %arg1: memref<128x128xf32, #tpu.memory_space<vmem>>, %arg2: memref<512x128xf32, #tpu.memory_space<vmem>>, %arg3: memref<1x512xf32, #tpu.memory_space<vmem>>, %arg4: memref<512x128xf32, #tpu.memory_space<vmem>>, %arg5: memref<1x512xf32, #tpu.memory_space<vmem>>, %arg6: memref<128x128xf32, #tpu.memory_space<vmem>>, %arg7: memref<128x128xf32, #tpu.memory_space<vmem>>, %arg8: memref<1x128xi32, #tpu.memory_space<vmem>>, %arg9: memref<1x128xi32, #tpu.memory_space<vmem>>, %arg10: memref<1x128xf32, #tpu.memory_space<vmem>>, %arg11: memref<1x128xf32, #tpu.memory_space<vmem>>) attributes {dimension_semantics = [#tpu.dimension_semantics<parallel>], iteration_bounds = array<i64: 3>, scalar_prefetch = 0 : i64, scratch_operands = 0 : i64, tpu.core_type = #tpu.core_type<tc>, window_params = [{transform_indices = @transform_0, window_bounds = array<i64: 128, 128>}, {pipeline_mode = #tpu.pipeline_mode<synchronous>, transform_indices = @transform_1, window_bounds = array<i64: 512, 128>}, {pipeline_mode = #tpu.pipeline_mode<synchronous>, transform_indices = @transform_2, window_bounds = array<i64: 1, 512>}, {pipeline_mode = #tpu.pipeline_mode<synchronous>, transform_indices = @transform_3, window_bounds = array<i64: 512, 128>}, {pipeline_mode = #tpu.pipeline_mode<synchronous>, transform_indices = @transform_4, window_bounds = array<i64: 1, 512>}, {transform_indices = @transform_5, window_bounds = array<i64: 128, 128>}, {transform_indices = @transform_6, window_bounds = array<i64: 128, 128>}, {transform_indices = @transform_7, window_bounds = array<i64: 1, 128>}, {transform_indices = @transform_8, window_bounds = array<i64: 1, 128>}, {transform_indices = @transform_9, window_bounds = array<i64: 1, 128>}, {transform_indices = @transform_10, window_bounds = array<i64: 1, 128>}]} {
    %c0 = arith.constant 0 : index
    %c0_0 = arith.constant 0 : index
    %0 = vector.load %arg1[%c0, %c0_0] : memref<128x128xf32, #tpu.memory_space<vmem>>, vector<128x128xf32>
    %c0_1 = arith.constant 0 : index
    %c0_2 = arith.constant 0 : index
    %1 = vector.load %arg2[%c0_1, %c0_2] : memref<512x128xf32, #tpu.memory_space<vmem>>, vector<512x128xf32>
    %c0_3 = arith.constant 0 : index
    %c0_4 = arith.constant 0 : index
    %2 = vector.load %arg4[%c0_3, %c0_4] : memref<512x128xf32, #tpu.memory_space<vmem>>, vector<512x128xf32>
    %c0_5 = arith.constant 0 : index
    %c0_6 = arith.constant 0 : index
    %3 = vector.load %arg3[%c0_5, %c0_6] : memref<1x512xf32, #tpu.memory_space<vmem>>, vector<1x512xf32>
    %cst = arith.constant dense<0.000000e+00> : vector<128x512xf32>
    %4 = tpu.matmul %0, %1, %cst {dimension_numbers = #tpu.dot_dimension_numbers<[1], [1], [0], [0], [0, 0, 1, 0], [], []>} : vector<128x128xf32>, vector<512x128xf32>, vector<128x512xf32> -> vector<128x512xf32>
    %5 = vector.broadcast %3 : vector<1x512xf32> to vector<128x512xf32>
    %6 = arith.subf %4, %5 : vector<128x512xf32>
    %7 = tpu.reduce_index %6 {axis = 1 : i32, kind = #tpu.reduction_kind<arg_max>} : vector<128x512xf32> -> vector<128xi32>
    %8 = vector.shape_cast %7 : vector<128xi32> to vector<128x1xi32>
    %9 = tpu.iota {dimensions = array<i32: 1>} : vector<128x512xi32>
    %10 = vector.broadcast %8 : vector<128x1xi32> to vector<128x512xi32>
    %11 = arith.cmpi eq, %9, %10 : vector<128x512xi32>
    %12 = arith.extui %11 : vector<128x512xi1> to vector<128x512xi32>
    %13 = arith.sitofp %12 : vector<128x512xi32> to vector<128x512xf32>
    %cst_7 = arith.constant dense<0.000000e+00> : vector<128x128xf32>
    %14 = tpu.matmul %13, %1, %cst_7 {dimension_numbers = #tpu.dot_dimension_numbers<[1], [0], [0], [1], [0, 0, 1, 1], [], []>} : vector<128x512xf32>, vector<512x128xf32>, vector<128x128xf32> -> vector<128x128xf32>
    %15 = tpu.iota {dimensions = array<i32: 1>} : vector<8x512xi32>
    %c7_i32 = arith.constant 7 : i32
    %16 = vector.broadcast %c7_i32 : i32 to vector<8x512xi32>
    %17 = arith.shrsi %15, %16 : vector<8x512xi32>
    %18 = arith.sitofp %17 : vector<8x512xi32> to vector<8x512xf32>
    %c127_i32 = arith.constant 127 : i32
    %19 = vector.broadcast %c127_i32 : i32 to vector<8x512xi32>
    %20 = arith.andi %15, %19 : vector<8x512xi32>
    %21 = arith.sitofp %20 : vector<8x512xi32> to vector<8x512xf32>
    %cst_8 = arith.constant dense<0.000000e+00> : vector<8x128xf32>
    %22 = tpu.matmul %18, %13, %cst_8 {dimension_numbers = #tpu.dot_dimension_numbers<[1], [1], [0], [0], [0, 0, 1, 0], [], []>} : vector<8x512xf32>, vector<128x512xf32>, vector<8x128xf32> -> vector<8x128xf32>
    %cst_9 = arith.constant dense<0.000000e+00> : vector<8x128xf32>
    %23 = tpu.matmul %21, %13, %cst_9 {dimension_numbers = #tpu.dot_dimension_numbers<[1], [1], [0], [0], [0, 0, 1, 0], [], []>} : vector<8x512xf32>, vector<128x512xf32>, vector<8x128xf32> -> vector<8x128xf32>
    %cst_10 = arith.constant 1.280000e+02 : f32
    %24 = vector.broadcast %cst_10 : f32 to vector<8x128xf32>
    %25 = arith.mulf %24, %22 : vector<8x128xf32>
    %26 = arith.addf %25, %23 : vector<8x128xf32>
    %27 = vector.extract_strided_slice %26 {offsets = [0, 0], sizes = [1, 128], strides = [1, 1]} : vector<8x128xf32> to vector<1x128xf32>
    %28 = arith.fptosi %27 : vector<1x128xf32> to vector<1x128xi32>
    %29 = arith.subf %0, %14 : vector<128x128xf32>
    %c0_11 = arith.constant 0 : index
    %c0_12 = arith.constant 0 : index
    %30 = vector.load %arg5[%c0_11, %c0_12] : memref<1x512xf32, #tpu.memory_space<vmem>>, vector<1x512xf32>
    %cst_13 = arith.constant dense<0.000000e+00> : vector<128x512xf32>
    %31 = tpu.matmul %29, %2, %cst_13 {dimension_numbers = #tpu.dot_dimension_numbers<[1], [1], [0], [0], [0, 0, 1, 0], [], []>} : vector<128x128xf32>, vector<512x128xf32>, vector<128x512xf32> -> vector<128x512xf32>
    %32 = vector.broadcast %30 : vector<1x512xf32> to vector<128x512xf32>
    %33 = arith.subf %31, %32 : vector<128x512xf32>
    %34 = tpu.reduce_index %33 {axis = 1 : i32, kind = #tpu.reduction_kind<arg_max>} : vector<128x512xf32> -> vector<128xi32>
    %35 = vector.shape_cast %34 : vector<128xi32> to vector<128x1xi32>
    %36 = tpu.iota {dimensions = array<i32: 1>} : vector<128x512xi32>
    %37 = vector.broadcast %35 : vector<128x1xi32> to vector<128x512xi32>
    %38 = arith.cmpi eq, %36, %37 : vector<128x512xi32>
    %39 = arith.extui %38 : vector<128x512xi1> to vector<128x512xi32>
    %40 = arith.sitofp %39 : vector<128x512xi32> to vector<128x512xf32>
    %cst_14 = arith.constant dense<0.000000e+00> : vector<128x128xf32>
    %41 = tpu.matmul %40, %2, %cst_14 {dimension_numbers = #tpu.dot_dimension_numbers<[1], [0], [0], [1], [0, 0, 1, 1], [], []>} : vector<128x512xf32>, vector<512x128xf32>, vector<128x128xf32> -> vector<128x128xf32>
    %42 = tpu.iota {dimensions = array<i32: 1>} : vector<8x512xi32>
    %c7_i32_15 = arith.constant 7 : i32
    %43 = vector.broadcast %c7_i32_15 : i32 to vector<8x512xi32>
    %44 = arith.shrsi %42, %43 : vector<8x512xi32>
    %45 = arith.sitofp %44 : vector<8x512xi32> to vector<8x512xf32>
    %c127_i32_16 = arith.constant 127 : i32
    %46 = vector.broadcast %c127_i32_16 : i32 to vector<8x512xi32>
    %47 = arith.andi %42, %46 : vector<8x512xi32>
    %48 = arith.sitofp %47 : vector<8x512xi32> to vector<8x512xf32>
    %cst_17 = arith.constant dense<0.000000e+00> : vector<8x128xf32>
    %49 = tpu.matmul %45, %40, %cst_17 {dimension_numbers = #tpu.dot_dimension_numbers<[1], [1], [0], [0], [0, 0, 1, 0], [], []>} : vector<8x512xf32>, vector<128x512xf32>, vector<8x128xf32> -> vector<8x128xf32>
    %cst_18 = arith.constant dense<0.000000e+00> : vector<8x128xf32>
    %50 = tpu.matmul %48, %40, %cst_18 {dimension_numbers = #tpu.dot_dimension_numbers<[1], [1], [0], [0], [0, 0, 1, 0], [], []>} : vector<8x512xf32>, vector<128x512xf32>, vector<8x128xf32> -> vector<8x128xf32>
    %cst_19 = arith.constant 1.280000e+02 : f32
    %51 = vector.broadcast %cst_19 : f32 to vector<8x128xf32>
    %52 = arith.mulf %51, %49 : vector<8x128xf32>
    %53 = arith.addf %52, %50 : vector<8x128xf32>
    %54 = vector.extract_strided_slice %53 {offsets = [0, 0], sizes = [1, 128], strides = [1, 1]} : vector<8x128xf32> to vector<1x128xf32>
    %55 = arith.fptosi %54 : vector<1x128xf32> to vector<1x128xi32>
    %c0_20 = arith.constant 0 : index
    %c0_21 = arith.constant 0 : index
    %56 = vector.load %arg6[%c0_20, %c0_21] : memref<128x128xf32, #tpu.memory_space<vmem>>, vector<128x128xf32>
    tpu.vector_store %arg6[%c0_20, %c0_21], %14 {strides = array<i32>} : memref<128x128xf32, #tpu.memory_space<vmem>>, vector<128x128xf32>,
    %c0_22 = arith.constant 0 : index
    %c0_23 = arith.constant 0 : index
    %57 = vector.load %arg7[%c0_22, %c0_23] : memref<128x128xf32, #tpu.memory_space<vmem>>, vector<128x128xf32>
    tpu.vector_store %arg7[%c0_22, %c0_23], %41 {strides = array<i32>} : memref<128x128xf32, #tpu.memory_space<vmem>>, vector<128x128xf32>,
    %c0_24 = arith.constant 0 : index
    %c0_25 = arith.constant 0 : index
    %58 = vector.load %arg8[%c0_24, %c0_25] : memref<1x128xi32, #tpu.memory_space<vmem>>, vector<1x128xi32>
    tpu.vector_store %arg8[%c0_24, %c0_25], %28 {strides = array<i32>} : memref<1x128xi32, #tpu.memory_space<vmem>>, vector<1x128xi32>,
    %c0_26 = arith.constant 0 : index
    %c0_27 = arith.constant 0 : index
    %59 = vector.load %arg9[%c0_26, %c0_27] : memref<1x128xi32, #tpu.memory_space<vmem>>, vector<1x128xi32>
    tpu.vector_store %arg9[%c0_26, %c0_27], %55 {strides = array<i32>} : memref<1x128xi32, #tpu.memory_space<vmem>>, vector<1x128xi32>,
    %60 = arith.mulf %29, %29 : vector<128x128xf32>
    %61 = arith.truncf %60 : vector<128x128xf32> to vector<128x128xbf16>
    %62 = arith.extf %61 : vector<128x128xbf16> to vector<128x128xf32>
    %63 = arith.subf %60, %62 : vector<128x128xf32>
    %64 = arith.truncf %63 : vector<128x128xf32> to vector<128x128xbf16>
    %cst_28 = arith.constant 1.000000e+00 : bf16
    %65 = vector.broadcast %cst_28 : bf16 to vector<8x128xbf16>
    %cst_29 = arith.constant dense<0.000000e+00> : vector<8x128xf32>
    %66 = tpu.matmul %65, %61, %cst_29 {dimension_numbers = #tpu.dot_dimension_numbers<[1], [1], [0], [0], [0, 0, 1, 0], [], []>} : vector<8x128xbf16>, vector<128x128xbf16>, vector<8x128xf32> -> vector<8x128xf32>
    %cst_30 = arith.constant dense<0.000000e+00> : vector<8x128xf32>
    %67 = tpu.matmul %65, %64, %cst_30 {dimension_numbers = #tpu.dot_dimension_numbers<[1], [1], [0], [0], [0, 0, 1, 0], [], []>} : vector<8x128xbf16>, vector<128x128xbf16>, vector<8x128xf32> -> vector<8x128xf32>
    %68 = arith.addf %66, %67 : vector<8x128xf32>
    %69 = vector.extract_strided_slice %68 {offsets = [0, 0], sizes = [1, 128], strides = [1, 1]} : vector<8x128xf32> to vector<1x128xf32>
    %c0_31 = arith.constant 0 : index
    %c0_32 = arith.constant 0 : index
    %70 = vector.load %arg10[%c0_31, %c0_32] : memref<1x128xf32, #tpu.memory_space<vmem>>, vector<1x128xf32>
    tpu.vector_store %arg10[%c0_31, %c0_32], %69 {strides = array<i32>} : memref<1x128xf32, #tpu.memory_space<vmem>>, vector<1x128xf32>,
    %71 = arith.subf %29, %41 : vector<128x128xf32>
    %72 = arith.mulf %71, %71 : vector<128x128xf32>
    %73 = arith.truncf %72 : vector<128x128xf32> to vector<128x128xbf16>
    %74 = arith.extf %73 : vector<128x128xbf16> to vector<128x128xf32>
    %75 = arith.subf %72, %74 : vector<128x128xf32>
    %76 = arith.truncf %75 : vector<128x128xf32> to vector<128x128xbf16>
    %cst_33 = arith.constant 1.000000e+00 : bf16
    %77 = vector.broadcast %cst_33 : bf16 to vector<8x128xbf16>
    %cst_34 = arith.constant dense<0.000000e+00> : vector<8x128xf32>
    %78 = tpu.matmul %77, %73, %cst_34 {dimension_numbers = #tpu.dot_dimension_numbers<[1], [1], [0], [0], [0, 0, 1, 0], [], []>} : vector<8x128xbf16>, vector<128x128xbf16>, vector<8x128xf32> -> vector<8x128xf32>
    %cst_35 = arith.constant dense<0.000000e+00> : vector<8x128xf32>
    %79 = tpu.matmul %77, %76, %cst_35 {dimension_numbers = #tpu.dot_dimension_numbers<[1], [1], [0], [0], [0, 0, 1, 0], [], []>} : vector<8x128xbf16>, vector<128x128xbf16>, vector<8x128xf32> -> vector<8x128xf32>
    %80 = arith.addf %78, %79 : vector<8x128xf32>
    %81 = vector.extract_strided_slice %80 {offsets = [0, 0], sizes = [1, 128], strides = [1, 1]} : vector<8x128xf32> to vector<1x128xf32>
    %c0_36 = arith.constant 0 : index
    %c0_37 = arith.constant 0 : index
    %82 = vector.load %arg11[%c0_36, %c0_37] : memref<1x128xf32, #tpu.memory_space<vmem>>, vector<1x128xf32>
    tpu.vector_store %arg11[%c0_36, %c0_37], %81 {strides = array<i32>} : memref<1x128xf32, #tpu.memory_space<vmem>>, vector<1x128xf32>,
    return
  }
  func.func @transform_0(%arg0: i32) -> (i32, i32) {
    %c0_i32 = arith.constant 0 : i32
    %c0_i32_0 = arith.constant 0 : i32
    return %arg0, %c0_i32 : i32, i32
  }
  func.func @transform_1(%arg0: i32) -> (i32, i32) {
    %c0_i32 = arith.constant 0 : i32
    %c0_i32_0 = arith.constant 0 : i32
    %c0_i32_1 = arith.constant 0 : i32
    return %c0_i32, %c0_i32_0 : i32, i32
  }
  func.func @transform_2(%arg0: i32) -> (i32, i32) {
    %c0_i32 = arith.constant 0 : i32
    %c0_i32_0 = arith.constant 0 : i32
    %c0_i32_1 = arith.constant 0 : i32
    return %c0_i32, %c0_i32_0 : i32, i32
  }
  func.func @transform_3(%arg0: i32) -> (i32, i32) {
    %c0_i32 = arith.constant 0 : i32
    %c0_i32_0 = arith.constant 0 : i32
    %c0_i32_1 = arith.constant 0 : i32
    return %c0_i32, %c0_i32_0 : i32, i32
  }
  func.func @transform_4(%arg0: i32) -> (i32, i32) {
    %c0_i32 = arith.constant 0 : i32
    %c0_i32_0 = arith.constant 0 : i32
    %c0_i32_1 = arith.constant 0 : i32
    return %c0_i32, %c0_i32_0 : i32, i32
  }
  func.func @transform_5(%arg0: i32) -> (i32, i32) {
    %c0_i32 = arith.constant 0 : i32
    %c0_i32_0 = arith.constant 0 : i32
    return %arg0, %c0_i32 : i32, i32
  }
  func.func @transform_6(%arg0: i32) -> (i32, i32) {
    %c0_i32 = arith.constant 0 : i32
    %c0_i32_0 = arith.constant 0 : i32
    return %arg0, %c0_i32 : i32, i32
  }
  func.func @transform_7(%arg0: i32) -> (i32, i32) {
    %c0_i32 = arith.constant 0 : i32
    %c0_i32_0 = arith.constant 0 : i32
    return %c0_i32, %arg0 : i32, i32
  }
  func.func @transform_8(%arg0: i32) -> (i32, i32) {
    %c0_i32 = arith.constant 0 : i32
    %c0_i32_0 = arith.constant 0 : i32
    return %c0_i32, %arg0 : i32, i32
  }
  func.func @transform_9(%arg0: i32) -> (i32, i32) {
    %c0_i32 = arith.constant 0 : i32
    %c0_i32_0 = arith.constant 0 : i32
    return %c0_i32, %arg0 : i32, i32
  }
  func.func @transform_10(%arg0: i32) -> (i32, i32) {
    %c0_i32 = arith.constant 0 : i32
    %c0_i32_0 = arith.constant 0 : i32
    return %c0_i32, %arg0 : i32, i32
  }
}

</mosaic_0001>

<bundles_post_ra>
// kernel: residual_quantize_forward.1
= control target key start
LH: loop header
LB: loop body
LE: loop exit
PB: predicated region body
PF: predicated region fallthrough
CT: control target
= control target key end

     0   :  { %s4130_s13 = smov 0   ;;  %s7791_s0 = inlined_call_operand.vmem [shape: f32[384,128], index: 0, kind: input, shape index: {}]   ;;  %s7792_s1 = inlined_call_operand.vmem [shape: f32[512,128], index: 1, kind: input, shape index: {}]   ;;  %s7793_s2 = inlined_call_operand.vmem [shape: f32[1,512], index: 2, kind: input, shape index: {}]   ;;  %s7794_s3 = inlined_call_operand.vmem [shape: f32[512,128], index: 3, kind: input, shape index: {}]   ;;  %s7795_s4 = inlined_call_operand.vmem [shape: f32[1,512], index: 4, kind: input, shape index: {}]   ;;  %s7796_s5 = inlined_call_operand.vmem [shape: f32[384,128], index: 5, kind: output, shape index: {0}]   ;;  %s7797_s6 = inlined_call_operand.vmem [shape: f32[384,128], index: 6, kind: output, shape index: {1}]   ;;  %s7798_s7 = inlined_call_operand.vmem [shape: s32[1,384], index: 7, kind: output, shape index: {2}]   ;;  %s7799_s8 = inlined_call_operand.vmem [shape: s32[1,384], index: 8, kind: output, shape index: {3}]   ;;  %s7800_s9 = inlined_call_operand.vmem [shape: f32[1,384], index: 9, kind: output, shape index: {4}]   ;;  %s7801_s10 = inlined_call_operand.vmem [shape: f32[1,384], index: 10, kind: output, shape index: {5}]  }
   0x1 LB: > { %s4136_s14 = sadd.s32 4294967295, %s4071_s13   ;;  %p3475_p0 = scmp.ge.s32.totalorder %s4071_s13, 1  ;;  %s4071_s13 = sphi %s4130_s13, %s21_s13  }
   0x2   : > { %p324_p1 = scmp.lt.s32.totalorder %s4071_s13, 4 }
   0x4   : > { %p325_p2 = pnand %p3475_p0, %p324_p1 }
   0x6   : > { %328 = sbr.rel (%p325_p2) target bundleno = 1836 (0x72c), region = 40 }
   0xb   : > { %v4143_v0 = vld [vmem:[%s7792_s1 + $0x178] sm:$0xff]  ;;  %v4167_v4 = vld [vmem:[%s7792_s1 + $0x170] sm:$0xff]  ;;  %v4191_v8 = vld [vmem:[%s7792_s1 + $0x168] sm:$0xff]  ;;  %s3476_s21 = sshll.u32 %s4136_s14, 4  ;;  %p397_p4 = scmp.lt.s32.totalorder %s4136_s14, 2 }
   0xc   : > { %v4148_v1 = vld [vmem:[%s7792_s1 + $0x1f8] sm:$0xff]  ;;  %685 = vmatpush.xpose.msra.mxu2 %v4143_v0  ;;  %v4172_v5 = vld [vmem:[%s7792_s1 + $0x1f0] sm:$0xff]  ;;  %v4196_v9 = vld [vmem:[%s7792_s1 + $0x1e8] sm:$0xff]  ;;  %p380_p3 = scmp.lt.s32.totalorder %s3476_s21, 47 }
   0xd   : > { %v4153_v2 = vld [vmem:[%s7792_s1 + $0x78] sm:$0xff]  ;;  %750 = vmatpush.xpose.msra.mxu3 %v4148_v1  ;;  %v4177_v6 = vld [vmem:[%s7792_s1 + $0x70] sm:$0xff]  ;;  %v4201_v10 = vld [vmem:[%s7792_s1 + $0x68] sm:$0xff]  ;;  %s8233_s14 = smov (!%p397_p4, %s4136_s14), 2 }
   0xe   : > { %v4160_v3 = vld [vmem:[%s7792_s1 + $0xf8] sm:$0xff]  ;;  %555 = vmatpush.xpose.msra.mxu0 %v4153_v2  ;;  %v4182_v7 = vld [vmem:[%s7792_s1 + $0xf0] sm:$0xff]  ;;  %v4206_v11 = vld [vmem:[%s7792_s1 + $0xe8] sm:$0xff]  ;;  %s8231_s21 = smov (!%p380_p3, %s3476_s21), 47  ;;  %s399_s20 = scalar_lea.vmem %s7798_s7, %s8233_s14 }
   0xf   : > { %620 = vmatpush.xpose.msra.mxu1 %v4160_v3  ;;  %v4215_v12 = vld [vmem:[%s7792_s1 + $0x160] sm:$0xff]  ;;  %v4239_v16 = vld [vmem:[%s7792_s1 + $0x158] sm:$0xff]  ;;  %v4263_v20 = vld [vmem:[%s7792_s1 + $0x150] sm:$0xff]  ;;  %s4497_s29 = sshll.u32 %s8231_s21, 3  ;;  %s402_s28 = scalar_lea.vmem %s7799_s8, %s8233_s14 }
  0x10   : > { %686 = vmatpush.xpose.msra.mxu2 %v4167_v4  ;;  %v4220_v13 = vld [vmem:[%s7792_s1 + $0x1e0] sm:$0xff]  ;;  %v4244_v17 = vld [vmem:[%s7792_s1 + $0x1d8] sm:$0xff]  ;;  %v4268_v21 = vld [vmem:[%s7792_s1 + $0x1d0] sm:$0xff]  ;;  %s4517_s17 = scalar_lea.vmem %s7791_s0, %s4497_s29  ;;  %s5165_s27 = scalar_lea.vmem %s7796_s5, %s4497_s29 }
  0x11   : > { %751 = vmatpush.xpose.msra.mxu3 %v4172_v5  ;;  %v4225_v14 = vld [vmem:[%s7792_s1 + $0x60] sm:$0xff]  ;;  %v4249_v18 = vld [vmem:[%s7792_s1 + $0x58] sm:$0xff]  ;;  %v4273_v22 = vld [vmem:[%s7792_s1 + $0x50] sm:$0xff]  ;;  %s6946_s25 = scalar_lea.vmem %s7797_s6, %s4497_s29  ;;  %s405_s12 = scalar_lea.vmem %s7800_s9, %s8233_s14 }
  0x12   : > { %556 = vmatpush.xpose.msra.mxu0 %v4177_v6  ;;  %v4230_v15 = vld [vmem:[%s7792_s1 + $0xe0] sm:$0xff]  ;;  %v4254_v19 = vld [vmem:[%s7792_s1 + $0xd8] sm:$0xff]  ;;  %v4278_v23 = vld [vmem:[%s7792_s1 + $0xd0] sm:$0xff]  ;;  %s408_s16 = scalar_lea.vmem %s7801_s10, %s8233_s14 }
  0x13   : > { %621 = vmatpush.xpose.msra.mxu1 %v4182_v7  ;;  %v4287_v24 = vld [vmem:[%s7792_s1 + $0x148] sm:$0xff]  ;;  %v4311_v28 = vld [vmem:[%s7792_s1 + $0x140] sm:$0xff]  ;;  %v4335_v32 = vld [vmem:[%s7792_s1 + $0x138] sm:$0xff] }
  0x14   : > { %687 = vmatpush.xpose.msra.mxu2 %v4191_v8  ;;  %v4292_v25 = vld [vmem:[%s7792_s1 + $0x1c8] sm:$0xff]  ;;  %v4316_v29 = vld [vmem:[%s7792_s1 + $0x1c0] sm:$0xff]  ;;  %v4340_v33 = vld [vmem:[%s7792_s1 + $0x1b8] sm:$0xff] }
  0x15   : > { %752 = vmatpush.xpose.msra.mxu3 %v4196_v9  ;;  %v4297_v26 = vld [vmem:[%s7792_s1 + $0x48] sm:$0xff]  ;;  %v4321_v30 = vld [vmem:[%s7792_s1 + $0x40] sm:$0xff]  ;;  %v4345_v34 = vld [vmem:[%s7792_s1 + $0x38] sm:$0xff] }
  0x16   : > { %557 = vmatpush.xpose.msra.mxu0 %v4201_v10  ;;  %v4302_v27 = vld [vmem:[%s7792_s1 + $0xc8] sm:$0xff]  ;;  %v4326_v31 = vld [vmem:[%s7792_s1 + $0xc0] sm:$0xff]  ;;  %v4350_v35 = vld [vmem:[%s7792_s1 + $0xb8] sm:$0xff] }
  0x17   : > { %622 = vmatpush.xpose.msra.mxu1 %v4206_v11  ;;  %v4359_v36 = vld [vmem:[%s7792_s1 + $0x130] sm:$0xff]  ;;  %v4383_v40 = vld [vmem:[%s7792_s1 + $0x128] sm:$0xff]  ;;  %v4407_v44 = vld [vmem:[%s7792_s1 + $0x120] sm:$0xff] }
  0x18   : > { %688 = vmatpush.xpose.msra.mxu2 %v4215_v12  ;;  %v4364_v37 = vld [vmem:[%s7792_s1 + $0x1b0] sm:$0xff]  ;;  %v4388_v41 = vld [vmem:[%s7792_s1 + $0x1a8] sm:$0xff]  ;;  %v4412_v45 = vld [vmem:[%s7792_s1 + $0x1a0] sm:$0xff] }
  0x19   : > { %753 = vmatpush.xpose.msra.mxu3 %v4220_v13  ;;  %v4369_v38 = vld [vmem:[%s7792_s1 + $0x30] sm:$0xff]  ;;  %v4393_v42 = vld [vmem:[%s7792_s1 + $0x28] sm:$0xff]  ;;  %v4417_v46 = vld [vmem:[%s7792_s1 + $0x20] sm:$0xff] }
  0x1a   : > { %558 = vmatpush.xpose.msra.mxu0 %v4225_v14  ;;  %v4374_v39 = vld [vmem:[%s7792_s1 + $0xb0] sm:$0xff]  ;;  %v4398_v43 = vld [vmem:[%s7792_s1 + $0xa8] sm:$0xff]  ;;  %v4422_v47 = vld [vmem:[%s7792_s1 + $0xa0] sm:$0xff] }
  0x1b   : > { %623 = vmatpush.xpose.msra.mxu1 %v4230_v15  ;;  %v4432_v48 = vld [vmem:[%s7792_s1 + $0x118] sm:$0xff]  ;;  %v4456_v52 = vld [vmem:[%s7792_s1 + $0x110] sm:$0xff]  ;;  %v4480_v56 = vld [vmem:[%s7792_s1 + $0x108] sm:$0xff] }
  0x1c   : > { %689 = vmatpush.xpose.msra.mxu2 %v4239_v16  ;;  %v4437_v49 = vld [vmem:[%s7792_s1 + $0x198] sm:$0xff]  ;;  %v4461_v53 = vld [vmem:[%s7792_s1 + $0x190] sm:$0xff]  ;;  %v4485_v57 = vld [vmem:[%s7792_s1 + $0x188] sm:$0xff] }
  0x1d   : > { %754 = vmatpush.xpose.msra.mxu3 %v4244_v17  ;;  %v4442_v50 = vld [vmem:[%s7792_s1 + $0x18] sm:$0xff]  ;;  %v4466_v54 = vld [vmem:[%s7792_s1 + $0x10] sm:$0xff]  ;;  %7950 = vst [vmem:[#allocation2_spill] sm:$0xff] %v4485_v57  ;;  %v4490_v58 = vld [vmem:[%s7792_s1 + $0x8] sm:$0xff] }
  0x1e   : > { %559 = vmatpush.xpose.msra.mxu0 %v4249_v18  ;;  %v4447_v51 = vld [vmem:[%s7792_s1 + $0x98] sm:$0xff]  ;;  %v4471_v55 = vld [vmem:[%s7792_s1 + $0x90] sm:$0xff]  ;;  %v4495_v59 = vld [vmem:[%s7792_s1 + $0x88] sm:$0xff] }
  0x1f   : > { %624 = vmatpush.xpose.msra.mxu1 %v4254_v19  ;;  %v4506_v60 = vld [vmem:[%s7792_s1 + $0x100] sm:$0xff] }
  0x20   : > { %690 = vmatpush.xpose.msra.mxu2 %v4263_v20  ;;  %v4511_v61 = vld [vmem:[%s7792_s1 + $0x180] sm:$0xff] }
  0x21   : > { %755 = vmatpush.xpose.msra.mxu3 %v4268_v21  ;;  %7951 = vst [vmem:[#allocation3_spill] sm:$0xff] %v4511_v61  ;;  %v4522_v62 = vld [vmem:[%s7792_s1] sm:$0xff] }
  0x22   : > { %560 = vmatpush.xpose.msra.mxu0 %v4273_v22  ;;  %v4527_v63 = vld [vmem:[%s7792_s1 + $0x80] sm:$0xff] }
  0x23   : > { %625 = vmatpush.xpose.msra.mxu1 %v4278_v23 }
  0x24   : > { %691 = vmatpush.xpose.msra.mxu2 %v4287_v24 }
  0x25   : > { %756 = vmatpush.xpose.msra.mxu3 %v4292_v25 }
  0x26   : > { %561 = vmatpush.xpose.msra.mxu0 %v4297_v26 }
  0x27   : > { %626 = vmatpush.xpose.msra.mxu1 %v4302_v27 }
  0x28   : > { %692 = vmatpush.xpose.msra.mxu2 %v4311_v28 }
  0x29   : > { %757 = vmatpush.xpose.msra.mxu3 %v4316_v29 }
  0x2a   : > { %562 = vmatpush.xpose.msra.mxu0 %v4321_v30 }
  0x2b   : > { %627 = vmatpush.xpose.msra.mxu1 %v4326_v31 }
  0x2c   : > { %693 = vmatpush.xpose.msra.mxu2 %v4335_v32 }
  0x2d   : > { %758 = vmatpush.xpose.msra.mxu3 %v4340_v33 }
  0x2e   : > { %563 = vmatpush.xpose.msra.mxu0 %v4345_v34 }
  0x2f   : > { %628 = vmatpush.xpose.msra.mxu1 %v4350_v35 }
  0x30   : > { %694 = vmatpush.xpose.msra.mxu2 %v4359_v36 }
  0x31   : > { %759 = vmatpush.xpose.msra.mxu3 %v4364_v37 }
  0x32   : > { %564 = vmatpush.xpose.msra.mxu0 %v4369_v38 }
  0x33   : > { %629 = vmatpush.xpose.msra.mxu1 %v4374_v39 }
  0x34   : > { %695 = vmatpush.xpose.msra.mxu2 %v4383_v40 }
  0x35   : > { %760 = vmatpush.xpose.msra.mxu3 %v4388_v41 }
  0x36   : > { %565 = vmatpush.xpose.msra.mxu0 %v4393_v42 }
  0x37   : > { %630 = vmatpush.xpose.msra.mxu1 %v4398_v43 }
  0x38   : > { %696 = vmatpush.xpose.msra.mxu2 %v4407_v44 }
  0x39   : > { %761 = vmatpush.xpose.msra.mxu3 %v4412_v45 }
  0x3a   : > { %566 = vmatpush.xpose.msra.mxu0 %v4417_v46 }
  0x3b   : > { %631 = vmatpush.xpose.msra.mxu1 %v4422_v47 }
  0x3c   : > { %697 = vmatpush.xpose.msra.mxu2 %v4432_v48 }
  0x3d   : > { %762 = vmatpush.xpose.msra.mxu3 %v4437_v49 }
  0x3e   : > { %567 = vmatpush.xpose.msra.mxu0 %v4442_v50 }
  0x3f   : > { %632 = vmatpush.xpose.msra.mxu1 %v4447_v51 }
  0x40   : > { %698 = vmatpush.xpose.msra.mxu2 %v4456_v52 }
  0x41   : > { %763 = vmatpush.xpose.msra.mxu3 %v4461_v53 }
  0x42   : > { %568 = vmatpush.xpose.msra.mxu0 %v4466_v54 }
  0x43   : > { %633 = vmatpush.xpose.msra.mxu1 %v4471_v55 }
  0x44   : > { %699 = vmatpush.xpose.msra.mxu2 %v4480_v56 }
  0x45   : > { %764 = vmatpush.xpose.msra.mxu3 %v4485_v57  ;;  %v410_v57 = vld [vmem:[%s4517_s17] sm:$0xff] }
  0x46   : > { %569 = vmatpush.xpose.msra.mxu0 %v4490_v58 }
  0x47   : > { %634 = vmatpush.xpose.msra.mxu1 %v4495_v59 }
  0x48   : > { %700 = vmatpush.xpose.msra.mxu2 %v4506_v60 }
  0x49   : > { %765 = vmatpush.xpose.msra.mxu3 %v4511_v61  ;;  %v411_v61 = vld [vmem:[%s4517_s17 + $0x8] sm:$0xff] }
  0x4a   : > { %570 = vmatpush.xpose.msra.mxu0 %v4522_v62 }
  0x4b   : > { %635 = vmatpush.xpose.msra.mxu1 %v4527_v63  ;;  %701 = vmatmul.f32.vlgmr.msra.gmra.mxu2 %v410_v57 }
  0x4c   : > { %766 = vmatmul.f32.vlgmr.msra.gmra.mxu3 %v410_v57  ;;  %1439 = vmatpush.msrb.mxu2 %v4143_v0  ;;  %v412_v0 = vld [vmem:[%s4517_s17 + $0x10] sm:$0xff] }
  0x4d   : > { %571 = vmatmul.f32.vlgmr.msra.gmra.mxu0 %v410_v57  ;;  %1504 = vmatpush.msrb.mxu3 %v4148_v1  ;;  %v413_v1 = vld [vmem:[%s4517_s17 + $0x18] sm:$0xff] }
  0x4e   : > { %1309 = vmatpush.msrb.mxu0 %v4153_v2  ;;  %636 = vmatmul.f32.vlgmr.msra.gmra.mxu1 %v410_v57  ;;  %v414_v2 = vld [vmem:[%s4517_s17 + $0x20] sm:$0xff] }
  0x4f   : > { %1374 = vmatpush.msrb.mxu1 %v4160_v3  ;;  %1440 = vmatpush.msrb.mxu2 %v4167_v4  ;;  %v415_v3 = vld [vmem:[%s4517_s17 + $0x28] sm:$0xff]  ;;  %v7952_v4 = vld [vmem:[#allocation2_spill] sm:$0xff] }
  0x50   : > { %1310 = vmatpush.msrb.mxu0 %v4177_v6  ;;  %1505 = vmatpush.msrb.mxu3 %v4172_v5  ;;  %v7953_v5 = vld [vmem:[#allocation3_spill] sm:$0xff]  ;;  %v416_v6 = vld [vmem:[%s4517_s17 + $0x30] sm:$0xff] }
  0x51   : > { %1375 = vmatpush.msrb.mxu1 %v4182_v7  ;;  %1441 = vmatpush.msrb.mxu2 %v4191_v8  ;;  %v417_v7 = vld [vmem:[%s4517_s17 + $0x38] sm:$0xff]  ;;  %v418_v8 = vld [vmem:[%s4517_s17 + $0x40] sm:$0xff] }
  0x52   : > { %1311 = vmatpush.msrb.mxu0 %v4201_v10  ;;  %1506 = vmatpush.msrb.mxu3 %v4196_v9  ;;  %v419_v9 = vld [vmem:[%s4517_s17 + $0x48] sm:$0xff]  ;;  %v420_v10 = vld [vmem:[%s4517_s17 + $0x50] sm:$0xff] }
  0x53   : > { %1376 = vmatpush.msrb.mxu1 %v4206_v11  ;;  %704 = vmatmul.f32.gmra.mxu2 %v411_v61  ;;  %v421_v11 = vld [vmem:[%s4517_s17 + $0x58] sm:$0xff] }
  0x54   : > { %1312 = vmatpush.msrb.mxu0 %v4225_v14  ;;  %769 = vmatmul.f32.gmra.mxu3 %v411_v61  ;;  %v424_v14 = vld [vmem:[%s4517_s17 + $0x70] sm:$0xff] }
  0x55   : > { %1377 = vmatpush.msrb.mxu1 %v4230_v15  ;;  %574 = vmatmul.f32.gmra.mxu0 %v411_v61  ;;  %v425_v15 = vld [vmem:[%s4517_s17 + $0x78] sm:$0xff] }
  0x56   : > { %639 = vmatmul.f32.gmra.mxu1 %v411_v61  ;;  %1442 = vmatpush.msrb.mxu2 %v4215_v12  ;;  %v422_v12 = vld [vmem:[%s4517_s17 + $0x60] sm:$0xff] }
  0x57   : > { %1507 = vmatpush.msrb.mxu3 %v4220_v13  ;;  %1313 = vmatpush.msrb.mxu0 %v4249_v18  ;;  %v423_v13 = vld [vmem:[%s4517_s17 + $0x68] sm:$0xff] }
  0x58   : > { %1378 = vmatpush.msrb.mxu1 %v4254_v19  ;;  %1443 = vmatpush.msrb.mxu2 %v4239_v16  ;;  %v554_v16 = vld [vmem:[%s7793_s2] sm:$0xf] }
  0x59   : > { %1508 = vmatpush.msrb.mxu3 %v4244_v17  ;;  %1314 = vmatpush.msrb.mxu0 %v4273_v22  ;;  %v888_v17 = vlaneseq  ;;  %v4616_v18 = vperm.slane %v554_v16, 0  ;;  %v4618_v19 = vperm.slane %v554_v16, 1 }
  0x5a   : > { %1379 = vmatpush.msrb.mxu1 %v4278_v23  ;;  %1444 = vmatpush.msrb.mxu2 %v4263_v20 }
  0x5b   : > { %1509 = vmatpush.msrb.mxu3 %v4268_v21  ;;  %1315 = vmatpush.msrb.mxu0 %v4297_v26  ;;  %v4620_v20 = vand.u32 127, %v888_v17  ;;  %v4627_v26 = vperm.slane %v554_v16, 2 }
  0x5c   : > { %1380 = vmatpush.msrb.mxu1 %v4302_v27  ;;  %707 = vmatmul.f32.gmra.mxu2 %v412_v0  ;;  %v4629_v27 = vperm.slane %v554_v16, 3 }
  0x5d   : > { %772 = vmatmul.f32.gmra.mxu3 %v412_v0  ;;  %577 = vmatmul.f32.gmra.mxu0 %v412_v0  ;;  %7954 = vst [vmem:[#allocation2_spill] sm:$0xff] %v4620_v20 }
  0x5e   : > { %642 = vmatmul.f32.gmra.mxu1 %v412_v0  ;;  %1445 = vmatpush.msrb.mxu2 %v4287_v24 }
  0x5f   : > { %1510 = vmatpush.msrb.mxu3 %v4292_v25  ;;  %1316 = vmatpush.msrb.mxu0 %v4321_v30  ;;  %v4625_v25 = vadd.s32 128, %v4620_v20 }
  0x60   : > { %1381 = vmatpush.msrb.mxu1 %v4326_v31  ;;  %1446 = vmatpush.msrb.mxu2 %v4311_v28  ;;  %v4632_v31 = vadd.s32 256, %v4620_v20 }
  0x61   : > { %1511 = vmatpush.msrb.mxu3 %v4316_v29  ;;  %1317 = vmatpush.msrb.mxu0 %v4345_v34  ;;  %7955 = vst [vmem:[#allocation3_spill] sm:$0xff] %v4625_v25 }
  0x62   : > { %1382 = vmatpush.msrb.mxu1 %v4350_v35  ;;  %1447 = vmatpush.msrb.mxu2 %v4335_v32  ;;  %7956 = vst [vmem:[#allocation4_spill] sm:$0xff] %v4632_v31  ;;  %v4639_v35 = vadd.s32 384, %v4620_v20 }
  0x63   : > { %1512 = vmatpush.msrb.mxu3 %v4340_v33  ;;  %1318 = vmatpush.msrb.mxu0 %v4369_v38 }
  0x64   : > { %1383 = vmatpush.msrb.mxu1 %v4374_v39  ;;  %710 = vmatmul.f32.gmra.mxu2 %v413_v1  ;;  %7957 = vst [vmem:[#allocation5_spill] sm:$0xff] %v4639_v35 }
  0x65   : > { %775 = vmatmul.f32.gmra.mxu3 %v413_v1  ;;  %580 = vmatmul.f32.gmra.mxu0 %v413_v1 }
  0x66   : > { %645 = vmatmul.f32.gmra.mxu1 %v413_v1  ;;  %1448 = vmatpush.msrb.mxu2 %v4359_v36 }
  0x67   : > { %1513 = vmatpush.msrb.mxu3 %v4364_v37  ;;  %1319 = vmatpush.msrb.mxu0 %v4393_v42 }
  0x68   : > { %1384 = vmatpush.msrb.mxu1 %v4398_v43  ;;  %1449 = vmatpush.msrb.mxu2 %v4383_v40 }
  0x69   : > { %1514 = vmatpush.msrb.mxu3 %v4388_v41  ;;  %1320 = vmatpush.msrb.mxu0 %v4417_v46 }
  0x6a   : > { %1385 = vmatpush.msrb.mxu1 %v4422_v47  ;;  %1450 = vmatpush.msrb.mxu2 %v4407_v44 }
  0x6b   : > { %1515 = vmatpush.msrb.mxu3 %v4412_v45  ;;  %1321 = vmatpush.msrb.mxu0 %v4442_v50 }
  0x6c   : > { %1386 = vmatpush.msrb.mxu1 %v4447_v51  ;;  %713 = vmatmul.f32.gmra.mxu2 %v414_v2 }
  0x6d   : > { %778 = vmatmul.f32.gmra.mxu3 %v414_v2  ;;  %583 = vmatmul.f32.gmra.mxu0 %v414_v2 }
  0x6e   : > { %648 = vmatmul.f32.gmra.mxu1 %v414_v2  ;;  %1451 = vmatpush.msrb.mxu2 %v4432_v48 }
  0x6f   : > { %1516 = vmatpush.msrb.mxu3 %v4437_v49  ;;  %1322 = vmatpush.msrb.mxu0 %v4466_v54 }
  0x70   : > { %1387 = vmatpush.msrb.mxu1 %v4471_v55  ;;  %1452 = vmatpush.msrb.mxu2 %v4456_v52 }
  0x71   : > { %1517 = vmatpush.msrb.mxu3 %v4461_v53  ;;  %1323 = vmatpush.msrb.mxu0 %v4490_v58 }
  0x72   : > { %1388 = vmatpush.msrb.mxu1 %v4495_v59  ;;  %1453 = vmatpush.msrb.mxu2 %v4480_v56 }
  0x73   : > { %1518 = vmatpush.msrb.mxu3 %v7952_v4  ;;  %1324 = vmatpush.msrb.mxu0 %v4522_v62 }
  0x74   : > { %1389 = vmatpush.msrb.mxu1 %v4527_v63  ;;  %716 = vmatmul.f32.gmra.mxu2 %v415_v3 }
  0x75   : > { %781 = vmatmul.f32.gmra.mxu3 %v415_v3  ;;  %586 = vmatmul.f32.gmra.mxu0 %v415_v3 }
  0x76   : > { %651 = vmatmul.f32.gmra.mxu1 %v415_v3  ;;  %1454 = vmatpush.msrb.mxu2 %v4506_v60 }
  0x77   : > { %1519 = vmatpush.msrb.mxu3 %v7953_v5 }
  0x7c   : > { %719 = vmatmul.f32.gmra.mxu2 %v416_v6 }
  0x7d   : > { %784 = vmatmul.f32.gmra.mxu3 %v416_v6  ;;  %589 = vmatmul.f32.gmra.mxu0 %v416_v6 }
  0x7e   : > { %654 = vmatmul.f32.gmra.mxu1 %v416_v6 }
  0x84   : > { %722 = vmatmul.f32.gmra.mxu2 %v417_v7 }
  0x85   : > { %787 = vmatmul.f32.gmra.mxu3 %v417_v7  ;;  %592 = vmatmul.f32.gmra.mxu0 %v417_v7 }
  0x86   : > { %657 = vmatmul.f32.gmra.mxu1 %v417_v7 }
  0x8c   : > { %725 = vmatmul.f32.gmra.mxu2 %v418_v8 }
  0x8d   : > { %790 = vmatmul.f32.gmra.mxu3 %v418_v8  ;;  %595 = vmatmul.f32.gmra.mxu0 %v418_v8 }
  0x8e   : > { %660 = vmatmul.f32.gmra.mxu1 %v418_v8 }
  0x94   : > { %728 = vmatmul.f32.gmra.mxu2 %v419_v9 }
  0x95   : > { %793 = vmatmul.f32.gmra.mxu3 %v419_v9  ;;  %598 = vmatmul.f32.gmra.mxu0 %v419_v9 }
  0x96   : > { %663 = vmatmul.f32.gmra.mxu1 %v419_v9 }
  0x9c   : > { %731 = vmatmul.f32.gmra.mxu2 %v420_v10 }
  0x9d   : > { %796 = vmatmul.f32.gmra.mxu3 %v420_v10  ;;  %601 = vmatmul.f32.gmra.mxu0 %v420_v10 }
  0x9e   : > { %666 = vmatmul.f32.gmra.mxu1 %v420_v10 }
  0xa4   : > { %734 = vmatmul.f32.gmra.mxu2 %v421_v11 }
  0xa5   : > { %799 = vmatmul.f32.gmra.mxu3 %v421_v11  ;;  %604 = vmatmul.f32.gmra.mxu0 %v421_v11 }
  0xa6   : > { %669 = vmatmul.f32.gmra.mxu1 %v421_v11 }
  0xac   : > { %737 = vmatmul.f32.gmra.mxu2 %v422_v12 }
  0xad   : > { %802 = vmatmul.f32.gmra.mxu3 %v422_v12  ;;  %607 = vmatmul.f32.gmra.mxu0 %v422_v12 }
  0xae   : > { %672 = vmatmul.f32.gmra.mxu1 %v422_v12 }
  0xb4   : > { %740 = vmatmul.f32.gmra.mxu2 %v423_v13 }
  0xb5   : > { %805 = vmatmul.f32.gmra.mxu3 %v423_v13  ;;  %610 = vmatmul.f32.gmra.mxu0 %v423_v13 }
  0xb6   : > { %675 = vmatmul.f32.gmra.mxu1 %v423_v13 }
  0xbc   : > { %743 = vmatmul.f32.gmra.mxu2 %v424_v14 }
  0xbd   : > { %808 = vmatmul.f32.gmra.mxu3 %v424_v14  ;;  %613 = vmatmul.f32.gmra.mxu0 %v424_v14 }
  0xbe   : > { %678 = vmatmul.f32.gmra.mxu1 %v424_v14 }
  0xc4   : > { %746 = vmatmul.f32.gmra.mxu2 %v425_v15 }
  0xc5   : > { %811 = vmatmul.f32.gmra.mxu3 %v425_v15  ;;  %616 = vmatmul.f32.gmra.mxu0 %v425_v15 }
  0xc6   : > { %681 = vmatmul.f32.gmra.mxu1 %v425_v15 }
  0xca   : > { %v572_v21 = vpop.f32.mrf.mxu0 }
  0xcb   : > { %v637_v22 = vpop.f32.mrf.mxu1  ;;  %v824_v23 = vsub.f32 %v572_v21, %v4616_v18 }
  0xcc   : > { %v825_v24 = vsub.f32 %v637_v22, %v4618_v19 }
  0xce   : > { %vm891_vm0 = vcmp.ge.f32.partialorder %v824_v23, %v825_v24  ;;  %v702_v28 = vpop.f32.mrf.mxu2 }
  0xcf   : > { %v892_v29 = vsel %vm891_vm0, %v824_v23, %v825_v24  ;;  %v767_v30 = vpop.f32.mrf.mxu3  ;;  %v893_v32 = vsel %vm891_vm0, %v4620_v20, %v4625_v25  ;;  %v826_v33 = vsub.f32 %v702_v28, %v4627_v26 }
  0xd0   : > { %v827_v34 = vsub.f32 %v767_v30, %v4629_v27 }
  0xd1   : > { %vm895_vm1 = vcmp.ge.f32.partialorder %v892_v29, %v826_v33 }
  0xd2   : > { %v575_v36 = vpop.f32.mrf.mxu0  ;;  %v896_v40 = vsel %vm895_vm1, %v892_v29, %v826_v33  ;;  %v897_v41 = vsel %vm895_vm1, %v893_v32, %v4632_v31 }
  0xd3   : > { %v640_v37 = vpop.f32.mrf.mxu1  ;;  %v828_v38 = vsub.f32 %v575_v36, %v4616_v18  ;;  %vm899_vm2 = vcmp.ge.f32.partialorder %v896_v40, %v827_v34 }
  0xd4   : > { %v829_v39 = vsub.f32 %v640_v37, %v4618_v19  ;;  %v900_v42 = vsel %vm899_vm2, %v896_v40, %v827_v34  ;;  %v4645_v43 = vsel %vm899_vm2, %v897_v41, %v4639_v35 }
  0xd5   : > { %902 = vmax.index.xlane.f32.xlu0 %v900_v42 }
  0xd6   : > { %vm907_vm3 = vcmp.ge.f32.partialorder %v828_v38, %v829_v39  ;;  %v705_v44 = vpop.f32.mrf.mxu2 }
  0xd7   : > { %v908_v45 = vsel %vm907_vm3, %v828_v38, %v829_v39  ;;  %v770_v46 = vpop.f32.mrf.mxu3  ;;  %v909_v47 = vsel %vm907_vm3, %v4620_v20, %v4625_v25  ;;  %v830_v48 = vsub.f32 %v705_v44, %v4627_v26 }
  0xd8   : > { %v831_v49 = vsub.f32 %v770_v46, %v4629_v27 }
  0xd9   : > { %vm910_vm4 = vcmp.ge.f32.partialorder %v908_v45, %v830_v48 }
  0xda   : > { %v578_v50 = vpop.f32.mrf.mxu0  ;;  %v911_v54 = vsel %vm910_vm4, %v908_v45, %v830_v48  ;;  %v912_v55 = vsel %vm910_vm4, %v909_v47, %v4632_v31 }
  0xdb   : > { %v643_v51 = vpop.f32.mrf.mxu1  ;;  %v832_v52 = vsub.f32 %v578_v50, %v4616_v18  ;;  %vm913_vm5 = vcmp.ge.f32.partialorder %v911_v54, %v831_v49 }
  0xdc   : > { %v833_v53 = vsub.f32 %v643_v51, %v4618_v19  ;;  %v914_v56 = vsel %vm913_vm5, %v911_v54, %v831_v49  ;;  %v4655_v57 = vsel %vm913_vm5, %v912_v55, %v4639_v35 }
  0xdd   : > { %916 = vmax.index.xlane.f32.xlu0 %v914_v56 }
  0xde   : > { %vm921_vm6 = vcmp.ge.f32.partialorder %v832_v52, %v833_v53 }
  0xdf   : > { %v708_v58 = vpop.f32.mrf.mxu2  ;;  %v922_v59 = vsel %vm921_vm6, %v832_v52, %v833_v53  ;;  %v923_v61 = vsel %vm921_vm6, %v4620_v20, %v4625_v25 }
  0xe0   : > { %v773_v60 = vpop.f32.mrf.mxu3  ;;  %v834_v62 = vsub.f32 %v708_v58, %v4627_v26 }
  0xe1   : > { %v835_v63 = vsub.f32 %v773_v60, %v4629_v27 }
  0xe2   : > { %vm924_vm7 = vcmp.ge.f32.partialorder %v922_v59, %v834_v62  ;;  %v581_v0 = vpop.f32.mrf.mxu0 }
  0xe3   : > { %v646_v1 = vpop.f32.mrf.mxu1  ;;  %v836_v2 = vsub.f32 %v581_v0, %v4616_v18  ;;  %v925_v4 = vsel %vm924_vm7, %v922_v59, %v834_v62  ;;  %v926_v5 = vsel %vm924_vm7, %v923_v61, %v4632_v31 }
  0xe4   : > { %v837_v3 = vsub.f32 %v646_v1, %v4618_v19  ;;  %vm927_vm8 = vcmp.ge.f32.partialorder %v925_v4, %v835_v63 }
  0xe5   : > { %v928_v6 = vsel %vm927_vm8, %v925_v4, %v835_v63  ;;  %v4665_v7 = vsel %vm927_vm8, %v926_v5, %v4639_v35 }
  0xe6   : > { %vm935_vm9 = vcmp.ge.f32.partialorder %v836_v2, %v837_v3  ;;  %930 = vmax.index.xlane.f32.xlu1 %v928_v6 }
  0xe7   : > { %v711_v8 = vpop.f32.mrf.mxu2  ;;  %v936_v9 = vsel %vm935_vm9, %v836_v2, %v837_v3  ;;  %v937_v11 = vsel %vm935_vm9, %v4620_v20, %v4625_v25 }
  0xe8   : > { %v776_v10 = vpop.f32.mrf.mxu3  ;;  %v838_v12 = vsub.f32 %v711_v8, %v4627_v26 }
  0xe9   : > { %v839_v13 = vsub.f32 %v776_v10, %v4629_v27 }
  0xea   : > { %vm938_vm10 = vcmp.ge.f32.partialorder %v936_v9, %v838_v12  ;;  %v584_v14 = vpop.f32.mrf.mxu0 }
  0xeb   : > { %v649_v15 = vpop.f32.mrf.mxu1  ;;  %v840_v16 = vsub.f32 %v584_v14, %v4616_v18  ;;  %v939_v21 = vsel %vm938_vm10, %v936_v9, %v838_v12  ;;  %v940_v22 = vsel %vm938_vm10, %v937_v11, %v4632_v31 }
  0xec   : > { %v841_v17 = vsub.f32 %v649_v15, %v4618_v19  ;;  %vm941_vm11 = vcmp.ge.f32.partialorder %v939_v21, %v839_v13 }
  0xed   : > { %v942_v23 = vsel %vm941_vm11, %v939_v21, %v839_v13  ;;  %v4675_v24 = vsel %vm941_vm11, %v940_v22, %v4639_v35 }
  0xee   : > { %vm949_vm12 = vcmp.ge.f32.partialorder %v840_v16, %v841_v17  ;;  %944 = vmax.index.xlane.f32.xlu1 %v942_v23 }
  0xef   : > { %v714_v28 = vpop.f32.mrf.mxu2  ;;  %v950_v29 = vsel %vm949_vm12, %v840_v16, %v841_v17  ;;  %v951_v32 = vsel %vm949_vm12, %v4620_v20, %v4625_v25 }
  0xf0   : > { %v779_v30 = vpop.f32.mrf.mxu3  ;;  %v842_v33 = vsub.f32 %v714_v28, %v4627_v26 }
  0xf1   : > { %v843_v34 = vsub.f32 %v779_v30, %v4629_v27 }
  0xf2   : > { %vm952_vm13 = vcmp.ge.f32.partialorder %v950_v29, %v842_v33  ;;  %v587_v36 = vpop.f32.mrf.mxu0 }
  0xf3   : > { %v652_v37 = vpop.f32.mrf.mxu1  ;;  %v844_v38 = vsub.f32 %v587_v36, %v4616_v18  ;;  %v953_v40 = vsel %vm952_vm13, %v950_v29, %v842_v33  ;;  %v954_v41 = vsel %vm952_vm13, %v951_v32, %v4632_v31 }
  0xf4   : > { %v845_v39 = vsub.f32 %v652_v37, %v4618_v19  ;;  %vm955_vm14 = vcmp.ge.f32.partialorder %v953_v40, %v843_v34 }
  0xf5   : > { %v956_v42 = vsel %vm955_vm14, %v953_v40, %v843_v34  ;;  %v4685_v44 = vsel %vm955_vm14, %v954_v41, %v4639_v35 }
  0xf6   : > { %vm963_vm15 = vcmp.ge.f32.partialorder %v844_v38, %v845_v39  ;;  %958 = vmax.index.xlane.f32.xlu2 %v956_v42 }
  0xf7   : > { %v717_v45 = vpop.f32.mrf.mxu2  ;;  %v964_v46 = vsel %vm963_vm15, %v844_v38, %v845_v39  ;;  %v965_v48 = vsel %vm963_vm15, %v4620_v20, %v4625_v25 }
  0xf8   : > { %v782_v47 = vpop.f32.mrf.mxu3  ;;  %v846_v49 = vsub.f32 %v717_v45, %v4627_v26 }
  0xf9   : > { %v847_v50 = vsub.f32 %v782_v47, %v4629_v27 }
  0xfa   : > { %vm966_vm0 = vcmp.ge.f32.partialorder %v964_v46, %v846_v49  ;;  %v590_v51 = vpop.f32.mrf.mxu0 }
  0xfb   : > { %v655_v52 = vpop.f32.mrf.mxu1  ;;  %v848_v53 = vsub.f32 %v590_v51, %v4616_v18  ;;  %v967_v55 = vsel %vm966_vm0, %v964_v46, %v846_v49  ;;  %v968_v56 = vsel %vm966_vm0, %v965_v48, %v4632_v31 }
  0xfc   : > { %v849_v54 = vsub.f32 %v655_v52, %v4618_v19  ;;  %vm969_vm1 = vcmp.ge.f32.partialorder %v967_v55, %v847_v50 }
  0xfd   : > { %v970_v58 = vsel %vm969_vm1, %v967_v55, %v847_v50  ;;  %v4695_v59 = vsel %vm969_vm1, %v968_v56, %v4639_v35 }
  0xfe   : > { %vm977_vm2 = vcmp.ge.f32.partialorder %v848_v53, %v849_v54  ;;  %972 = vmax.index.xlane.f32.xlu2 %v970_v58 }
  0xff   : > { %v720_v60 = vpop.f32.mrf.mxu2  ;;  %v978_v61 = vsel %vm977_vm2, %v848_v53, %v849_v54  ;;  %v979_v63 = vsel %vm977_vm2, %v4620_v20, %v4625_v25 }
 0x100   : > { %v785_v62 = vpop.f32.mrf.mxu3  ;;  %v850_v0 = vsub.f32 %v720_v60, %v4627_v26 }
 0x101   : > { %v851_v1 = vsub.f32 %v785_v62, %v4629_v27 }
 0x102   : > { %vm980_vm3 = vcmp.ge.f32.partialorder %v978_v61, %v850_v0  ;;  %v593_v2 = vpop.f32.mrf.mxu0 }
 0x103   : > { %v658_v3 = vpop.f32.mrf.mxu1  ;;  %v852_v4 = vsub.f32 %v593_v2, %v4616_v18  ;;  %v981_v6 = vsel %vm980_vm3, %v978_v61, %v850_v0  ;;  %v982_v8 = vsel %vm980_vm3, %v979_v63, %v4632_v31 }
 0x104   : > { %v853_v5 = vsub.f32 %v658_v3, %v4618_v19  ;;  %vm983_vm4 = vcmp.ge.f32.partialorder %v981_v6, %v851_v1 }
 0x105   : > { %v984_v9 = vsel %vm983_vm4, %v981_v6, %v851_v1  ;;  %v4705_v10 = vsel %vm983_vm4, %v982_v8, %v4639_v35 }
 0x106   : > { %vm991_vm5 = vcmp.ge.f32.partialorder %v852_v4, %v853_v5  ;;  %986 = vmax.index.xlane.f32.xlu1 %v984_v9 }
 0x107   : > { %v723_v11 = vpop.f32.mrf.mxu2  ;;  %v992_v12 = vsel %vm991_vm5, %v852_v4, %v853_v5  ;;  %v993_v14 = vsel %vm991_vm5, %v4620_v20, %v4625_v25 }
 0x108   : > { %v788_v13 = vpop.f32.mrf.mxu3  ;;  %v854_v15 = vsub.f32 %v723_v11, %v4627_v26 }
 0x109   : > { %v855_v16 = vsub.f32 %v788_v13, %v4629_v27 }
 0x10a   : > { %vm994_vm6 = vcmp.ge.f32.partialorder %v992_v12, %v854_v15  ;;  %v596_v17 = vpop.f32.mrf.mxu0 }
 0x10b   : > { %v661_v21 = vpop.f32.mrf.mxu1  ;;  %v856_v22 = vsub.f32 %v596_v17, %v4616_v18  ;;  %v995_v28 = vsel %vm994_vm6, %v992_v12, %v854_v15  ;;  %v996_v29 = vsel %vm994_vm6, %v993_v14, %v4632_v31 }
 0x10c   : > { %v857_v23 = vsub.f32 %v661_v21, %v4618_v19  ;;  %vm997_vm7 = vcmp.ge.f32.partialorder %v995_v28, %v855_v16 }
 0x10d   : > { %v998_v30 = vsel %vm997_vm7, %v995_v28, %v855_v16  ;;  %v4715_v32 = vsel %vm997_vm7, %v996_v29, %v4639_v35 }
 0x10e   : > { %vm1005_vm8 = vcmp.ge.f32.partialorder %v856_v22, %v857_v23  ;;  %1000 = vmax.index.xlane.f32.xlu1 %v998_v30 }
 0x10f   : > { %v726_v33 = vpop.f32.mrf.mxu2  ;;  %v1006_v34 = vsel %vm1005_vm8, %v856_v22, %v857_v23  ;;  %v1007_v37 = vsel %vm1005_vm8, %v4620_v20, %v4625_v25 }
 0x110   : > { %v791_v36 = vpop.f32.mrf.mxu3  ;;  %v858_v38 = vsub.f32 %v726_v33, %v4627_v26 }
 0x111   : > { %v859_v39 = vsub.f32 %v791_v36, %v4629_v27 }
 0x112   : > { %vm1008_vm9 = vcmp.ge.f32.partialorder %v1006_v34, %v858_v38  ;;  %v599_v40 = vpop.f32.mrf.mxu0 }
 0x113   : > { %v664_v41 = vpop.f32.mrf.mxu1  ;;  %v860_v42 = vsub.f32 %v599_v40, %v4616_v18  ;;  %v1009_v46 = vsel %vm1008_vm9, %v1006_v34, %v858_v38  ;;  %v1010_v47 = vsel %vm1008_vm9, %v1007_v37, %v4632_v31 }
 0x114   : > { %v861_v45 = vsub.f32 %v664_v41, %v4618_v19  ;;  %vm1011_vm10 = vcmp.ge.f32.partialorder %v1009_v46, %v859_v39 }
 0x115   : > { %v1012_v48 = vsel %vm1011_vm10, %v1009_v46, %v859_v39  ;;  %v4725_v49 = vsel %vm1011_vm10, %v1010_v47, %v4639_v35 }
 0x116   : > { %vm1019_vm11 = vcmp.ge.f32.partialorder %v860_v42, %v861_v45  ;;  %1014 = vmax.index.xlane.f32.xlu2 %v1012_v48 }
 0x117   : > { %v729_v50 = vpop.f32.mrf.mxu2  ;;  %v1020_v51 = vsel %vm1019_vm11, %v860_v42, %v861_v45  ;;  %v1021_v53 = vsel %vm1019_vm11, %v4620_v20, %v4625_v25 }
 0x118   : > { %v794_v52 = vpop.f32.mrf.mxu3  ;;  %v862_v54 = vsub.f32 %v729_v50, %v4627_v26 }
 0x119   : > { %v863_v55 = vsub.f32 %v794_v52, %v4629_v27 }
 0x11a   : > { %vm1022_vm12 = vcmp.ge.f32.partialorder %v1020_v51, %v862_v54  ;;  %v602_v56 = vpop.f32.mrf.mxu0 }
 0x11b   : > { %v667_v58 = vpop.f32.mrf.mxu1  ;;  %v864_v60 = vsub.f32 %v602_v56, %v4616_v18  ;;  %v1023_v62 = vsel %vm1022_vm12, %v1020_v51, %v862_v54  ;;  %v1024_v63 = vsel %vm1022_vm12, %v1021_v53, %v4632_v31 }
 0x11c   : > { %v865_v61 = vsub.f32 %v667_v58, %v4618_v19  ;;  %vm1025_vm13 = vcmp.ge.f32.partialorder %v1023_v62, %v863_v55 }
 0x11d   : > { %v1026_v0 = vsel %vm1025_vm13, %v1023_v62, %v863_v55  ;;  %v4735_v1 = vsel %vm1025_vm13, %v1024_v63, %v4639_v35 }
 0x11e   : > { %vm1033_vm14 = vcmp.ge.f32.partialorder %v864_v60, %v865_v61  ;;  %1028 = vmax.index.xlane.f32.xlu2 %v1026_v0 }
 0x11f   : > { %v732_v2 = vpop.f32.mrf.mxu2  ;;  %v1034_v3 = vsel %vm1033_vm14, %v864_v60, %v865_v61  ;;  %v1035_v5 = vsel %vm1033_vm14, %v4620_v20, %v4625_v25 }
 0x120   : > { %v797_v4 = vpop.f32.mrf.mxu3  ;;  %v866_v6 = vsub.f32 %v732_v2, %v4627_v26 }
 0x121   : > { %v4741_v8 = vsub.f32 %v797_v4, %v4629_v27 }
 0x122   : > { %vm1036_vm15 = vcmp.ge.f32.partialorder %v1034_v3, %v866_v6  ;;  %v605_v9 = vpop.f32.mrf.mxu0 }
 0x123   : > { %v670_v11 = vpop.f32.mrf.mxu1  ;;  %v868_v12 = vsub.f32 %v605_v9, %v4616_v18  ;;  %v4745_v14 = vsel %vm1036_vm15, %v1034_v3, %v866_v6  ;;  %v1038_v15 = vsel %vm1036_vm15, %v1035_v5, %v4632_v31 }
 0x124   : > { %v869_v13 = vsub.f32 %v670_v11, %v4618_v19  ;;  %vm1039_vm0 = vcmp.ge.f32.partialorder %v4745_v14, %v4741_v8 }
 0x125   : > { %v4754_v16 = vsel %vm1039_vm0, %v1038_v15, %v4639_v35 }
 0x126   : > { %vm1047_vm1 = vcmp.ge.f32.partialorder %v868_v12, %v869_v13 }
 0x127   : > { %v735_v17 = vpop.f32.mrf.mxu2  ;;  %v1048_v21 = vsel %vm1047_vm1, %v868_v12, %v869_v13  ;;  %v1049_v23 = vsel %vm1047_vm1, %v4620_v20, %v4625_v25 }
 0x128   : > { %v800_v22 = vpop.f32.mrf.mxu3  ;;  %v870_v28 = vsub.f32 %v735_v17, %v4627_v26 }
 0x129   : > { %v4760_v29 = vsub.f32 %v800_v22, %v4629_v27 }
 0x12a   : > { %vm1050_vm2 = vcmp.ge.f32.partialorder %v1048_v21, %v870_v28  ;;  %v608_v30 = vpop.f32.mrf.mxu0 }
 0x12b   : > { %v673_v33 = vpop.f32.mrf.mxu1  ;;  %v872_v34 = vsub.f32 %v608_v30, %v4616_v18  ;;  %v4764_v37 = vsel %vm1050_vm2, %v1048_v21, %v870_v28  ;;  %v1052_v38 = vsel %vm1050_vm2, %v1049_v23, %v4632_v31 }
 0x12c   : > { %v873_v36 = vsub.f32 %v673_v33, %v4618_v19  ;;  %vm1053_vm3 = vcmp.ge.f32.partialorder %v4764_v37, %v4760_v29 }
 0x12d   : > { %v4773_v39 = vsel %vm1053_vm3, %v1052_v38, %v4639_v35 }
 0x12e   : > { %vm1061_vm4 = vcmp.ge.f32.partialorder %v872_v34, %v873_v36 }
 0x12f   : > { %v738_v40 = vpop.f32.mrf.mxu2  ;;  %v1062_v41 = vsel %vm1061_vm4, %v872_v34, %v873_v36  ;;  %v1063_v45 = vsel %vm1061_vm4, %v4620_v20, %v4625_v25 }
 0x130   : > { %v803_v42 = vpop.f32.mrf.mxu3  ;;  %v874_v46 = vsub.f32 %v738_v40, %v4627_v26 }
 0x131   : > { %v4779_v47 = vsub.f32 %v803_v42, %v4629_v27 }
 0x132   : > { %vm1064_vm5 = vcmp.ge.f32.partialorder %v1062_v41, %v874_v46  ;;  %v611_v48 = vpop.f32.mrf.mxu0 }
 0x133   : > { %v676_v50 = vpop.f32.mrf.mxu1  ;;  %v876_v51 = vsub.f32 %v611_v48, %v4616_v18  ;;  %v4783_v53 = vsel %vm1064_vm5, %v1062_v41, %v874_v46  ;;  %v1066_v54 = vsel %vm1064_vm5, %v1063_v45, %v4632_v31 }
 0x134   : > { %v877_v52 = vsub.f32 %v676_v50, %v4618_v19  ;;  %vm1067_vm6 = vcmp.ge.f32.partialorder %v4783_v53, %v4779_v47 }
 0x135   : > { %v4792_v55 = vsel %vm1067_vm6, %v1066_v54, %v4639_v35 }
 0x136   : > { %vm1075_vm7 = vcmp.ge.f32.partialorder %v876_v51, %v877_v52 }
 0x137   : > { %v741_v56 = vpop.f32.mrf.mxu2  ;;  %v1076_v58 = vsel %vm1075_vm7, %v876_v51, %v877_v52  ;;  %v1077_v61 = vsel %vm1075_vm7, %v4620_v20, %v4625_v25 }
 0x138   : > { %v806_v60 = vpop.f32.mrf.mxu3  ;;  %v878_v62 = vsub.f32 %v741_v56, %v4627_v26 }
 0x139   : > { %v879_v63 = vsub.f32 %v806_v60, %v4629_v27 }
 0x13a   : > { %vm1078_vm8 = vcmp.ge.f32.partialorder %v1076_v58, %v878_v62  ;;  %v614_v0 = vpop.f32.mrf.mxu0 }
 0x13b   : > { %v679_v2 = vpop.f32.mrf.mxu1  ;;  %v880_v3 = vsub.f32 %v614_v0, %v4616_v18  ;;  %v1079_v5 = vsel %vm1078_vm8, %v1076_v58, %v878_v62  ;;  %v1080_v6 = vsel %vm1078_vm8, %v1077_v61, %v4632_v31 }
 0x13c   : > { %v881_v4 = vsub.f32 %v679_v2, %v4618_v19  ;;  %vm1081_vm9 = vcmp.ge.f32.partialorder %v1079_v5, %v879_v63 }
 0x13d   : > { %v4803_v9 = vsel %vm1081_vm9, %v1080_v6, %v4639_v35  ;;  %v1082_v61 = vsel %vm1081_vm9, %v1079_v5, %v879_v63 }
 0x13e   : > { %vm1089_vm10 = vcmp.ge.f32.partialorder %v880_v3, %v881_v4 }
 0x13f   : > { %v744_v11 = vpop.f32.mrf.mxu2  ;;  %v1090_v12 = vsel %vm1089_vm10, %v880_v3, %v881_v4  ;;  %v1091_v15 = vsel %vm1089_vm10, %v4620_v20, %v4625_v25 }
 0x140   : > { %v809_v13 = vpop.f32.mrf.mxu3  ;;  %v882_v17 = vsub.f32 %v744_v11, %v4627_v26 }
 0x141   : > { %v883_v21 = vsub.f32 %v809_v13, %v4629_v27 }
 0x142   : > { %vm1092_vm11 = vcmp.ge.f32.partialorder %v1090_v12, %v882_v17  ;;  %v617_v22 = vpop.f32.mrf.mxu0 }
 0x143   : > { %v682_v23 = vpop.f32.mrf.mxu1  ;;  %v884_v28 = vsub.f32 %v617_v22, %v4616_v18  ;;  %v1093_v33 = vsel %vm1092_vm11, %v1090_v12, %v882_v17  ;;  %v1094_v34 = vsel %vm1092_vm11, %v1091_v15, %v4632_v31 }
 0x144   : > { %v885_v30 = vsub.f32 %v682_v23, %v4618_v19  ;;  %vm1095_vm12 = vcmp.ge.f32.partialorder %v1093_v33, %v883_v21 }
 0x145   : > { %v1096_v36 = vsel %vm1095_vm12, %v1093_v33, %v883_v21  ;;  %v1097_v38 = vsel %vm1095_vm12, %v1094_v34, %v4639_v35 }
 0x146   : > { %vm1103_vm13 = vcmp.ge.f32.partialorder %v884_v28, %v885_v30  ;;  %1098 = vmax.index.xlane.f32.xlu1 %v1096_v36 }
 0x147   : > { %v747_v40 = vpop.f32.mrf.mxu2  ;;  %v1104_v41 = vsel %vm1103_vm13, %v884_v28, %v885_v30  ;;  %v1105_v45 = vsel %vm1103_vm13, %v4620_v20, %v4625_v25 }
 0x148   : > { %v812_v42 = vpop.f32.mrf.mxu3  ;;  %v886_v46 = vsub.f32 %v747_v40, %v4627_v26  ;;  %v903_v19 = vpop.xlane.xlu0 %902 }
 0x149   : > { %v887_v18 = vsub.f32 %v812_v42, %v4629_v27  ;;  %4016 = vset.pattern.permute.xlu0 %v903_v19 }
 0x14a   : > { %vm1106_vm14 = vcmp.ge.f32.partialorder %v1104_v41, %v886_v46 }
 0x14b   : > { %v1107_v48 = vsel %vm1106_vm14, %v1104_v41, %v886_v46  ;;  %v1108_v50 = vsel %vm1106_vm14, %v1105_v45, %v4632_v31 }
 0x14c   : > { %vm1109_vm15 = vcmp.ge.f32.partialorder %v1107_v48, %v887_v18 }
 0x14d   : > { %v1110_v51 = vsel %vm1109_vm15, %v1107_v48, %v887_v18  ;;  %v1111_v52 = vsel %vm1109_vm15, %v1108_v50, %v4639_v35 }
 0x14e   : > { %1112 = vmax.index.xlane.f32.xlu0 %v1110_v51 }
 0x150   : > { %v917_v54 = vpop.xlane.xlu0 %916 }
 0x151   : > { %4017 = vset.pattern.permute.xlu2 %v917_v54 }
 0x159   : > { %v931_v56 = vpop.xlane.xlu1 %930  ;;  %919 = vperm.xlu2 %4017, %v4655_v57   ;;  %v1068_v57 = vsel %vm1067_vm6, %v4783_v53, %v4779_v47 }
 0x15a   : > { %4018 = vset.pattern.permute.xlu1 %v931_v56 }
 0x161   : > { %v945_v26 = vpop.xlane.xlu1 %944 }
 0x162   : > { %933 = vperm.xlu1 %4018, %v4665_v7   ;;  %905 = vperm.xlu0 %4016, %v4645_v43   ;;  %v1040_v43 = vsel %vm1039_vm0, %v4745_v14, %v4741_v8  ;;  %v1054_v7 = vsel %vm1053_vm3, %v4764_v37, %v4760_v29 }
 0x169   : > { %v959_v27 = vpop.xlane.xlu2 %958 }
 0x16a   : > { %4020 = vset.pattern.permute.xlu2 %v959_v27  ;;  %4019 = vset.pattern.permute.xlu1 %v945_v26 }
 0x171   : > { %v973_v58 = vpop.xlane.xlu2 %972 }
 0x172   : > { %947 = vperm.xlu1 %4019, %v4675_v24   ;;  %4021 = vset.pattern.permute.xlu0 %v973_v58 }
 0x179   : > { %v987_v60 = vpop.xlane.xlu1 %986 }
 0x17a   : > { %4022 = vset.pattern.permute.xlu1 %v987_v60 }
 0x181   : > { %v1001_v24 = vpop.xlane.xlu1 %1000 }
 0x182   : > { %1084 = vmax.index.xlane.f32.xlu2 %v1082_v61 }
 0x189   : > { %v1015_v47 = vpop.xlane.xlu2 %1014 }
 0x18c   : > { %1070 = vmax.index.xlane.f32.xlu0 %v1068_v57 }
 0x191   : > { %v1029_v14 = vpop.xlane.xlu2 %1028 }
 0x194   : > { %1042 = vmax.index.xlane.f32.xlu0 %v1040_v43 }
 0x19a   : > { %961 = vperm.xlu2 %4020, %v4685_v44  }
 0x19c   : > { %1056 = vmax.index.xlane.f32.xlu1 %v1054_v7 }
 0x1a2   : > { %4023 = vset.pattern.permute.xlu2 %v1001_v24 }
 0x1a8   : > { %975 = vperm.xlu0 %4021, %v4695_v59   ;;  %v7858_v59 = vmov 1.0  }
 0x1aa   : > { %1003 = vperm.xlu2 %4023, %v4715_v32  }
 0x1b2   : > { %4024 = vset.pattern.permute.xlu2 %v1015_v47 }
 0x1b5   : > { %989 = vperm.xlu1 %4022, %v4705_v10   ;;  %v4870_v10 = vpop.permute.xlu2 %919 }
 0x1b6   : > { %vm7811_vm4 = vcmp.eq.s32.totalorder %v4620_v20, %v4870_v10  ;;  %vm7810_vm5 = vcmp.eq.s32.totalorder %v4625_v25, %v4870_v10  ;;  %vm7809_vm6 = vcmp.eq.s32.totalorder %v4632_v31, %v4870_v10  ;;  %vm7808_vm7 = vcmp.eq.s32.totalorder %v4639_v35, %v4870_v10 }
 0x1b9   : > { %v1099_v44 = vpop.xlane.xlu1 %1098 }
 0x1ba   : > { %1017 = vperm.xlu2 %4024, %v4725_v49  }
 0x1bd   : > { %4025 = vset.pattern.permute.xlu1 %v1099_v44 }
 0x1c1   : > { %v1113_v8 = vpop.xlane.xlu0 %1112 }
 0x1c2   : > { %4026 = vset.pattern.permute.xlu2 %v1113_v8 }
 0x1c5   : > { %1101 = vperm.xlu1 %4025, %v1097_v38  }
 0x1ca   : > { %1115 = vperm.xlu2 %4026, %v1111_v52  }
 0x1d2   : > { %4027 = vset.pattern.permute.xlu2 %v1029_v14 }
 0x1d4   : > { %v4844_v29 = vpop.permute.xlu0 %905  ;;  %v4897_v32 = vpop.permute.xlu1 %933 }
 0x1d5   : > { %vm7807_vm0 = vcmp.eq.s32.totalorder %v4620_v20, %v4844_v29  ;;  %vm7806_vm1 = vcmp.eq.s32.totalorder %v4625_v25, %v4844_v29  ;;  %vm7805_vm2 = vcmp.eq.s32.totalorder %v4632_v31, %v4844_v29  ;;  %vm7804_vm3 = vcmp.eq.s32.totalorder %v4639_v35, %v4844_v29 }
 0x1d6   : > { %3546 = vmatmul.msk.f32.vlgmr.msrb.gmra.mxu0 %vm7807_vm0, %v7858_v59  ;;  %3562 = vmatmul.msk.f32.vlgmr.msrb.gmra.mxu1 %vm7806_vm1, %v7858_v59  ;;  %vm7815_vm8 = vcmp.eq.s32.totalorder %v4620_v20, %v4897_v32  ;;  %vm7814_vm9 = vcmp.eq.s32.totalorder %v4625_v25, %v4897_v32  ;;  %vm7813_vm10 = vcmp.eq.s32.totalorder %v4632_v31, %v4897_v32 }
 0x1d7   : > { %3578 = vmatmul.msk.f32.vlgmr.msrb.gmra.mxu2 %vm7805_vm2, %v7858_v59  ;;  %3594 = vmatmul.msk.f32.vlgmr.msrb.gmra.mxu3 %vm7804_vm3, %v7858_v59  ;;  %vm7812_vm11 = vcmp.eq.s32.totalorder %v4639_v35, %v4897_v32 }
 0x1da   : > { %1031 = vperm.xlu2 %4027, %v4735_v1  }
 0x1de   : > { %3547 = vmatmul.msk.f32.gmra.mxu0 %vm7811_vm4, %v7858_v59  ;;  %3563 = vmatmul.msk.f32.gmra.mxu1 %vm7810_vm5, %v7858_v59 }
 0x1df   : > { %3579 = vmatmul.msk.f32.gmra.mxu2 %vm7809_vm6, %v7858_v59  ;;  %3595 = vmatmul.msk.f32.gmra.mxu3 %vm7808_vm7, %v7858_v59 }
 0x1e4   : > { %v4923_v49 = vpop.permute.xlu1 %947 }
 0x1e5   : > { %vm7819_vm12 = vcmp.eq.s32.totalorder %v4620_v20, %v4923_v49  ;;  %vm7818_vm13 = vcmp.eq.s32.totalorder %v4625_v25, %v4923_v49  ;;  %vm7817_vm14 = vcmp.eq.s32.totalorder %v4632_v31, %v4923_v49  ;;  %vm7816_vm15 = vcmp.eq.s32.totalorder %v4639_v35, %v4923_v49 }
 0x1e6   : > { %3548 = vmatmul.msk.f32.gmra.mxu0 %vm7815_vm8, %v7858_v59  ;;  %3564 = vmatmul.msk.f32.gmra.mxu1 %vm7814_vm9, %v7858_v59 }
 0x1e7   : > { %3580 = vmatmul.msk.f32.gmra.mxu2 %vm7813_vm10, %v7858_v59  ;;  %3596 = vmatmul.msk.f32.gmra.mxu3 %vm7812_vm11, %v7858_v59 }
 0x1ee   : > { %3549 = vmatmul.msk.f32.gmra.mxu0 %vm7819_vm12, %v7858_v59  ;;  %3565 = vmatmul.msk.f32.gmra.mxu1 %vm7818_vm13, %v7858_v59 }
 0x1ef   : > { %3581 = vmatmul.msk.f32.gmra.mxu2 %vm7817_vm14, %v7858_v59  ;;  %3597 = vmatmul.msk.f32.gmra.mxu3 %vm7816_vm15, %v7858_v59 }
 0x1f5   : > { %v1085_v1 = vpop.xlane.xlu2 %1084 }
 0x1f6   : > { %4028 = vset.pattern.permute.xlu1 %v1085_v1 }
 0x1fd   : > { %v4949_v37 = vpop.permute.xlu2 %961 }
 0x1fe   : > { %1087 = vperm.xlu1 %4028, %v4803_v9   ;;  %vm7827_vm3 = vcmp.eq.s32.totalorder %v4620_v20, %v4949_v37  ;;  %vm7826_vm2 = vcmp.eq.s32.totalorder %v4625_v25, %v4949_v37  ;;  %vm7825_vm1 = vcmp.eq.s32.totalorder %v4632_v31, %v4949_v37  ;;  %vm7824_vm0 = vcmp.eq.s32.totalorder %v4639_v35, %v4949_v37 }
 0x1ff   : > { %v1071_v53 = vpop.xlane.xlu0 %1070  ;;  %3550 = vmatmul.msk.f32.gmra.mxu0 %vm7827_vm3, %v7858_v59  ;;  %3566 = vmatmul.msk.f32.gmra.mxu1 %vm7826_vm2, %v7858_v59 }
 0x200   : > { %3582 = vmatmul.msk.f32.gmra.mxu2 %vm7825_vm1, %v7858_v59  ;;  %3598 = vmatmul.msk.f32.gmra.mxu3 %vm7824_vm0, %v7858_v59 }
 0x201   : > { %4029 = vset.pattern.permute.xlu2 %v1071_v53 }
 0x205   : > { %v4978_v0 = vpop.permute.xlu2 %1003 }
 0x207   : > { %v1043_v62 = vpop.xlane.xlu0 %1042 }
 0x208   : > { %4030 = vset.pattern.permute.xlu0 %v1043_v62 }
 0x209   : > { %1073 = vperm.xlu2 %4029, %v4792_v55  }
 0x20f   : > { %v1057_v63 = vpop.xlane.xlu1 %1056 }
 0x210   : > { %4031 = vset.pattern.permute.xlu1 %v1057_v63  ;;  %1045 = vperm.xlu0 %4030, %v4754_v16  }
 0x214   : > { %v4999_v16 = vpop.permute.xlu2 %1017 }
 0x215   : > { %vm7851_vm0 = vcmp.eq.s32.totalorder %v4620_v20, %v4999_v16  ;;  %vm7850_vm1 = vcmp.eq.s32.totalorder %v4625_v25, %v4999_v16  ;;  %vm7849_vm2 = vcmp.eq.s32.totalorder %v4632_v31, %v4999_v16 }
 0x218   : > { %1059 = vperm.xlu1 %4031, %v4773_v39  }
 0x21a   : > { %v4981_v2 = vpop.permute.xlu0 %975 }
 0x21b   : > { %vm7831_vm7 = vcmp.eq.s32.totalorder %v4620_v20, %v4981_v2  ;;  %vm7830_vm6 = vcmp.eq.s32.totalorder %v4625_v25, %v4981_v2  ;;  %vm7829_vm5 = vcmp.eq.s32.totalorder %v4632_v31, %v4981_v2  ;;  %vm7828_vm4 = vcmp.eq.s32.totalorder %v4639_v35, %v4981_v2 }
 0x21c   : > { %3551 = vmatmul.msk.f32.gmra.mxu0 %vm7831_vm7, %v7858_v59  ;;  %3567 = vmatmul.msk.f32.gmra.mxu1 %vm7830_vm6, %v7858_v59 }
 0x21d   : > { %3583 = vmatmul.msk.f32.gmra.mxu2 %vm7829_vm5, %v7858_v59  ;;  %3599 = vmatmul.msk.f32.gmra.mxu3 %vm7828_vm4, %v7858_v59  ;;  %vm7848_vm5 = vcmp.eq.s32.totalorder %v4639_v35, %v4999_v16 }
 0x224   : > { %v5009_v39 = vpop.permute.xlu2 %1115 }
 0x225   : > { %vm7823_vm11 = vcmp.eq.s32.totalorder %v4620_v20, %v5009_v39  ;;  %vm7822_vm10 = vcmp.eq.s32.totalorder %v4625_v25, %v5009_v39  ;;  %vm7821_vm9 = vcmp.eq.s32.totalorder %v4632_v31, %v5009_v39  ;;  %vm7820_vm8 = vcmp.eq.s32.totalorder %v4639_v35, %v5009_v39 }
 0x226   : > { %3610 = vmatpush.xpose.msk.msra.mxu0 %vm7823_vm11, %v7858_v59  ;;  %3626 = vmatpush.xpose.msk.msra.mxu1 %vm7822_vm10, %v7858_v59  ;;  %vm7841_vm10 = vcmp.eq.s32.totalorder %v4632_v31, %v4978_v0  ;;  %vm7840_vm11 = vcmp.eq.s32.totalorder %v4639_v35, %v4978_v0 }
 0x227   : > { %v5019_v55 = vpop.permute.xlu1 %989  ;;  %3642 = vmatpush.xpose.msk.msra.mxu2 %vm7821_vm9, %v7858_v59  ;;  %3658 = vmatpush.xpose.msk.msra.mxu3 %vm7820_vm8, %v7858_v59  ;;  %vm7843_vm8 = vcmp.eq.s32.totalorder %v4620_v20, %v4978_v0  ;;  %vm7842_vm9 = vcmp.eq.s32.totalorder %v4625_v25, %v4978_v0 }
 0x228   : > { %vm7839_vm15 = vcmp.eq.s32.totalorder %v4620_v20, %v5019_v55  ;;  %vm7838_vm14 = vcmp.eq.s32.totalorder %v4625_v25, %v5019_v55  ;;  %vm7837_vm13 = vcmp.eq.s32.totalorder %v4632_v31, %v5019_v55  ;;  %vm7833_vm12 = vcmp.eq.s32.totalorder %v4639_v35, %v5019_v55 }
 0x229   : > { %3552 = vmatmul.msk.f32.gmra.mxu0 %vm7839_vm15, %v7858_v59  ;;  %3568 = vmatmul.msk.f32.gmra.mxu1 %vm7838_vm14, %v7858_v59 }
 0x22a   : > { %3584 = vmatmul.msk.f32.gmra.mxu2 %vm7837_vm13, %v7858_v59  ;;  %3600 = vmatmul.msk.f32.gmra.mxu3 %vm7833_vm12, %v7858_v59 }
 0x231   : > { %3553 = vmatmul.msk.f32.gmra.mxu0 %vm7843_vm8, %v7858_v59  ;;  %3569 = vmatmul.msk.f32.gmra.mxu1 %vm7842_vm9, %v7858_v59 }
 0x232   : > { %3585 = vmatmul.msk.f32.gmra.mxu2 %vm7841_vm10, %v7858_v59  ;;  %3601 = vmatmul.msk.f32.gmra.mxu3 %vm7840_vm11, %v7858_v59 }
 0x234   : > { %v5135_v4 = vpop.permute.xlu2 %1031 }
 0x235   : > { %vm7854_vm12 = vcmp.eq.s32.totalorder %v4625_v25, %v5135_v4 }
 0x237   : > { %v5085_v3 = vpop.permute.xlu1 %1101 }
 0x238   : > { %vm7832_vm3 = vcmp.eq.s32.totalorder %v4620_v20, %v5085_v3  ;;  %vm7836_vm4 = vcmp.eq.s32.totalorder %v4625_v25, %v5085_v3  ;;  %vm7835_vm6 = vcmp.eq.s32.totalorder %v4632_v31, %v5085_v3  ;;  %vm7834_vm7 = vcmp.eq.s32.totalorder %v4639_v35, %v5085_v3 }
 0x239   : > { %3554 = vmatmul.msk.f32.gmra.mxu0 %vm7851_vm0, %v7858_v59  ;;  %3570 = vmatmul.msk.f32.gmra.mxu1 %vm7850_vm1, %v7858_v59 }
 0x23a   : > { %3586 = vmatmul.msk.f32.gmra.mxu2 %vm7849_vm2, %v7858_v59  ;;  %3602 = vmatmul.msk.f32.gmra.mxu3 %vm7848_vm5, %v7858_v59 }
 0x23b   : > { %3611 = vmatpush.xpose.msk.msra.mxu0 %vm7832_vm3, %v7858_v59  ;;  %3627 = vmatpush.xpose.msk.msra.mxu1 %vm7836_vm4, %v7858_v59  ;;  %vm7853_vm3 = vcmp.eq.s32.totalorder %v4620_v20, %v5135_v4 }
 0x23c   : > { %3643 = vmatpush.xpose.msk.msra.mxu2 %vm7835_vm6, %v7858_v59  ;;  %3659 = vmatpush.xpose.msk.msra.mxu3 %vm7834_vm7, %v7858_v59  ;;  %vm7855_vm7 = vcmp.eq.s32.totalorder %v4632_v31, %v5135_v4  ;;  %vm7856_vm6 = vcmp.eq.s32.totalorder %v4639_v35, %v5135_v4 }
 0x241   : > { %3555 = vmatmul.msk.f32.gmra.mxu0 %vm7853_vm3, %v7858_v59  ;;  %3571 = vmatmul.msk.f32.gmra.mxu1 %vm7854_vm12, %v7858_v59 }
 0x242   : > { %3587 = vmatmul.msk.f32.gmra.mxu2 %vm7855_vm7, %v7858_v59  ;;  %3603 = vmatmul.msk.f32.gmra.mxu3 %vm7856_vm6, %v7858_v59 }
 0x253   : > { %v1326_v5 = vpop.f32.mrf.mxu0  ;;  %v1391_v6 = vpop.f32.mrf.mxu1 }
 0x254   : > { %v1392_v9 = vadd.f32 %v1391_v6, %v1326_v5 }
 0x25a   : > { %v1456_v11 = vpop.f32.mrf.mxu2  ;;  %v1521_v12 = vpop.f32.mrf.mxu3 }
 0x25b   : > { %v1457_v13 = vadd.f32 %v1456_v11, %v1392_v9  ;;  %v1329_v15 = vpop.f32.mrf.mxu0  ;;  %v1394_v17 = vpop.f32.mrf.mxu1 }
 0x25c   : > { %v1395_v22 = vadd.f32 %v1394_v17, %v1329_v15 }
 0x25d   : > { %v5167_v21 = vadd.f32 %v1521_v12, %v1457_v13 }
 0x25f   : > { %2937 = vst [vmem:[%s5165_s27] sm:$0xff] %v5167_v21 }
 0x262   : > { %v1459_v23 = vpop.f32.mrf.mxu2  ;;  %v1524_v28 = vpop.f32.mrf.mxu3 }
 0x263   : > { %v1460_v30 = vadd.f32 %v1459_v23, %v1395_v22  ;;  %v1332_v33 = vpop.f32.mrf.mxu0  ;;  %v1397_v34 = vpop.f32.mrf.mxu1 }
 0x264   : > { %v1398_v38 = vadd.f32 %v1397_v34, %v1332_v33  ;;  %v5189_v51 = vpop.permute.xlu2 %1073 }
 0x265   : > { %v5171_v36 = vadd.f32 %v1524_v28, %v1460_v30  ;;  %vm1165_vm11 = vcmp.eq.s32.totalorder %v4620_v20, %v5189_v51  ;;  %vm1166_vm10 = vcmp.eq.s32.totalorder %v4625_v25, %v5189_v51  ;;  %vm1167_vm9 = vcmp.eq.s32.totalorder %v4632_v31, %v5189_v51 }
 0x266   : > { %vm1168_vm8 = vcmp.eq.s32.totalorder %v4639_v35, %v5189_v51 }
 0x267   : > { %2938 = vst [vmem:[%s5165_s27 + $0x8] sm:$0xff] %v5171_v36 }
 0x26a   : > { %v1462_v40 = vpop.f32.mrf.mxu2  ;;  %v1527_v41 = vpop.f32.mrf.mxu3 }
 0x26b   : > { %v1463_v42 = vadd.f32 %v1462_v40, %v1398_v38  ;;  %v1335_v46 = vpop.f32.mrf.mxu0  ;;  %v1400_v18 = vpop.f32.mrf.mxu1 }
 0x26c   : > { %v1401_v19 = vadd.f32 %v1400_v18, %v1335_v46 }
 0x26d   : > { %v5175_v45 = vadd.f32 %v1527_v41, %v1463_v42 }
 0x26f   : > { %2939 = vst [vmem:[%s5165_s27 + $0x10] sm:$0xff] %v5175_v45 }
 0x270   : > { %v5179_v48 = vpop.permute.xlu1 %1087 }
 0x271   : > { %vm7847_vm4 = vcmp.eq.s32.totalorder %v4620_v20, %v5179_v48  ;;  %vm7846_vm13 = vcmp.eq.s32.totalorder %v4625_v25, %v5179_v48  ;;  %vm7845_vm14 = vcmp.eq.s32.totalorder %v4632_v31, %v5179_v48  ;;  %vm7844_vm15 = vcmp.eq.s32.totalorder %v4639_v35, %v5179_v48 }
 0x272   : > { %v1465_v50 = vpop.f32.mrf.mxu2  ;;  %3612 = vmatpush.xpose.msk.msra.mxu0 %vm7847_vm4, %v7858_v59  ;;  %3628 = vmatpush.xpose.msk.msra.mxu1 %vm7846_vm13, %v7858_v59  ;;  %v1530_v54 = vpop.f32.mrf.mxu3 }
 0x273   : > { %v1466_v52 = vadd.f32 %v1465_v50, %v1401_v19  ;;  %3644 = vmatpush.xpose.msk.msra.mxu2 %vm7845_vm14, %v7858_v59  ;;  %3660 = vmatpush.xpose.msk.msra.mxu3 %vm7844_vm15, %v7858_v59 }
 0x275   : > { %v5207_v56 = vadd.f32 %v1530_v54, %v1466_v52 }
 0x276   : > { %3613 = vmatpush.xpose.msk.msra.mxu0 %vm1165_vm11, %v7858_v59  ;;  %3629 = vmatpush.xpose.msk.msra.mxu1 %vm1166_vm10, %v7858_v59 }
 0x277   : > { %2940 = vst [vmem:[%s5165_s27 + $0x18] sm:$0xff] %v5207_v56  ;;  %3645 = vmatpush.xpose.msk.msra.mxu2 %vm1167_vm9, %v7858_v59  ;;  %3661 = vmatpush.xpose.msk.msra.mxu3 %vm1168_vm8, %v7858_v59 }
 0x27c   : > { %v1338_v26 = vpop.f32.mrf.mxu0  ;;  %v1403_v27 = vpop.f32.mrf.mxu1 }
 0x27d   : > { %v1404_v58 = vadd.f32 %v1403_v27, %v1338_v26  ;;  %v1572_v27 = vshra.s32 %v4639_v35, 7 }
 0x282   : > { %v5235_v60 = vpop.permute.xlu0 %1045 }
 0x283   : > { %vm1157_vm15 = vcmp.eq.s32.totalorder %v4620_v20, %v5235_v60  ;;  %vm1158_vm14 = vcmp.eq.s32.totalorder %v4625_v25, %v5235_v60  ;;  %vm1159_vm13 = vcmp.eq.s32.totalorder %v4632_v31, %v5235_v60  ;;  %vm7852_vm4 = vcmp.eq.s32.totalorder %v4639_v35, %v5235_v60  ;;  %v1468_v61 = vpop.f32.mrf.mxu2  ;;  %v1533_v43 = vpop.f32.mrf.mxu3 }
 0x284   : > { %3556 = vmatmul.msk.f32.gmra.mxu0 %vm1157_vm15, %v7858_v59  ;;  %3572 = vmatmul.msk.f32.gmra.mxu1 %vm1158_vm14, %v7858_v59  ;;  %v1469_v57 = vadd.f32 %v1468_v61, %v1404_v58  ;;  %v5675_v58 = vcvt.s32.f32 %v1572_v27  ;;  %v1569_v61 = vshra.s32 %v4620_v20, 7  ;;  %v6010_v27 = vld [vmem:[%s7794_s3 + $0xc8] sm:$0xff] }
 0x285   : > { %3588 = vmatmul.msk.f32.gmra.mxu2 %vm1159_vm13, %v7858_v59  ;;  %3604 = vmatmul.msk.f32.gmra.mxu3 %vm7852_vm4, %v7858_v59 }
 0x286   : > { %v5261_v7 = vadd.f32 %v1533_v43, %v1469_v57  ;;  %8027 = vst [vmem:[#allocation12_spill] sm:$0xff] %v5675_v58  ;;  %v5689_v57 = vcvt.s32.f32 %v1569_v61  ;;  %v6015_v61 = vld [vmem:[%s7794_s3 + $0x148] sm:$0xff] }
 0x288   : > { %2941 = vst [vmem:[%s5165_s27 + $0x20] sm:$0xff] %v5261_v7 }
 0x289   : > { %8030 = vst [vmem:[#allocation13_spill] sm:$0xff] %v5689_v57 }
 0x28a   : > { %v5265_v24 = vpop.permute.xlu1 %1059 }
 0x28b   : > { %vm1161_vm5 = vcmp.eq.s32.totalorder %v4620_v20, %v5265_v24  ;;  %vm1162_vm2 = vcmp.eq.s32.totalorder %v4625_v25, %v5265_v24  ;;  %vm1163_vm1 = vcmp.eq.s32.totalorder %v4632_v31, %v5265_v24  ;;  %vm1164_vm0 = vcmp.eq.s32.totalorder %v4639_v35, %v5265_v24 }
 0x28c   : > { %3557 = vmatmul.msk.f32.gmra.mxu0 %vm1161_vm5, %v7858_v59  ;;  %3573 = vmatmul.msk.f32.gmra.mxu1 %vm1162_vm2, %v7858_v59  ;;  %v7857_v24 = vcvt.s32.f32 %v4620_v20 }
 0x28d   : > { %3589 = vmatmul.msk.f32.gmra.mxu2 %vm1163_vm1, %v7858_v59  ;;  %3605 = vmatmul.msk.f32.gmra.mxu3 %vm1164_vm0, %v7858_v59 }
 0x28e   : > { %3614 = vmatpush.xpose.msk.msra.mxu0 %vm1161_vm5, %v7858_v59  ;;  %3630 = vmatpush.xpose.msk.msra.mxu1 %vm1162_vm2, %v7858_v59 }
 0x28f   : > { %3646 = vmatpush.xpose.msk.msra.mxu2 %vm1163_vm1, %v7858_v59  ;;  %3662 = vmatpush.xpose.msk.msra.mxu3 %vm1164_vm0, %v7858_v59 }
 0x292   : > { %3615 = vmatpush.xpose.msk.msra.mxu0 %vm1157_vm15, %v7858_v59  ;;  %3631 = vmatpush.xpose.msk.msra.mxu1 %vm1158_vm14, %v7858_v59 }
 0x293   : > { %3647 = vmatpush.xpose.msk.msra.mxu2 %vm1159_vm13, %v7858_v59  ;;  %3663 = vmatpush.xpose.msk.msra.mxu3 %vm7852_vm4, %v7858_v59  ;;  %vm7958_vm4 = vcmp.eq.s32.totalorder %v4620_v20, %v4999_v16 }
 0x294   : > { %3558 = vmatmul.msk.f32.gmra.mxu0 %vm1165_vm11, %v7858_v59  ;;  %3574 = vmatmul.msk.f32.gmra.mxu1 %vm1166_vm10, %v7858_v59 }
 0x295   : > { %3590 = vmatmul.msk.f32.gmra.mxu2 %vm1167_vm9, %v7858_v59  ;;  %3606 = vmatmul.msk.f32.gmra.mxu3 %vm1168_vm8, %v7858_v59 }
 0x296   : > { %3616 = vmatpush.xpose.msk.msra.mxu0 %vm7853_vm3, %v7858_v59  ;;  %3632 = vmatpush.xpose.msk.msra.mxu1 %vm7854_vm12, %v7858_v59  ;;  %vm7959_vm3 = vcmp.eq.s32.totalorder %v4625_v25, %v4999_v16  ;;  %vm7960_vm12 = vcmp.eq.s32.totalorder %v4632_v31, %v4999_v16 }
 0x297   : > { %3648 = vmatpush.xpose.msk.msra.mxu2 %vm7855_vm7, %v7858_v59  ;;  %3664 = vmatpush.xpose.msk.msra.mxu3 %vm7856_vm6, %v7858_v59  ;;  %vm7961_vm7 = vcmp.eq.s32.totalorder %v4639_v35, %v4999_v16  ;;  %vm7966_vm6 = vcmp.eq.s32.totalorder %v4620_v20, %v4978_v0 }
 0x299   : > { %v1341_v47 = vpop.f32.mrf.mxu0  ;;  %v1406_v44 = vpop.f32.mrf.mxu1 }
 0x29a   : > { %3617 = vmatpush.xpose.msk.msra.mxu0 %vm7958_vm4, %v7858_v59  ;;  %3633 = vmatpush.xpose.msk.msra.mxu1 %vm7959_vm3, %v7858_v59  ;;  %vm7962_vm4 = vcmp.eq.s32.totalorder %v4620_v20, %v5179_v48  ;;  %vm7963_vm3 = vcmp.eq.s32.totalorder %v4625_v25, %v5179_v48  ;;  %v1407_v8 = vadd.f32 %v1406_v44, %v1341_v47  ;;  %v5876_v44 = vld [vmem:[%s7794_s3 + $0x70] sm:$0xff] }
 0x29b   : > { %3649 = vmatpush.xpose.msk.msra.mxu2 %vm7960_vm12, %v7858_v59  ;;  %3665 = vmatpush.xpose.msk.msra.mxu3 %vm7961_vm7, %v7858_v59  ;;  %vm7964_vm12 = vcmp.eq.s32.totalorder %v4632_v31, %v5179_v48  ;;  %vm7965_vm7 = vcmp.eq.s32.totalorder %v4639_v35, %v5179_v48 }
 0x29c   : > { %3559 = vmatmul.msk.f32.gmra.mxu0 %vm7962_vm4, %v7858_v59  ;;  %3575 = vmatmul.msk.f32.gmra.mxu1 %vm7963_vm3, %v7858_v59  ;;  %vm7967_vm4 = vcmp.eq.s32.totalorder %v4625_v25, %v4978_v0  ;;  %vm7968_vm3 = vcmp.eq.s32.totalorder %v4632_v31, %v4978_v0 }
 0x29d   : > { %3591 = vmatmul.msk.f32.gmra.mxu2 %vm7964_vm12, %v7858_v59  ;;  %3607 = vmatmul.msk.f32.gmra.mxu3 %vm7965_vm7, %v7858_v59  ;;  %vm7969_vm12 = vcmp.eq.s32.totalorder %v4639_v35, %v4978_v0  ;;  %vm7971_vm7 = vcmp.eq.s32.totalorder %v4625_v25, %v5019_v55 }
 0x29e   : > { %3618 = vmatpush.xpose.msk.msra.mxu0 %vm7966_vm6, %v7858_v59  ;;  %3634 = vmatpush.xpose.msk.msra.mxu1 %vm7967_vm4, %v7858_v59  ;;  %vm7970_vm6 = vcmp.eq.s32.totalorder %v4620_v20, %v5019_v55  ;;  %vm7973_vm4 = vcmp.eq.s32.totalorder %v4632_v31, %v5019_v55 }
 0x29f   : > { %3650 = vmatpush.xpose.msk.msra.mxu2 %vm7968_vm3, %v7858_v59  ;;  %3666 = vmatpush.xpose.msk.msra.mxu3 %vm7969_vm12, %v7858_v59  ;;  %vm7974_vm3 = vcmp.eq.s32.totalorder %v4639_v35, %v5019_v55  ;;  %vm7975_vm12 = vcmp.eq.s32.totalorder %v4620_v20, %v5085_v3 }
 0x2a0   : > { %v1471_v14 = vpop.f32.mrf.mxu2  ;;  %v1536_v53 = vpop.f32.mrf.mxu3 }
 0x2a1   : > { %v1472_v1 = vadd.f32 %v1471_v14, %v1407_v8  ;;  %v5888_v8 = vld [vmem:[%s7794_s3 + $0x170] sm:$0xff] }
 0x2a2   : > { %3619 = vmatpush.xpose.msk.msra.mxu0 %vm7970_vm6, %v7858_v59  ;;  %3635 = vmatpush.xpose.msk.msra.mxu1 %vm7971_vm7, %v7858_v59  ;;  %vm7976_vm6 = vcmp.eq.s32.totalorder %v4625_v25, %v5085_v3  ;;  %vm7977_vm7 = vcmp.eq.s32.totalorder %v4632_v31, %v5085_v3  ;;  %v5893_v14 = vld [vmem:[%s7794_s3 + $0x1f0] sm:$0xff] }
 0x2a3   : > { %v5411_v62 = vadd.f32 %v1536_v53, %v1472_v1  ;;  %3651 = vmatpush.xpose.msk.msra.mxu2 %vm7973_vm4, %v7858_v59  ;;  %3667 = vmatpush.xpose.msk.msra.mxu3 %vm7974_vm3, %v7858_v59  ;;  %vm7978_vm4 = vcmp.eq.s32.totalorder %v4639_v35, %v5085_v3  ;;  %vm7979_vm3 = vcmp.eq.s32.totalorder %v4620_v20, %v4981_v2  ;;  %v5905_v1 = vld [vmem:[%s7794_s3 + $0x68] sm:$0xff] }
 0x2a4   : > { %3560 = vmatmul.msk.f32.gmra.mxu0 %vm7975_vm12, %v7858_v59  ;;  %3576 = vmatmul.msk.f32.gmra.mxu1 %vm7976_vm6, %v7858_v59  ;;  %vm7980_vm12 = vcmp.eq.s32.totalorder %v4625_v25, %v4981_v2  ;;  %vm7981_vm6 = vcmp.eq.s32.totalorder %v4632_v31, %v4981_v2  ;;  %v5910_v53 = vld [vmem:[%s7794_s3 + $0xe8] sm:$0xff] }
 0x2a5   : > { %7972 = vst [vmem:[#allocation6_spill] sm:$0xff] %v5411_v62  ;;  %3592 = vmatmul.msk.f32.gmra.mxu2 %vm7977_vm7, %v7858_v59  ;;  %3608 = vmatmul.msk.f32.gmra.mxu3 %vm7978_vm4, %v7858_v59  ;;  %vm7982_vm7 = vcmp.eq.s32.totalorder %v4639_v35, %v4981_v2  ;;  %vm7983_vm4 = vcmp.eq.s32.totalorder %v4620_v20, %v4949_v37 }
 0x2a6   : > { %2942 = vst [vmem:[%s5165_s27 + $0x28] sm:$0xff] %v5411_v62  ;;  %3620 = vmatpush.xpose.msk.msra.mxu0 %vm7979_vm3, %v7858_v59  ;;  %3636 = vmatpush.xpose.msk.msra.mxu1 %vm7980_vm12, %v7858_v59  ;;  %v1344_v63 = vpop.f32.mrf.mxu0  ;;  %v1409_v5 = vpop.f32.mrf.mxu1  ;;  %vm7984_vm3 = vcmp.eq.s32.totalorder %v4625_v25, %v4949_v37  ;;  %vm7985_vm12 = vcmp.eq.s32.totalorder %v4632_v31, %v4949_v37  ;;  %v6192_v62 = vld [vmem:[%s7794_s3 + $0x90] sm:$0xff] }
 0x2a7   : > { %3652 = vmatpush.xpose.msk.msra.mxu2 %vm7981_vm6, %v7858_v59  ;;  %3668 = vmatpush.xpose.msk.msra.mxu3 %vm7982_vm7, %v7858_v59  ;;  %vm7986_vm6 = vcmp.eq.s32.totalorder %v4639_v35, %v4949_v37  ;;  %v1410_v6 = vadd.f32 %v1409_v5, %v1344_v63  ;;  %vm7987_vm7 = vcmp.eq.s32.totalorder %v4620_v20, %v5009_v39  ;;  %v5915_v63 = vld [vmem:[%s7794_s3 + $0x168] sm:$0xff] }
 0x2a8   : > { %v5920_v5 = vld [vmem:[%s7794_s3 + $0x1e8] sm:$0xff]  ;;  %8080 = vst [vmem:[#allocation27_spill] sm:$0xff] %v6192_v62 }
 0x2aa   : > { %3621 = vmatpush.xpose.msk.msra.mxu0 %vm7983_vm4, %v7858_v59  ;;  %3637 = vmatpush.xpose.msk.msra.mxu1 %vm7984_vm3, %v7858_v59  ;;  %vm7988_vm4 = vcmp.eq.s32.totalorder %v4625_v25, %v5009_v39  ;;  %vm7989_vm3 = vcmp.eq.s32.totalorder %v4632_v31, %v5009_v39 }
 0x2ab   : > { %3653 = vmatpush.xpose.msk.msra.mxu2 %vm7985_vm12, %v7858_v59  ;;  %3669 = vmatpush.xpose.msk.msra.mxu3 %vm7986_vm6, %v7858_v59  ;;  %vm7990_vm12 = vcmp.eq.s32.totalorder %v4639_v35, %v5009_v39  ;;  %vm7991_vm6 = vcmp.eq.s32.totalorder %v4620_v20, %v4923_v49 }
 0x2ac   : > { %3561 = vmatmul.msk.f32.gmra.mxu0 %vm7987_vm7, %v7858_v59  ;;  %3577 = vmatmul.msk.f32.gmra.mxu1 %vm7988_vm4, %v7858_v59  ;;  %vm7992_vm7 = vcmp.eq.s32.totalorder %v4625_v25, %v4923_v49  ;;  %vm7993_vm4 = vcmp.eq.s32.totalorder %v4632_v31, %v4923_v49 }
 0x2ad   : > { %v1474_v9 = vpop.f32.mrf.mxu2  ;;  %3593 = vmatmul.msk.f32.gmra.mxu2 %vm7989_vm3, %v7858_v59  ;;  %v1539_v11 = vpop.f32.mrf.mxu3  ;;  %3609 = vmatmul.msk.f32.gmra.mxu3 %vm7990_vm12, %v7858_v59  ;;  %vm7994_vm3 = vcmp.eq.s32.totalorder %v4639_v35, %v4923_v49  ;;  %vm7996_vm12 = vcmp.eq.s32.totalorder %v4620_v20, %v4897_v32 }
 0x2ae   : > { %v1475_v12 = vadd.f32 %v1474_v9, %v1410_v6  ;;  %3622 = vmatpush.xpose.msk.msra.mxu0 %vm7991_vm6, %v7858_v59  ;;  %3638 = vmatpush.xpose.msk.msra.mxu1 %vm7992_vm7, %v7858_v59  ;;  %v1347_v13 = vpop.f32.mrf.mxu0  ;;  %v1412_v15 = vpop.f32.mrf.mxu1  ;;  %vm7997_vm6 = vcmp.eq.s32.totalorder %v4625_v25, %v4897_v32  ;;  %vm7998_vm7 = vcmp.eq.s32.totalorder %v4632_v31, %v4897_v32 }
 0x2af   : > { %3654 = vmatpush.xpose.msk.msra.mxu2 %vm7993_vm4, %v7858_v59  ;;  %3670 = vmatpush.xpose.msk.msra.mxu3 %vm7994_vm3, %v7858_v59  ;;  %vm7999_vm4 = vcmp.eq.s32.totalorder %v4639_v35, %v4897_v32  ;;  %v1413_v22 = vadd.f32 %v1412_v15, %v1347_v13  ;;  %vm8000_vm3 = vcmp.eq.s32.totalorder %v4620_v20, %v4870_v10  ;;  %v5939_v13 = vld [vmem:[%s7794_s3 + $0x160] sm:$0xff] }
 0x2b0   : > { %v5503_v17 = vadd.f32 %v1539_v11, %v1475_v12  ;;  %v5929_v11 = vld [vmem:[%s7794_s3 + $0x60] sm:$0xff] }
 0x2b1   : > { %v5934_v12 = vld [vmem:[%s7794_s3 + $0xe0] sm:$0xff] }
 0x2b2   : > { %7995 = vst [vmem:[#allocation7_spill] sm:$0xff] %v5503_v17  ;;  %3623 = vmatpush.xpose.msk.msra.mxu0 %vm7996_vm12, %v7858_v59  ;;  %3639 = vmatpush.xpose.msk.msra.mxu1 %vm7997_vm6, %v7858_v59  ;;  %vm8001_vm12 = vcmp.eq.s32.totalorder %v4625_v25, %v4870_v10  ;;  %vm8002_vm6 = vcmp.eq.s32.totalorder %v4632_v31, %v4870_v10  ;;  %v5944_v15 = vld [vmem:[%s7794_s3 + $0x1e0] sm:$0xff] }
 0x2b3   : > { %2943 = vst [vmem:[%s5165_s27 + $0x30] sm:$0xff] %v5503_v17  ;;  %3655 = vmatpush.xpose.msk.msra.mxu2 %vm7998_vm7, %v7858_v59  ;;  %3671 = vmatpush.xpose.msk.msra.mxu3 %vm7999_vm4, %v7858_v59  ;;  %vm8003_vm7 = vcmp.eq.s32.totalorder %v4639_v35, %v4870_v10  ;;  %vm8005_vm4 = vcmp.eq.s32.totalorder %v4620_v20, %v4844_v29  ;;  %v6187_v17 = vld [vmem:[%s7794_s3 + $0x10] sm:$0xff] }
 0x2b4   : > { %8079 = vst [vmem:[#allocation26_spill] sm:$0xff] %v6187_v17 }
 0x2b5   : > { %v1477_v23 = vpop.f32.mrf.mxu2  ;;  %v1542_v28 = vpop.f32.mrf.mxu3 }
 0x2b6   : > { %v1478_v30 = vadd.f32 %v1477_v23, %v1413_v22  ;;  %3624 = vmatpush.xpose.msk.msra.mxu0 %vm8000_vm3, %v7858_v59  ;;  %3640 = vmatpush.xpose.msk.msra.mxu1 %vm8001_vm12, %v7858_v59  ;;  %v1350_v33 = vpop.f32.mrf.mxu0  ;;  %v1415_v34 = vpop.f32.mrf.mxu1  ;;  %vm8006_vm3 = vcmp.eq.s32.totalorder %v4625_v25, %v4844_v29  ;;  %vm8007_vm12 = vcmp.eq.s32.totalorder %v4632_v31, %v4844_v29  ;;  %v5953_v23 = vld [vmem:[%s7794_s3 + $0x58] sm:$0xff] }
 0x2b7   : > { %3656 = vmatpush.xpose.msk.msra.mxu2 %vm8002_vm6, %v7858_v59  ;;  %3672 = vmatpush.xpose.msk.msra.mxu3 %vm8003_vm7, %v7858_v59  ;;  %vm8008_vm6 = vcmp.eq.s32.totalorder %v4639_v35, %v4844_v29  ;;  %v1416_v40 = vadd.f32 %v1415_v34, %v1350_v33  ;;  %vm8009_vm7 = vcmp.eq.s32.totalorder %v4620_v20, %v5009_v39  ;;  %v5968_v33 = vld [vmem:[%s7794_s3 + $0x1d8] sm:$0xff] }
 0x2b8   : > { %v5539_v38 = vadd.f32 %v1542_v28, %v1478_v30  ;;  %v5958_v28 = vld [vmem:[%s7794_s3 + $0xd8] sm:$0xff] }
 0x2b9   : > { %v5963_v30 = vld [vmem:[%s7794_s3 + $0x158] sm:$0xff] }
 0x2ba   : > { %8004 = vst [vmem:[#allocation8_spill] sm:$0xff] %v5539_v38  ;;  %3625 = vmatpush.xpose.msk.msra.mxu0 %vm8005_vm4, %v7858_v59  ;;  %3641 = vmatpush.xpose.msk.msra.mxu1 %vm8006_vm3, %v7858_v59  ;;  %vm8010_vm4 = vcmp.eq.s32.totalorder %v4625_v25, %v5009_v39  ;;  %vm8011_vm3 = vcmp.eq.s32.totalorder %v4632_v31, %v5009_v39 }
 0x2bb   : > { %2944 = vst [vmem:[%s5165_s27 + $0x38] sm:$0xff] %v5539_v38  ;;  %3657 = vmatpush.xpose.msk.msra.mxu2 %vm8007_vm12, %v7858_v59  ;;  %3673 = vmatpush.xpose.msk.msra.mxu3 %vm8008_vm6, %v7858_v59  ;;  %vm8012_vm12 = vcmp.eq.s32.totalorder %v4639_v35, %v5009_v39  ;;  %vm8014_vm6 = vcmp.eq.s32.totalorder %v4620_v20, %v5085_v3 }
 0x2bd   : > { %v1480_v41 = vpop.f32.mrf.mxu2  ;;  %v1545_v42 = vpop.f32.mrf.mxu3  ;;  %1601 = vmatmul.f32.vlgmr.msra.gmra.mxu0 %v5689_v57 }
 0x2be   : > { %3674 = vmatpush.xpose.msk.msrb.mxu0 %vm8009_vm7, %v7858_v59  ;;  %3690 = vmatpush.xpose.msk.msrb.mxu1 %vm8010_vm4, %v7858_v59  ;;  %v1481_v46 = vadd.f32 %v1480_v41, %v1416_v40  ;;  %vm8015_vm7 = vcmp.eq.s32.totalorder %v4625_v25, %v5085_v3  ;;  %vm8016_vm4 = vcmp.eq.s32.totalorder %v4632_v31, %v5085_v3  ;;  %v1353_v39 = vpop.f32.mrf.mxu0  ;;  %v1418_v19 = vpop.f32.mrf.mxu1 }
 0x2bf   : > { %3706 = vmatpush.xpose.msk.msrb.mxu2 %vm8011_vm3, %v7858_v59  ;;  %3722 = vmatpush.xpose.msk.msrb.mxu3 %vm8012_vm12, %v7858_v59  ;;  %vm8017_vm3 = vcmp.eq.s32.totalorder %v4639_v35, %v5085_v3  ;;  %v1419_v50 = vadd.f32 %v1418_v19, %v1353_v39  ;;  %vm8018_vm12 = vcmp.eq.s32.totalorder %v4620_v20, %v5179_v48  ;;  %v5979_v19 = vld [vmem:[%s7794_s3 + $0x50] sm:$0xff] }
 0x2c0   : > { %v5575_v18 = vadd.f32 %v1545_v42, %v1481_v46  ;;  %1661 = vmatmul.f32.vlgmr.msra.gmra.mxu3 %v5675_v58  ;;  %v6109_v58 = vld [vmem:[%s7794_s3 + $0x28] sm:$0xff] }
 0x2c2   : > { %8013 = vst [vmem:[#allocation9_spill] sm:$0xff] %v5575_v18  ;;  %3675 = vmatpush.xpose.msk.msrb.mxu0 %vm8014_vm6, %v7858_v59  ;;  %3691 = vmatpush.xpose.msk.msrb.mxu1 %vm8015_vm7, %v7858_v59  ;;  %vm8019_vm6 = vcmp.eq.s32.totalorder %v4625_v25, %v5179_v48  ;;  %vm8020_vm7 = vcmp.eq.s32.totalorder %v4632_v31, %v5179_v48 }
 0x2c3   : > { %3707 = vmatpush.xpose.msk.msrb.mxu2 %vm8016_vm4, %v7858_v59  ;;  %3723 = vmatpush.xpose.msk.msrb.mxu3 %vm8017_vm3, %v7858_v59  ;;  %2945 = vst [vmem:[%s5165_s27 + $0x40] sm:$0xff] %v5575_v18  ;;  %vm8021_vm4 = vcmp.eq.s32.totalorder %v4639_v35, %v5179_v48  ;;  %v1571_v48 = vshra.s32 %v4632_v31, 7  ;;  %vm8038_vm3 = vcmp.eq.s32.totalorder %v4632_v31, %v4978_v0 }
 0x2c5   : > { %v1483_v3 = vpop.f32.mrf.mxu2  ;;  %v1548_v54 = vpop.f32.mrf.mxu3  ;;  %v5664_v51 = vcvt.s32.f32 %v1571_v48  ;;  %v6005_v48 = vld [vmem:[%s7794_s3 + $0x48] sm:$0xff] }
 0x2c6   : > { %3676 = vmatpush.xpose.msk.msrb.mxu0 %vm8018_vm12, %v7858_v59  ;;  %3692 = vmatpush.xpose.msk.msrb.mxu1 %vm8019_vm6, %v7858_v59  ;;  %v1484_v52 = vadd.f32 %v1483_v3, %v1419_v50  ;;  %vm8039_vm12 = vcmp.eq.s32.totalorder %v4639_v35, %v4978_v0  ;;  %vm8040_vm6 = vcmp.eq.s32.totalorder %v4620_v20, %v5019_v55  ;;  %v5984_v50 = vld [vmem:[%s7794_s3 + $0xd0] sm:$0xff] }
 0x2c7   : > { %3708 = vmatpush.xpose.msk.msrb.mxu2 %vm8020_vm7, %v7858_v59  ;;  %3724 = vmatpush.xpose.msk.msrb.mxu3 %vm8021_vm4, %v7858_v59  ;;  %8024 = vst [vmem:[#allocation11_spill] sm:$0xff] %v5664_v51  ;;  %vm8041_vm7 = vcmp.eq.s32.totalorder %v4625_v25, %v5019_v55  ;;  %vm8042_vm4 = vcmp.eq.s32.totalorder %v4632_v31, %v5019_v55  ;;  %v5989_v3 = vld [vmem:[%s7794_s3 + $0x150] sm:$0xff] }
 0x2c8   : > { %v5611_v26 = vadd.f32 %v1548_v54, %v1484_v52  ;;  %1641 = vmatmul.f32.vlgmr.msra.gmra.mxu2 %v5664_v51  ;;  %v5994_v52 = vld [vmem:[%s7794_s3 + $0x1d0] sm:$0xff]  ;;  %v6114_v51 = vld [vmem:[%s7794_s3 + $0xa8] sm:$0xff] }
 0x2ca   : > { %8022 = vst [vmem:[#allocation10_spill] sm:$0xff] %v5611_v26  ;;  %3677 = vmatpush.xpose.msk.msrb.mxu0 %vm1165_vm11, %v7858_v59  ;;  %3693 = vmatpush.xpose.msk.msrb.mxu1 %vm1166_vm10, %v7858_v59  ;;  %vm8033_vm10 = vcmp.eq.s32.totalorder %v4625_v25, %v4999_v16  ;;  %vm8034_vm11 = vcmp.eq.s32.totalorder %v4632_v31, %v4999_v16 }
 0x2cb   : > { %3709 = vmatpush.xpose.msk.msrb.mxu2 %vm1167_vm9, %v7858_v59  ;;  %3725 = vmatpush.xpose.msk.msrb.mxu3 %vm1168_vm8, %v7858_v59  ;;  %2946 = vst [vmem:[%s5165_s27 + $0x48] sm:$0xff] %v5611_v26  ;;  %vm8029_vm8 = vcmp.eq.s32.totalorder %v4639_v35, %v5135_v4  ;;  %vm8032_vm9 = vcmp.eq.s32.totalorder %v4620_v20, %v4999_v16 }
 0x2ce   : > { %3678 = vmatpush.xpose.msk.msrb.mxu0 %vm1161_vm5, %v7858_v59  ;;  %3694 = vmatpush.xpose.msk.msrb.mxu1 %vm1162_vm2, %v7858_v59  ;;  %vm8026_vm2 = vcmp.eq.s32.totalorder %v4625_v25, %v5135_v4  ;;  %vm8028_vm5 = vcmp.eq.s32.totalorder %v4632_v31, %v5135_v4 }
 0x2cf   : > { %3710 = vmatpush.xpose.msk.msrb.mxu2 %vm1163_vm1, %v7858_v59  ;;  %3726 = vmatpush.xpose.msk.msrb.mxu3 %vm1164_vm0, %v7858_v59  ;;  %vm8023_vm0 = vcmp.eq.s32.totalorder %v4639_v35, %v5235_v60  ;;  %vm8025_vm1 = vcmp.eq.s32.totalorder %v4620_v20, %v5135_v4  ;;  %v1570_v60 = vshra.s32 %v4625_v25, 7 }
 0x2d1   : > { %v5691_v43 = vcvt.s32.f32 %v1570_v60  ;;  %v6020_v60 = vld [vmem:[%s7794_s3 + $0x1c8] sm:$0xff] }
 0x2d2   : > { %3679 = vmatpush.xpose.msk.msrb.mxu0 %vm1157_vm15, %v7858_v59  ;;  %3695 = vmatpush.xpose.msk.msrb.mxu1 %vm1158_vm14, %v7858_v59  ;;  %vm8036_vm14 = vcmp.eq.s32.totalorder %v4620_v20, %v4978_v0  ;;  %vm8037_vm15 = vcmp.eq.s32.totalorder %v4625_v25, %v4978_v0  ;;  %v5829_v0 = vld [vmem:[%s7794_s3 + $0x78] sm:$0xff] }
 0x2d3   : > { %3711 = vmatpush.xpose.msk.msrb.mxu2 %vm1159_vm13, %v7858_v59  ;;  %3727 = vmatpush.xpose.msk.msrb.mxu3 %vm8023_vm0, %v7858_v59  ;;  %8031 = vst [vmem:[#allocation14_spill] sm:$0xff] %v5691_v43  ;;  %vm8035_vm13 = vcmp.eq.s32.totalorder %v4639_v35, %v4999_v16  ;;  %vm8043_vm0 = vcmp.eq.s32.totalorder %v4639_v35, %v5019_v55  ;;  %v5852_v16 = vld [vmem:[%s7794_s3 + $0x1f8] sm:$0xff] }
 0x2d4   : > { %1621 = vmatmul.f32.vlgmr.msra.gmra.mxu1 %v5691_v43  ;;  %v6119_v43 = vld [vmem:[%s7794_s3 + $0x128] sm:$0xff] }
 0x2d6   : > { %3680 = vmatpush.xpose.msk.msrb.mxu0 %vm8025_vm1, %v7858_v59  ;;  %3696 = vmatpush.xpose.msk.msrb.mxu1 %vm8026_vm2, %v7858_v59  ;;  %vm8044_vm1 = vcmp.eq.s32.totalorder %v4620_v20, %v4981_v2  ;;  %vm8045_vm2 = vcmp.eq.s32.totalorder %v4625_v25, %v4981_v2 }
 0x2d7   : > { %3712 = vmatpush.xpose.msk.msrb.mxu2 %vm8028_vm5, %v7858_v59  ;;  %3728 = vmatpush.xpose.msk.msrb.mxu3 %vm8029_vm8, %v7858_v59  ;;  %vm8046_vm5 = vcmp.eq.s32.totalorder %v4632_v31, %v4981_v2  ;;  %vm8047_vm8 = vcmp.eq.s32.totalorder %v4639_v35, %v4981_v2  ;;  %v5834_v2 = vld [vmem:[%s7794_s3 + $0xf8] sm:$0xff] }
 0x2da   : > { %3681 = vmatpush.xpose.msk.msrb.mxu0 %vm8032_vm9, %v7858_v59  ;;  %3697 = vmatpush.xpose.msk.msrb.mxu1 %vm8033_vm10, %v7858_v59  ;;  %vm8048_vm9 = vcmp.eq.s32.totalorder %v4620_v20, %v4949_v37  ;;  %vm8049_vm10 = vcmp.eq.s32.totalorder %v4625_v25, %v4949_v37 }
 0x2db   : > { %3713 = vmatpush.xpose.msk.msrb.mxu2 %vm8034_vm11, %v7858_v59  ;;  %3729 = vmatpush.xpose.msk.msrb.mxu3 %vm8035_vm13, %v7858_v59  ;;  %vm8050_vm11 = vcmp.eq.s32.totalorder %v4632_v31, %v4949_v37  ;;  %vm8051_vm13 = vcmp.eq.s32.totalorder %v4639_v35, %v4949_v37  ;;  %v1580_v37 = vand.u32 127, %v4639_v35 }
 0x2dd   : > { %v5856_v4 = vcvt.s32.f32 %v1580_v37 }
 0x2de   : > { %3682 = vmatpush.xpose.msk.msrb.mxu0 %vm8036_vm14, %v7858_v59  ;;  %3698 = vmatpush.xpose.msk.msrb.mxu1 %vm8037_vm15, %v7858_v59  ;;  %vm8052_vm14 = vcmp.eq.s32.totalorder %v4620_v20, %v4923_v49  ;;  %vm8053_vm15 = vcmp.eq.s32.totalorder %v4625_v25, %v4923_v49 }
 0x2df   : > { %3714 = vmatpush.xpose.msk.msrb.mxu2 %vm8038_vm3, %v7858_v59  ;;  %3730 = vmatpush.xpose.msk.msrb.mxu3 %vm8039_vm12, %v7858_v59  ;;  %vm8054_vm3 = vcmp.eq.s32.totalorder %v4632_v31, %v4923_v49  ;;  %vm8055_vm12 = vcmp.eq.s32.totalorder %v4639_v35, %v4923_v49  ;;  %v1579_v49 = vand.u32 127, %v4632_v31  ;;  %8067 = vst [vmem:[#allocation16_spill] sm:$0xff] %v5856_v4 }
 0x2e1   : > { %v5854_v55 = vcvt.s32.f32 %v1579_v49 }
 0x2e2   : > { %3683 = vmatpush.xpose.msk.msrb.mxu0 %vm8040_vm6, %v7858_v59  ;;  %3699 = vmatpush.xpose.msk.msrb.mxu1 %vm8041_vm7, %v7858_v59  ;;  %vm8056_vm6 = vcmp.eq.s32.totalorder %v4620_v20, %v4897_v32  ;;  %vm8057_vm7 = vcmp.eq.s32.totalorder %v4625_v25, %v4897_v32 }
 0x2e3   : > { %3715 = vmatpush.xpose.msk.msrb.mxu2 %vm8042_vm4, %v7858_v59  ;;  %3731 = vmatpush.xpose.msk.msrb.mxu3 %vm8043_vm0, %v7858_v59  ;;  %vm8058_vm4 = vcmp.eq.s32.totalorder %v4632_v31, %v4897_v32  ;;  %vm8059_vm0 = vcmp.eq.s32.totalorder %v4639_v35, %v4897_v32  ;;  %v1578_v32 = vand.u32 127, %v4625_v25  ;;  %8066 = vst [vmem:[#allocation15_spill] sm:$0xff] %v5854_v55 }
 0x2e5   : > { %v5867_v47 = vcvt.s32.f32 %v1578_v32 }
 0x2e6   : > { %3684 = vmatpush.xpose.msk.msrb.mxu0 %vm8044_vm1, %v7858_v59  ;;  %3700 = vmatpush.xpose.msk.msrb.mxu1 %vm8045_vm2, %v7858_v59  ;;  %vm8060_vm1 = vcmp.eq.s32.totalorder %v4620_v20, %v4870_v10  ;;  %vm8061_vm2 = vcmp.eq.s32.totalorder %v4625_v25, %v4870_v10 }
 0x2e7   : > { %3716 = vmatpush.xpose.msk.msrb.mxu2 %vm8046_vm5, %v7858_v59  ;;  %3732 = vmatpush.xpose.msk.msrb.mxu3 %vm8047_vm8, %v7858_v59  ;;  %vm8062_vm5 = vcmp.eq.s32.totalorder %v4632_v31, %v4870_v10  ;;  %vm8063_vm8 = vcmp.eq.s32.totalorder %v4639_v35, %v4870_v10  ;;  %v5847_v10 = vld [vmem:[%s7794_s3 + $0x178] sm:$0xff]  ;;  %8070 = vst [vmem:[#allocation17_spill] sm:$0xff] %v5867_v47 }
 0x2ea   : > { %3685 = vmatpush.xpose.msk.msrb.mxu0 %vm8048_vm9, %v7858_v59  ;;  %3701 = vmatpush.xpose.msk.msrb.mxu1 %vm8049_vm10, %v7858_v59  ;;  %vm8064_vm9 = vcmp.eq.s32.totalorder %v4620_v20, %v4844_v29  ;;  %vm8065_vm10 = vcmp.eq.s32.totalorder %v4625_v25, %v4844_v29 }
 0x2eb   : > { %3717 = vmatpush.xpose.msk.msrb.mxu2 %vm8050_vm11, %v7858_v59  ;;  %3733 = vmatpush.xpose.msk.msrb.mxu3 %vm8051_vm13, %v7858_v59  ;;  %vm8068_vm11 = vcmp.eq.s32.totalorder %v4632_v31, %v4844_v29  ;;  %vm8069_vm13 = vcmp.eq.s32.totalorder %v4639_v35, %v4844_v29  ;;  %v5881_v29 = vld [vmem:[%s7794_s3 + $0xf0] sm:$0xff] }
 0x2ee   : > { %3686 = vmatpush.xpose.msk.msrb.mxu0 %vm8052_vm14, %v7858_v59  ;;  %3702 = vmatpush.xpose.msk.msrb.mxu1 %vm8053_vm15, %v7858_v59 }
 0x2ef   : > { %3718 = vmatpush.xpose.msk.msrb.mxu2 %vm8054_vm3, %v7858_v59  ;;  %3734 = vmatpush.xpose.msk.msrb.mxu3 %vm8055_vm12, %v7858_v59 }
 0x2f2   : > { %3687 = vmatpush.xpose.msk.msrb.mxu0 %vm8056_vm6, %v7858_v59  ;;  %3703 = vmatpush.xpose.msk.msrb.mxu1 %vm8057_vm7, %v7858_v59 }
 0x2f3   : > { %3719 = vmatpush.xpose.msk.msrb.mxu2 %vm8058_vm4, %v7858_v59  ;;  %3735 = vmatpush.xpose.msk.msrb.mxu3 %vm8059_vm0, %v7858_v59 }
 0x2f6   : > { %3688 = vmatpush.xpose.msk.msrb.mxu0 %vm8060_vm1, %v7858_v59  ;;  %3704 = vmatpush.xpose.msk.msrb.mxu1 %vm8061_vm2, %v7858_v59 }
 0x2f7   : > { %3720 = vmatpush.xpose.msk.msrb.mxu2 %vm8062_vm5, %v7858_v59  ;;  %3736 = vmatpush.xpose.msk.msrb.mxu3 %vm8063_vm8, %v7858_v59 }
 0x2fa   : > { %3689 = vmatpush.xpose.msk.msrb.mxu0 %vm8064_vm9, %v7858_v59  ;;  %3705 = vmatpush.xpose.msk.msrb.mxu1 %vm8065_vm10, %v7858_v59 }
 0x2fb   : > { %3721 = vmatpush.xpose.msk.msrb.mxu2 %vm8068_vm11, %v7858_v59  ;;  %3737 = vmatpush.xpose.msk.msrb.mxu3 %vm8069_vm13, %v7858_v59 }
 0x2fd   : > { %1681 = vmatmul.f32.vlgmr.msrb.gmra.mxu0 %v7857_v24  ;;  %1701 = vmatmul.f32.vlgmr.msrb.gmra.mxu1 %v5867_v47  ;;  %v6083_v47 = vld [vmem:[%s7794_s3 + $0x30] sm:$0xff] }
 0x2fe   : > { %1765 = vmatpush.xpose.msra.mxu0 %v5829_v0  ;;  %1830 = vmatpush.xpose.msra.mxu1 %v5834_v2 }
 0x2ff   : > { %1895 = vmatpush.xpose.msra.mxu2 %v5847_v10  ;;  %1960 = vmatpush.xpose.msra.mxu3 %v5852_v16 }
 0x300   : > { %1721 = vmatmul.f32.vlgmr.msrb.gmra.mxu2 %v5854_v55  ;;  %1741 = vmatmul.f32.vlgmr.msrb.gmra.mxu3 %v5856_v4 }
 0x301   : > { %v1356_v6 = vpop.f32.mrf.mxu0  ;;  %v1421_v9 = vpop.f32.mrf.mxu1 }
 0x302   : > { %1766 = vmatpush.xpose.msra.mxu0 %v5876_v44  ;;  %1831 = vmatpush.xpose.msra.mxu1 %v5881_v29  ;;  %v1422_v22 = vadd.f32 %v1421_v9, %v1356_v6 }
 0x303   : > { %1896 = vmatpush.xpose.msra.mxu2 %v5888_v8  ;;  %1961 = vmatpush.xpose.msra.mxu3 %v5893_v14 }
 0x306   : > { %1767 = vmatpush.xpose.msra.mxu0 %v5905_v1  ;;  %1832 = vmatpush.xpose.msra.mxu1 %v5910_v53 }
 0x307   : > { %1897 = vmatpush.xpose.msra.mxu2 %v5915_v63  ;;  %1962 = vmatpush.xpose.msra.mxu3 %v5920_v5 }
 0x308   : > { %v1486_v34 = vpop.f32.mrf.mxu2  ;;  %v1551_v40 = vpop.f32.mrf.mxu3 }
 0x309   : > { %v1487_v41 = vadd.f32 %v1486_v34, %v1422_v22  ;;  %v1359_v42 = vpop.f32.mrf.mxu0  ;;  %v1424_v46 = vpop.f32.mrf.mxu1  ;;  %v6031_v34 = vld [vmem:[%s7794_s3 + $0x40] sm:$0xff] }
 0x30a   : > { %1768 = vmatpush.xpose.msra.mxu0 %v5929_v11  ;;  %1833 = vmatpush.xpose.msra.mxu1 %v5934_v12  ;;  %v1425_v54 = vadd.f32 %v1424_v46, %v1359_v42  ;;  %v6046_v42 = vld [vmem:[%s7794_s3 + $0x1c0] sm:$0xff] }
 0x30b   : > { %1898 = vmatpush.xpose.msra.mxu2 %v5939_v13  ;;  %1963 = vmatpush.xpose.msra.mxu3 %v5944_v15  ;;  %v5974_v39 = vadd.f32 %v1551_v40, %v1487_v41  ;;  %v6036_v40 = vld [vmem:[%s7794_s3 + $0xc0] sm:$0xff] }
 0x30c   : > { %v6041_v41 = vld [vmem:[%s7794_s3 + $0x140] sm:$0xff] }
 0x30d   : > { %8071 = vst [vmem:[#allocation18_spill] sm:$0xff] %v5974_v39 }
 0x30e   : > { %1769 = vmatpush.xpose.msra.mxu0 %v5953_v23  ;;  %1834 = vmatpush.xpose.msra.mxu1 %v5958_v28  ;;  %2947 = vst [vmem:[%s5165_s27 + $0x50] sm:$0xff] %v5974_v39  ;;  %v6166_v39 = vld [vmem:[%s7794_s3 + $0x98] sm:$0xff] }
 0x30f   : > { %1899 = vmatpush.xpose.msra.mxu2 %v5963_v30  ;;  %1964 = vmatpush.xpose.msra.mxu3 %v5968_v33  ;;  %8075 = vst [vmem:[#allocation22_spill] sm:$0xff] %v6166_v39 }
 0x310   : > { %v1489_v49 = vpop.f32.mrf.mxu2  ;;  %v1554_v37 = vpop.f32.mrf.mxu3 }
 0x311   : > { %v1490_v32 = vadd.f32 %v1489_v49, %v1425_v54  ;;  %v1362_v6 = vpop.f32.mrf.mxu0  ;;  %v1427_v9 = vpop.f32.mrf.mxu1  ;;  %v6057_v54 = vld [vmem:[%s7794_s3 + $0x38] sm:$0xff] }
 0x312   : > { %1770 = vmatpush.xpose.msra.mxu0 %v5979_v19  ;;  %1835 = vmatpush.xpose.msra.mxu1 %v5984_v50  ;;  %v1428_v46 = vadd.f32 %v1427_v9, %v1362_v6  ;;  %v6062_v49 = vld [vmem:[%s7794_s3 + $0xb8] sm:$0xff] }
 0x313   : > { %1900 = vmatpush.xpose.msra.mxu2 %v5989_v3  ;;  %1965 = vmatpush.xpose.msra.mxu3 %v5994_v52  ;;  %v6026_v22 = vadd.f32 %v1554_v37, %v1490_v32  ;;  %v6067_v37 = vld [vmem:[%s7794_s3 + $0x138] sm:$0xff] }
 0x314   : > { %v6072_v32 = vld [vmem:[%s7794_s3 + $0x1b8] sm:$0xff] }
 0x315   : > { %8072 = vst [vmem:[#allocation19_spill] sm:$0xff] %v6026_v22 }
 0x316   : > { %1771 = vmatpush.xpose.msra.mxu0 %v6005_v48  ;;  %1836 = vmatpush.xpose.msra.mxu1 %v6010_v27  ;;  %2948 = vst [vmem:[%s5165_s27 + $0x58] sm:$0xff] %v6026_v22  ;;  %v6161_v22 = vld [vmem:[%s7794_s3 + $0x18] sm:$0xff] }
 0x317   : > { %1901 = vmatpush.xpose.msra.mxu2 %v6015_v61  ;;  %1966 = vmatpush.xpose.msra.mxu3 %v6020_v60 }
 0x318   : > { %v1492_v6 = vpop.f32.mrf.mxu2  ;;  %v1557_v9 = vpop.f32.mrf.mxu3 }
 0x319   : > { %v1493_v24 = vadd.f32 %v1492_v6, %v1428_v46  ;;  %v1365_v59 = vpop.f32.mrf.mxu0  ;;  %v1430_v4 = vpop.f32.mrf.mxu1  ;;  %v6088_v46 = vld [vmem:[%s7794_s3 + $0xb0] sm:$0xff] }
 0x31a   : > { %1772 = vmatpush.xpose.msra.mxu0 %v6031_v34  ;;  %1837 = vmatpush.xpose.msra.mxu1 %v6036_v40  ;;  %v6093_v6 = vld [vmem:[%s7794_s3 + $0x130] sm:$0xff] }
 0x31b   : > { %1902 = vmatpush.xpose.msra.mxu2 %v6041_v41  ;;  %1967 = vmatpush.xpose.msra.mxu3 %v6046_v42  ;;  %v6078_v55 = vadd.f32 %v1557_v9, %v1493_v24  ;;  %v6098_v24 = vld [vmem:[%s7794_s3 + $0x1b0] sm:$0xff]  ;;  %v1431_v9 = vadd.f32 %v1430_v4, %v1365_v59  ;;  %v6124_v59 = vld [vmem:[%s7794_s3 + $0x1a8] sm:$0xff] }
 0x31d   : > { %8073 = vst [vmem:[#allocation20_spill] sm:$0xff] %v6078_v55 }
 0x31e   : > { %1773 = vmatpush.xpose.msra.mxu0 %v6057_v54  ;;  %1838 = vmatpush.xpose.msra.mxu1 %v6062_v49  ;;  %2949 = vst [vmem:[%s5165_s27 + $0x60] sm:$0xff] %v6078_v55  ;;  %v6135_v55 = vld [vmem:[%s7794_s3 + $0x20] sm:$0xff] }
 0x31f   : > { %1903 = vmatpush.xpose.msra.mxu2 %v6067_v37  ;;  %1968 = vmatpush.xpose.msra.mxu3 %v6072_v32 }
 0x320   : > { %v1495_v4 = vpop.f32.mrf.mxu2  ;;  %v1560_v57 = vpop.f32.mrf.mxu3 }
 0x321   : > { %v1496_v35 = vadd.f32 %v1495_v4, %v1431_v9  ;;  %v1368_v31 = vpop.f32.mrf.mxu0  ;;  %v1433_v20 = vpop.f32.mrf.mxu1  ;;  %v6140_v9 = vld [vmem:[%s7794_s3 + $0xa0] sm:$0xff] }
 0x322   : > { %1774 = vmatpush.xpose.msra.mxu0 %v6083_v47  ;;  %1839 = vmatpush.xpose.msra.mxu1 %v6088_v46  ;;  %v6145_v4 = vld [vmem:[%s7794_s3 + $0x120] sm:$0xff] }
 0x323   : > { %1904 = vmatpush.xpose.msra.mxu2 %v6093_v6  ;;  %1969 = vmatpush.xpose.msra.mxu3 %v6098_v24  ;;  %v6130_v25 = vadd.f32 %v1560_v57, %v1496_v35  ;;  %v6150_v35 = vld [vmem:[%s7794_s3 + $0x1a0] sm:$0xff]  ;;  %v1434_v57 = vadd.f32 %v1433_v20, %v1368_v31  ;;  %v6176_v20 = vld [vmem:[%s7794_s3 + $0x198] sm:$0xff] }
 0x324   : > { %8077 = vst [vmem:[#allocation24_spill] sm:$0xff] %v6176_v20 }
 0x325   : > { %8074 = vst [vmem:[#allocation21_spill] sm:$0xff] %v6130_v25 }
 0x326   : > { %1775 = vmatpush.xpose.msra.mxu0 %v6109_v58  ;;  %1840 = vmatpush.xpose.msra.mxu1 %v6114_v51  ;;  %2950 = vst [vmem:[%s5165_s27 + $0x68] sm:$0xff] %v6130_v25  ;;  %v6171_v25 = vld [vmem:[%s7794_s3 + $0x118] sm:$0xff] }
 0x327   : > { %1905 = vmatpush.xpose.msra.mxu2 %v6119_v43  ;;  %1970 = vmatpush.xpose.msra.mxu3 %v6124_v59  ;;  %8076 = vst [vmem:[#allocation23_spill] sm:$0xff] %v6171_v25 }
 0x328   : > { %v1498_v31 = vpop.f32.mrf.mxu2  ;;  %v1563_v26 = vpop.f32.mrf.mxu3 }
 0x329   : > { %v1499_v18 = vadd.f32 %v1498_v31, %v1434_v57  ;;  %v1371_v57 = vpop.f32.mrf.mxu0  ;;  %v1436_v31 = vpop.f32.mrf.mxu1 }
 0x32a   : > { %1776 = vmatpush.xpose.msra.mxu0 %v6135_v55  ;;  %1841 = vmatpush.xpose.msra.mxu1 %v6140_v9 }
 0x32b   : > { %1906 = vmatpush.xpose.msra.mxu2 %v6145_v4  ;;  %1971 = vmatpush.xpose.msra.mxu3 %v6150_v35  ;;  %v6182_v38 = vadd.f32 %v1563_v26, %v1499_v18  ;;  %v6202_v18 = vld [vmem:[%s7794_s3 + $0x190] sm:$0xff]  ;;  %v1437_v26 = vadd.f32 %v1436_v31, %v1371_v57  ;;  %v6228_v57 = vld [vmem:[%s7794_s3 + $0x188] sm:$0xff] }
 0x32c   : > { %8082 = vst [vmem:[#allocation29_spill] sm:$0xff] %v6202_v18 }
 0x32d   : > { %8078 = vst [vmem:[#allocation25_spill] sm:$0xff] %v6182_v38 }
 0x32e   : > { %1777 = vmatpush.xpose.msra.mxu0 %v6161_v22  ;;  %1842 = vmatpush.xpose.msra.mxu1 %v6166_v39  ;;  %2951 = vst [vmem:[%s5165_s27 + $0x70] sm:$0xff] %v6182_v38  ;;  %v6218_v39 = vld [vmem:[%s7794_s3 + $0x88] sm:$0xff] }
 0x32f   : > { %1907 = vmatpush.xpose.msra.mxu2 %v6171_v25  ;;  %1972 = vmatpush.xpose.msra.mxu3 %v6176_v20  ;;  %v6197_v25 = vld [vmem:[%s7794_s3 + $0x110] sm:$0xff]  ;;  %v6213_v20 = vld [vmem:[%s7794_s3 + $0x8] sm:$0xff]  ;;  %8083 = vst [vmem:[#allocation30_spill] sm:$0xff] %v6228_v57 }
 0x330   : > { %8081 = vst [vmem:[#allocation28_spill] sm:$0xff] %v6197_v25  ;;  %v6223_v38 = vld [vmem:[%s7794_s3 + $0x108] sm:$0xff]  ;;  %v1501_v31 = vpop.f32.mrf.mxu2 }
 0x332   : > { %1778 = vmatpush.xpose.msra.mxu0 %v6187_v17  ;;  %1843 = vmatpush.xpose.msra.mxu1 %v6192_v62  ;;  %v6239_v17 = vld [vmem:[%s7794_s3] sm:$0xff] }
 0x333   : > { %1908 = vmatpush.xpose.msra.mxu2 %v6197_v25  ;;  %1973 = vmatpush.xpose.msra.mxu3 %v6202_v18  ;;  %v1502_v18 = vadd.f32 %v1501_v31, %v1437_v26  ;;  %v1566_v25 = vpop.f32.mrf.mxu3  ;;  %v6244_v26 = vld [vmem:[%s7794_s3 + $0x80] sm:$0xff] }
 0x334   : > { %v6249_v31 = vld [vmem:[%s7794_s3 + $0x100] sm:$0xff] }
 0x335   : > { %v6234_v62 = vadd.f32 %v1566_v25, %v1502_v18  ;;  %v6254_v25 = vld [vmem:[%s7794_s3 + $0x180] sm:$0xff] }
 0x336   : > { %1779 = vmatpush.xpose.msra.mxu0 %v6213_v20  ;;  %1844 = vmatpush.xpose.msra.mxu1 %v6218_v39  ;;  %v4049_v18 = vld [vmem:[%s4517_s17] sm:$0xff] }
 0x337   : > { %1909 = vmatpush.xpose.msra.mxu2 %v6223_v38  ;;  %1974 = vmatpush.xpose.msra.mxu3 %v6228_v57  ;;  %2952 = vst [vmem:[%s5165_s27 + $0x78] sm:$0xff] %v6234_v62  ;;  %v6262_v57 = vsub.f32 %v4049_v18, %v5167_v21  ;;  %v4050_v21 = vld [vmem:[%s4517_s17 + $0x8] sm:$0xff]  ;;  %v8100_v18 = vld [vmem:[#allocation21_spill] sm:$0xff] }
 0x33a   : > { %1780 = vmatpush.xpose.msra.mxu0 %v6239_v17  ;;  %1845 = vmatpush.xpose.msra.mxu1 %v6244_v26 }
 0x33b   : > { %1910 = vmatpush.xpose.msra.mxu2 %v6249_v31  ;;  %1975 = vmatpush.xpose.msra.mxu3 %v6254_v25 }
 0x33d   : > { %1781 = vmatmul.f32.vlgmr.msra.gmra.mxu0 %v6262_v57  ;;  %1846 = vmatmul.f32.vlgmr.msra.gmra.mxu1 %v6262_v57 }
 0x33e   : > { %2514 = vmatpush.msrb.mxu0 %v5829_v0  ;;  %2579 = vmatpush.msrb.mxu1 %v5834_v2  ;;  %v6282_v0 = vsub.f32 %v4050_v21, %v5171_v36  ;;  %v4051_v36 = vld [vmem:[%s4517_s17 + $0x10] sm:$0xff] }
 0x33f   : > { %1911 = vmatmul.f32.vlgmr.msra.gmra.mxu2 %v6262_v57  ;;  %1976 = vmatmul.f32.vlgmr.msra.gmra.mxu3 %v6262_v57  ;;  %v6302_v2 = vsub.f32 %v4051_v36, %v5175_v45  ;;  %v4052_v45 = vld [vmem:[%s4517_s17 + $0x18] sm:$0xff]  ;;  %v4063_v36 = vld [vmem:[%s4517_s17 + $0x70] sm:$0xff] }
 0x340   : > { %2644 = vmatpush.msrb.mxu2 %v5847_v10  ;;  %2709 = vmatpush.msrb.mxu3 %v5852_v16  ;;  %v6322_v10 = vsub.f32 %v4052_v45, %v5207_v56  ;;  %v4053_v56 = vld [vmem:[%s4517_s17 + $0x20] sm:$0xff]  ;;  %v8101_v45 = vld [vmem:[#allocation25_spill] sm:$0xff] }
 0x341   : > { %2515 = vmatpush.msrb.mxu0 %v5876_v44  ;;  %2580 = vmatpush.msrb.mxu1 %v5881_v29  ;;  %v6342_v16 = vsub.f32 %v4053_v56, %v5261_v7  ;;  %v8086_v7 = vld [vmem:[#allocation24_spill] sm:$0xff]  ;;  %v8090_v44 = vld [vmem:[#allocation29_spill] sm:$0xff]  ;;  %v4054_v29 = vld [vmem:[%s4517_s17 + $0x28] sm:$0xff]  ;;  %v6448_v56 = vsub.f32 %v4063_v36, %v8101_v45 }
 0x342   : > { %2645 = vmatpush.msrb.mxu2 %v5888_v8  ;;  %2710 = vmatpush.msrb.mxu3 %v5893_v14  ;;  %v8091_v8 = vld [vmem:[#allocation6_spill] sm:$0xff] }
 0x343   : > { %2516 = vmatpush.msrb.mxu0 %v5905_v1  ;;  %2581 = vmatpush.msrb.mxu1 %v5910_v53  ;;  %v6362_v14 = vsub.f32 %v4054_v29, %v8091_v8  ;;  %v8092_v1 = vld [vmem:[#allocation30_spill] sm:$0xff]  ;;  %v8093_v53 = vld [vmem:[#allocation7_spill] sm:$0xff] }
 0x344   : > { %2646 = vmatpush.msrb.mxu2 %v5915_v63  ;;  %2711 = vmatpush.msrb.mxu3 %v5920_v5  ;;  %v8094_v5 = vld [vmem:[#allocation8_spill] sm:$0xff] }
 0x345   : > { %2517 = vmatpush.msrb.mxu0 %v5929_v11  ;;  %2582 = vmatpush.msrb.mxu1 %v5934_v12  ;;  %v1602_v12 = vpop.f32.mrf.mxu0 }
 0x346   : > { %1784 = vmatmul.f32.gmra.mxu0 %v6282_v0  ;;  %1849 = vmatmul.f32.gmra.mxu1 %v6282_v0 }
 0x347   : > { %1914 = vmatmul.f32.gmra.mxu2 %v6282_v0  ;;  %1979 = vmatmul.f32.gmra.mxu3 %v6282_v0 }
 0x348   : > { %2647 = vmatpush.msrb.mxu2 %v5939_v13  ;;  %2712 = vmatpush.msrb.mxu3 %v5944_v15 }
 0x349   : > { %2518 = vmatpush.msrb.mxu0 %v5953_v23  ;;  %2583 = vmatpush.msrb.mxu1 %v5958_v28  ;;  %v1662_v28 = vpop.f32.mrf.mxu3 }
 0x34a   : > { %2648 = vmatpush.msrb.mxu2 %v5963_v30  ;;  %2713 = vmatpush.msrb.mxu3 %v5968_v33  ;;  %v4057_v30 = vld [vmem:[%s4517_s17 + $0x40] sm:$0xff]  ;;  %v8095_v33 = vld [vmem:[#allocation9_spill] sm:$0xff] }
 0x34b   : > { %2519 = vmatpush.msrb.mxu0 %v5979_v19  ;;  %2584 = vmatpush.msrb.mxu1 %v5984_v50  ;;  %v1642_v23 = vpop.f32.mrf.mxu2 }
 0x34c   : > { %2649 = vmatpush.msrb.mxu2 %v5989_v3  ;;  %2714 = vmatpush.msrb.mxu3 %v5994_v52 }
 0x34d   : > { %2520 = vmatpush.msrb.mxu0 %v6005_v48  ;;  %2585 = vmatpush.msrb.mxu1 %v6010_v27  ;;  %v4058_v27 = vld [vmem:[%s4517_s17 + $0x48] sm:$0xff] }
 0x34e   : > { %1787 = vmatmul.f32.gmra.mxu0 %v6302_v2  ;;  %1852 = vmatmul.f32.gmra.mxu1 %v6302_v2 }
 0x34f   : > { %1917 = vmatmul.f32.gmra.mxu2 %v6302_v2  ;;  %1982 = vmatmul.f32.gmra.mxu3 %v6302_v2 }
 0x350   : > { %2650 = vmatpush.msrb.mxu2 %v6015_v61  ;;  %2715 = vmatpush.msrb.mxu3 %v6020_v60  ;;  %v8096_v61 = vld [vmem:[#allocation10_spill] sm:$0xff] }
 0x351   : > { %2521 = vmatpush.msrb.mxu0 %v6031_v34  ;;  %2586 = vmatpush.msrb.mxu1 %v6036_v40  ;;  %v1622_v13 = vpop.f32.mrf.mxu1  ;;  %v6400_v60 = vsub.f32 %v4058_v27, %v8096_v61  ;;  %v8105_v27 = vld [vmem:[#allocation5_spill] sm:$0xff] }
 0x352   : > { %2651 = vmatpush.msrb.mxu2 %v6041_v41  ;;  %2716 = vmatpush.msrb.mxu3 %v6046_v42  ;;  %v1623_v15 = vadd.f32 %v1622_v13, %v1602_v12  ;;  %v8102_v13 = vld [vmem:[#allocation3_spill] sm:$0xff] }
 0x353   : > { %2522 = vmatpush.msrb.mxu0 %v6057_v54  ;;  %2587 = vmatpush.msrb.mxu1 %v6062_v49 }
 0x354   : > { %2652 = vmatpush.msrb.mxu2 %v6067_v37  ;;  %2717 = vmatpush.msrb.mxu3 %v6072_v32  ;;  %v1643_v19 = vadd.f32 %v1642_v23, %v1623_v15  ;;  %v4059_v32 = vld [vmem:[%s4517_s17 + $0x50] sm:$0xff]  ;;  %v8103_v15 = vld [vmem:[#allocation2_spill] sm:$0xff] }
 0x355   : > { %2523 = vmatpush.msrb.mxu0 %v6083_v47  ;;  %2588 = vmatpush.msrb.mxu1 %v6088_v46  ;;  %v8089_v47 = vld [vmem:[#allocation28_spill] sm:$0xff]  ;;  %v8097_v46 = vld [vmem:[#allocation18_spill] sm:$0xff] }
 0x356   : > { %1790 = vmatmul.f32.gmra.mxu0 %v6322_v10  ;;  %1855 = vmatmul.f32.gmra.mxu1 %v6322_v10  ;;  %v1663_v52 = vadd.f32 %v1662_v28, %v1643_v19 }
 0x357   : > { %1920 = vmatmul.f32.gmra.mxu2 %v6322_v10  ;;  %1985 = vmatmul.f32.gmra.mxu3 %v6322_v10 }
 0x358   : > { %2653 = vmatpush.msrb.mxu2 %v6093_v6  ;;  %2718 = vmatpush.msrb.mxu3 %v6098_v24  ;;  %v1745_v40 = vmul.f32 128.0, %v1663_v52  ;;  %v6412_v6 = vsub.f32 %v4059_v32, %v8097_v46 }
 0x359   : > { %2524 = vmatpush.msrb.mxu0 %v6109_v58  ;;  %2589 = vmatpush.msrb.mxu1 %v6114_v51  ;;  %v8084_v51 = vld [vmem:[#allocation22_spill] sm:$0xff]  ;;  %v8085_v58 = vld [vmem:[#allocation23_spill] sm:$0xff] }
 0x35a   : > { %2654 = vmatpush.msrb.mxu2 %v6119_v43  ;;  %2719 = vmatpush.msrb.mxu3 %v6124_v59  ;;  %v8087_v43 = vld [vmem:[#allocation26_spill] sm:$0xff] }
 0x35b   : > { %2525 = vmatpush.msrb.mxu0 %v6135_v55  ;;  %2590 = vmatpush.msrb.mxu1 %v6140_v9  ;;  %v8088_v55 = vld [vmem:[#allocation27_spill] sm:$0xff]  ;;  %v4060_v9 = vld [vmem:[%s4517_s17 + $0x58] sm:$0xff] }
 0x35c   : > { %2655 = vmatpush.msrb.mxu2 %v6145_v4  ;;  %2720 = vmatpush.msrb.mxu3 %v6150_v35  ;;  %v8098_v4 = vld [vmem:[#allocation19_spill] sm:$0xff] }
 0x35d   : > { %2526 = vmatpush.msrb.mxu0 %v6161_v22  ;;  %2591 = vmatpush.msrb.mxu1 %v8084_v51  ;;  %v6424_v35 = vsub.f32 %v4060_v9, %v8098_v4  ;;  %v4064_v51 = vld [vmem:[%s4517_s17 + $0x78] sm:$0xff] }
 0x35e   : > { %1793 = vmatmul.f32.gmra.mxu0 %v6342_v16  ;;  %1858 = vmatmul.f32.gmra.mxu1 %v6342_v16 }
 0x35f   : > { %1923 = vmatmul.f32.gmra.mxu2 %v6342_v16  ;;  %1988 = vmatmul.f32.gmra.mxu3 %v6342_v16 }
 0x360   : > { %2656 = vmatpush.msrb.mxu2 %v8085_v58  ;;  %2721 = vmatpush.msrb.mxu3 %v8086_v7  ;;  %v6456_v58 = vsub.f32 %v4064_v51, %v6234_v62  ;;  %v1764_v7 = vld [vmem:[%s7795_s4] sm:$0xf] }
 0x361   : > { %2527 = vmatpush.msrb.mxu0 %v8087_v43  ;;  %2592 = vmatpush.msrb.mxu1 %v8088_v55  ;;  %v6465_v43 = vperm.slane %v1764_v7, 0  ;;  %v6467_v55 = vperm.slane %v1764_v7, 1  ;;  %v6471_v8 = vperm.slane %v1764_v7, 2 }
 0x362   : > { %2657 = vmatpush.msrb.mxu2 %v8089_v47  ;;  %2722 = vmatpush.msrb.mxu3 %v8090_v44 }
 0x363   : > { %2528 = vmatpush.msrb.mxu0 %v6213_v20  ;;  %2593 = vmatpush.msrb.mxu1 %v6218_v39  ;;  %v6392_v39 = vsub.f32 %v4057_v30, %v8095_v33  ;;  %v4061_v20 = vld [vmem:[%s4517_s17 + $0x60] sm:$0xff] }
 0x364   : > { %2658 = vmatpush.msrb.mxu2 %v6223_v38  ;;  %2723 = vmatpush.msrb.mxu3 %v8092_v1  ;;  %v4055_v38 = vld [vmem:[%s4517_s17 + $0x30] sm:$0xff]  ;;  %v6473_v1 = vperm.slane %v1764_v7, 3 }
 0x365   : > { %2529 = vmatpush.msrb.mxu0 %v6239_v17  ;;  %2594 = vmatpush.msrb.mxu1 %v6244_v26  ;;  %v6376_v63 = vsub.f32 %v4055_v38, %v8093_v53  ;;  %v4056_v17 = vld [vmem:[%s4517_s17 + $0x38] sm:$0xff]  ;;  %v8099_v26 = vld [vmem:[#allocation20_spill] sm:$0xff] }
 0x366   : > { %1796 = vmatmul.f32.gmra.mxu0 %v6362_v14  ;;  %1861 = vmatmul.f32.gmra.mxu1 %v6362_v14  ;;  %v6384_v11 = vsub.f32 %v4056_v17, %v8094_v5 }
 0x367   : > { %1926 = vmatmul.f32.gmra.mxu2 %v6362_v14  ;;  %1991 = vmatmul.f32.gmra.mxu3 %v6362_v14 }
 0x368   : > { %2659 = vmatpush.msrb.mxu2 %v6249_v31  ;;  %2724 = vmatpush.msrb.mxu3 %v6254_v25  ;;  %v6432_v31 = vsub.f32 %v4061_v20, %v8099_v26  ;;  %v4062_v25 = vld [vmem:[%s4517_s17 + $0x68] sm:$0xff] }
 0x369   : > { %v6440_v21 = vsub.f32 %v4062_v25, %v8100_v18 }
 0x36e   : > { %1799 = vmatmul.f32.gmra.mxu0 %v6376_v63  ;;  %1864 = vmatmul.f32.gmra.mxu1 %v6376_v63 }
 0x36f   : > { %1929 = vmatmul.f32.gmra.mxu2 %v6376_v63  ;;  %1994 = vmatmul.f32.gmra.mxu3 %v6376_v63 }
 0x376   : > { %1802 = vmatmul.f32.gmra.mxu0 %v6384_v11  ;;  %1867 = vmatmul.f32.gmra.mxu1 %v6384_v11 }
 0x377   : > { %1932 = vmatmul.f32.gmra.mxu2 %v6384_v11  ;;  %1997 = vmatmul.f32.gmra.mxu3 %v6384_v11 }
 0x37a   : > { %v1682_v50 = vpop.f32.mrf.mxu0  ;;  %v1702_v3 = vpop.f32.mrf.mxu1 }
 0x37b   : > { %v1703_v48 = vadd.f32 %v1702_v3, %v1682_v50  ;;  %v8104_v3 = vld [vmem:[#allocation4_spill] sm:$0xff] }
 0x37e   : > { %1805 = vmatmul.f32.gmra.mxu0 %v6392_v39  ;;  %1870 = vmatmul.f32.gmra.mxu1 %v6392_v39 }
 0x37f   : > { %1935 = vmatmul.f32.gmra.mxu2 %v6392_v39  ;;  %2000 = vmatmul.f32.gmra.mxu3 %v6392_v39 }
 0x383   : > { %v1722_v22 = vpop.f32.mrf.mxu2  ;;  %v1742_v34 = vpop.f32.mrf.mxu3 }
 0x384   : > { %v1723_v41 = vadd.f32 %v1722_v22, %v1703_v48 }
 0x386   : > { %1808 = vmatmul.f32.gmra.mxu0 %v6400_v60  ;;  %1873 = vmatmul.f32.gmra.mxu1 %v6400_v60  ;;  %v1743_v42 = vadd.f32 %v1742_v34, %v1723_v41 }
 0x387   : > { %1938 = vmatmul.f32.gmra.mxu2 %v6400_v60  ;;  %2003 = vmatmul.f32.gmra.mxu3 %v6400_v60 }
 0x388   : > { %v1746_v54 = vadd.f32 %v1745_v40, %v1743_v42 }
 0x38a   : > { %vm3996_vm14 = vcmp.lt.s32.totalorder %v1746_v54, 0  ;;  %v3997_v49 = vceil.f32 %v1746_v54  ;;  %v3998_v37 = vfloor.f32 %v1746_v54 }
 0x38c   : > { %v3999_v24 = vsel %vm3996_vm14, %v3997_v49, %v3998_v37 }
 0x38d   : > { %v4000_v59 = vcvt.f32.s32 %v3999_v24 }
 0x38e   : > { %1811 = vmatmul.f32.gmra.mxu0 %v6412_v6  ;;  %1876 = vmatmul.f32.gmra.mxu1 %v6412_v6 }
 0x38f   : > { %1941 = vmatmul.f32.gmra.mxu2 %v6412_v6  ;;  %2006 = vmatmul.f32.gmra.mxu3 %v6412_v6  ;;  %2969 = vst [vmem:[%s399_s20] sm:$0x1] %v4000_v59 }
 0x396   : > { %1814 = vmatmul.f32.gmra.mxu0 %v6424_v35  ;;  %1879 = vmatmul.f32.gmra.mxu1 %v6424_v35 }
 0x397   : > { %1944 = vmatmul.f32.gmra.mxu2 %v6424_v35  ;;  %2009 = vmatmul.f32.gmra.mxu3 %v6424_v35 }
 0x39e   : > { %1817 = vmatmul.f32.gmra.mxu0 %v6432_v31  ;;  %1882 = vmatmul.f32.gmra.mxu1 %v6432_v31 }
 0x39f   : > { %1947 = vmatmul.f32.gmra.mxu2 %v6432_v31  ;;  %2012 = vmatmul.f32.gmra.mxu3 %v6432_v31 }
 0x3a6   : > { %1820 = vmatmul.f32.gmra.mxu0 %v6440_v21  ;;  %1885 = vmatmul.f32.gmra.mxu1 %v6440_v21 }
 0x3a7   : > { %1950 = vmatmul.f32.gmra.mxu2 %v6440_v21  ;;  %2015 = vmatmul.f32.gmra.mxu3 %v6440_v21 }
 0x3ae   : > { %1823 = vmatmul.f32.gmra.mxu0 %v6448_v56  ;;  %1888 = vmatmul.f32.gmra.mxu1 %v6448_v56 }
 0x3af   : > { %1953 = vmatmul.f32.gmra.mxu2 %v6448_v56  ;;  %2018 = vmatmul.f32.gmra.mxu3 %v6448_v56 }
 0x3b6   : > { %1826 = vmatmul.f32.gmra.mxu0 %v6456_v58  ;;  %1891 = vmatmul.f32.gmra.mxu1 %v6456_v58 }
 0x3b7   : > { %1956 = vmatmul.f32.gmra.mxu2 %v6456_v58  ;;  %2021 = vmatmul.f32.gmra.mxu3 %v6456_v58 }
 0x3ba   : > { %v1782_v47 = vpop.f32.mrf.mxu0  ;;  %v1847_v44 = vpop.f32.mrf.mxu1 }
 0x3bb   : > { %v2034_v62 = vsub.f32 %v1782_v47, %v6465_v43  ;;  %v2035_v29 = vsub.f32 %v1847_v44, %v6467_v55 }
 0x3bd   : > { %vm2098_vm15 = vcmp.ge.f32.partialorder %v2034_v62, %v2035_v29 }
 0x3be   : > { %v2100_v23 = vsel %vm2098_vm15, %v8103_v15, %v8102_v13  ;;  %v2099_v28 = vsel %vm2098_vm15, %v2034_v62, %v2035_v29 }
 0x3c2   : > { %v1912_v38 = vpop.f32.mrf.mxu2  ;;  %v1977_v53 = vpop.f32.mrf.mxu3 }
 0x3c3   : > { %v2036_v17 = vsub.f32 %v1912_v38, %v6471_v8  ;;  %v1785_v5 = vpop.f32.mrf.mxu0  ;;  %v1850_v12 = vpop.f32.mrf.mxu1  ;;  %v2037_v30 = vsub.f32 %v1977_v53, %v6473_v1 }
 0x3c4   : > { %v2038_v33 = vsub.f32 %v1785_v5, %v6465_v43  ;;  %v2039_v19 = vsub.f32 %v1850_v12, %v6467_v55 }
 0x3c5   : > { %vm2101_vm3 = vcmp.ge.f32.partialorder %v2099_v28, %v2036_v17 }
 0x3c6   : > { %v2102_v50 = vsel %vm2101_vm3, %v2099_v28, %v2036_v17  ;;  %v2103_v52 = vsel %vm2101_vm3, %v2100_v23, %v8104_v3  ;;  %vm2112_vm6 = vcmp.ge.f32.partialorder %v2038_v33, %v2039_v19 }
 0x3c7   : > { %vm2104_vm12 = vcmp.ge.f32.partialorder %v2102_v50, %v2037_v30  ;;  %v2114_v54 = vsel %vm2112_vm6, %v8103_v15, %v8102_v13  ;;  %v2113_v49 = vsel %vm2112_vm6, %v2038_v33, %v2039_v19 }
 0x3c8   : > { %v2105_v48 = vsel %vm2104_vm12, %v2102_v50, %v2037_v30  ;;  %v6483_v61 = vsel %vm2104_vm12, %v2103_v52, %v8105_v27 }
 0x3c9   : > { %2107 = vmax.index.xlane.f32.xlu2 %v2105_v48 }
 0x3ca   : > { %v1915_v22 = vpop.f32.mrf.mxu2  ;;  %v1980_v34 = vpop.f32.mrf.mxu3 }
 0x3cb   : > { %v2040_v40 = vsub.f32 %v1915_v22, %v6471_v8  ;;  %v1788_v41 = vpop.f32.mrf.mxu0  ;;  %v1853_v42 = vpop.f32.mrf.mxu1  ;;  %v2041_v37 = vsub.f32 %v1980_v34, %v6473_v1 }
 0x3cc   : > { %v2042_v32 = vsub.f32 %v1788_v41, %v6465_v43  ;;  %v2043_v46 = vsub.f32 %v1853_v42, %v6467_v55 }
 0x3cd   : > { %vm2115_vm7 = vcmp.ge.f32.partialorder %v2113_v49, %v2040_v40 }
 0x3ce   : > { %v2116_v24 = vsel %vm2115_vm7, %v2113_v49, %v2040_v40  ;;  %v2117_v59 = vsel %vm2115_vm7, %v2114_v54, %v8104_v3  ;;  %vm2126_vm0 = vcmp.ge.f32.partialorder %v2042_v32, %v2043_v46 }
 0x3cf   : > { %vm2118_vm4 = vcmp.ge.f32.partialorder %v2116_v24, %v2041_v37  ;;  %v2128_v45 = vsel %vm2126_vm0, %v8103_v15, %v8102_v13  ;;  %v2127_v51 = vsel %vm2126_vm0, %v2042_v32, %v2043_v46 }
 0x3d0   : > { %v2119_v9 = vsel %vm2118_vm4, %v2116_v24, %v2041_v37  ;;  %v6493_v4 = vsel %vm2118_vm4, %v2117_v59, %v8105_v27 }
 0x3d1   : > { %2121 = vmax.index.xlane.f32.xlu0 %v2119_v9 }
 0x3d2   : > { %v1918_v20 = vpop.f32.mrf.mxu2  ;;  %v1983_v26 = vpop.f32.mrf.mxu3 }
 0x3d3   : > { %v2044_v25 = vsub.f32 %v1918_v20, %v6471_v8  ;;  %v1791_v18 = vpop.f32.mrf.mxu0  ;;  %v1856_v36 = vpop.f32.mrf.mxu1  ;;  %v2045_v7 = vsub.f32 %v1983_v26, %v6473_v1 }
 0x3d4   : > { %v2046_v47 = vsub.f32 %v1791_v18, %v6465_v43  ;;  %v2047_v44 = vsub.f32 %v1856_v36, %v6467_v55 }
 0x3d5   : > { %vm2129_vm1 = vcmp.ge.f32.partialorder %v2127_v51, %v2044_v25 }
 0x3d6   : > { %v2130_v62 = vsel %vm2129_vm1, %v2127_v51, %v2044_v25  ;;  %v2131_v29 = vsel %vm2129_vm1, %v2128_v45, %v8104_v3  ;;  %vm2140_vm5 = vcmp.ge.f32.partialorder %v2046_v47, %v2047_v44 }
 0x3d7   : > { %vm2132_vm2 = vcmp.ge.f32.partialorder %v2130_v62, %v2045_v7  ;;  %v2142_v30 = vsel %vm2140_vm5, %v8103_v15, %v8102_v13  ;;  %v2141_v33 = vsel %vm2140_vm5, %v2046_v47, %v2047_v44 }
 0x3d8   : > { %v2133_v38 = vsel %vm2132_vm2, %v2130_v62, %v2045_v7  ;;  %v6503_v53 = vsel %vm2132_vm2, %v2131_v29, %v8105_v27 }
 0x3d9   : > { %2135 = vmax.index.xlane.f32.xlu1 %v2133_v38 }
 0x3da   : > { %v1921_v17 = vpop.f32.mrf.mxu2  ;;  %v1986_v5 = vpop.f32.mrf.mxu3 }
 0x3db   : > { %v2048_v12 = vsub.f32 %v1921_v17, %v6471_v8  ;;  %v1794_v23 = vpop.f32.mrf.mxu0  ;;  %v1859_v28 = vpop.f32.mrf.mxu1  ;;  %v2049_v19 = vsub.f32 %v1986_v5, %v6473_v1 }
 0x3dc   : > { %v2050_v50 = vsub.f32 %v1794_v23, %v6465_v43  ;;  %v2051_v52 = vsub.f32 %v1859_v28, %v6467_v55 }
 0x3dd   : > { %vm2143_vm8 = vcmp.ge.f32.partialorder %v2141_v33, %v2048_v12 }
 0x3de   : > { %v2144_v48 = vsel %vm2143_vm8, %v2141_v33, %v2048_v12  ;;  %v2145_v22 = vsel %vm2143_vm8, %v2142_v30, %v8104_v3  ;;  %vm2154_vm10 = vcmp.ge.f32.partialorder %v2050_v50, %v2051_v52 }
 0x3df   : > { %vm2146_vm9 = vcmp.ge.f32.partialorder %v2144_v48, %v2049_v19  ;;  %v2156_v32 = vsel %vm2154_vm10, %v8103_v15, %v8102_v13  ;;  %v2155_v46 = vsel %vm2154_vm10, %v2050_v50, %v2051_v52 }
 0x3e0   : > { %v2147_v34 = vsel %vm2146_vm9, %v2144_v48, %v2049_v19  ;;  %v6513_v40 = vsel %vm2146_vm9, %v2145_v22, %v8105_v27 }
 0x3e1   : > { %2149 = vmax.index.xlane.f32.xlu0 %v2147_v34 }
 0x3e2   : > { %v1924_v41 = vpop.f32.mrf.mxu2  ;;  %v1989_v42 = vpop.f32.mrf.mxu3 }
 0x3e3   : > { %v2052_v54 = vsub.f32 %v1924_v41, %v6471_v8  ;;  %v1797_v49 = vpop.f32.mrf.mxu0  ;;  %v1862_v37 = vpop.f32.mrf.mxu1  ;;  %v2053_v24 = vsub.f32 %v1989_v42, %v6473_v1 }
 0x3e4   : > { %v2054_v59 = vsub.f32 %v1797_v49, %v6465_v43  ;;  %v2055_v9 = vsub.f32 %v1862_v37, %v6467_v55 }
 0x3e5   : > { %vm2157_vm11 = vcmp.ge.f32.partialorder %v2155_v46, %v2052_v54 }
 0x3e6   : > { %v2158_v20 = vsel %vm2157_vm11, %v2155_v46, %v2052_v54  ;;  %v2159_v26 = vsel %vm2157_vm11, %v2156_v32, %v8104_v3  ;;  %vm2168_vm14 = vcmp.ge.f32.partialorder %v2054_v59, %v2055_v9 }
 0x3e7   : > { %vm2160_vm13 = vcmp.ge.f32.partialorder %v2158_v20, %v2053_v24  ;;  %v2170_v44 = vsel %vm2168_vm14, %v8103_v15, %v8102_v13  ;;  %v2169_v62 = vsel %vm2168_vm14, %v2054_v59, %v2055_v9 }
 0x3e8   : > { %v2161_v25 = vsel %vm2160_vm13, %v2158_v20, %v2053_v24  ;;  %v6523_v18 = vsel %vm2160_vm13, %v2159_v26, %v8105_v27 }
 0x3e9   : > { %2163 = vmax.index.xlane.f32.xlu1 %v2161_v25 }
 0x3ea   : > { %v1927_v36 = vpop.f32.mrf.mxu2  ;;  %v1992_v45 = vpop.f32.mrf.mxu3 }
 0x3eb   : > { %v2056_v51 = vsub.f32 %v1927_v36, %v6471_v8  ;;  %v1800_v7 = vpop.f32.mrf.mxu0  ;;  %v1865_v47 = vpop.f32.mrf.mxu1  ;;  %v2057_v29 = vsub.f32 %v1992_v45, %v6473_v1 }
 0x3ec   : > { %v2058_v38 = vsub.f32 %v1800_v7, %v6465_v43  ;;  %v2059_v17 = vsub.f32 %v1865_v47, %v6467_v55 }
 0x3ed   : > { %vm2171_vm15 = vcmp.ge.f32.partialorder %v2169_v62, %v2056_v51 }
 0x3ee   : > { %v2172_v5 = vsel %vm2171_vm15, %v2169_v62, %v2056_v51  ;;  %v2173_v12 = vsel %vm2171_vm15, %v2170_v44, %v8104_v3  ;;  %vm2182_vm12 = vcmp.ge.f32.partialorder %v2058_v38, %v2059_v17 }
 0x3ef   : > { %vm2174_vm3 = vcmp.ge.f32.partialorder %v2172_v5, %v2057_v29  ;;  %v2184_v48 = vsel %vm2182_vm12, %v8103_v15, %v8102_v13  ;;  %v2183_v22 = vsel %vm2182_vm12, %v2058_v38, %v2059_v17 }
 0x3f0   : > { %v2175_v23 = vsel %vm2174_vm3, %v2172_v5, %v2057_v29  ;;  %v6533_v28 = vsel %vm2174_vm3, %v2173_v12, %v8105_v27 }
 0x3f1   : > { %2177 = vmax.index.xlane.f32.xlu2 %v2175_v23 }
 0x3f2   : > { %v1930_v30 = vpop.f32.mrf.mxu2  ;;  %v1995_v33 = vpop.f32.mrf.mxu3 }
 0x3f3   : > { %v2060_v19 = vsub.f32 %v1930_v30, %v6471_v8  ;;  %v1803_v50 = vpop.f32.mrf.mxu0  ;;  %v1868_v52 = vpop.f32.mrf.mxu1  ;;  %v2061_v34 = vsub.f32 %v1995_v33, %v6473_v1 }
 0x3f4   : > { %v2062_v41 = vsub.f32 %v1803_v50, %v6465_v43  ;;  %v2063_v42 = vsub.f32 %v1868_v52, %v6467_v55 }
 0x3f5   : > { %vm2185_vm6 = vcmp.ge.f32.partialorder %v2183_v22, %v2060_v19 }
 0x3f6   : > { %v2186_v54 = vsel %vm2185_vm6, %v2183_v22, %v2060_v19  ;;  %v2187_v49 = vsel %vm2185_vm6, %v2184_v48, %v8104_v3  ;;  %vm2196_vm4 = vcmp.ge.f32.partialorder %v2062_v41, %v2063_v42 }
 0x3f7   : > { %vm2188_vm7 = vcmp.ge.f32.partialorder %v2186_v54, %v2061_v34  ;;  %v2198_v26 = vsel %vm2196_vm4, %v8103_v15, %v8102_v13  ;;  %v2197_v25 = vsel %vm2196_vm4, %v2062_v41, %v2063_v42 }
 0x3f8   : > { %v2189_v37 = vsel %vm2188_vm7, %v2186_v54, %v2061_v34  ;;  %v6543_v32 = vsel %vm2188_vm7, %v2187_v49, %v8105_v27 }
 0x3f9   : > { %2191 = vmax.index.xlane.f32.xlu1 %v2189_v37 }
 0x3fa   : > { %v1933_v46 = vpop.f32.mrf.mxu2  ;;  %v1998_v24 = vpop.f32.mrf.mxu3 }
 0x3fb   : > { %v2064_v59 = vsub.f32 %v1933_v46, %v6471_v8  ;;  %v1806_v9 = vpop.f32.mrf.mxu0  ;;  %v1871_v20 = vpop.f32.mrf.mxu1  ;;  %v2065_v36 = vsub.f32 %v1998_v24, %v6473_v1 }
 0x3fc   : > { %v2066_v45 = vsub.f32 %v1806_v9, %v6465_v43  ;;  %v2067_v51 = vsub.f32 %v1871_v20, %v6467_v55 }
 0x3fd   : > { %vm2199_vm0 = vcmp.ge.f32.partialorder %v2197_v25, %v2064_v59 }
 0x3fe   : > { %v2200_v7 = vsel %vm2199_vm0, %v2197_v25, %v2064_v59  ;;  %v2201_v47 = vsel %vm2199_vm0, %v2198_v26, %v8104_v3  ;;  %vm2210_vm2 = vcmp.ge.f32.partialorder %v2066_v45, %v2067_v51 }
 0x3ff   : > { %vm2202_vm1 = vcmp.ge.f32.partialorder %v2200_v7, %v2065_v36  ;;  %v2212_v23 = vsel %vm2210_vm2, %v8103_v15, %v8102_v13  ;;  %v2211_v30 = vsel %vm2210_vm2, %v2066_v45, %v2067_v51 }
 0x400   : > { %v2203_v44 = vsel %vm2202_vm1, %v2200_v7, %v2065_v36  ;;  %v6553_v62 = vsel %vm2202_vm1, %v2201_v47, %v8105_v27 }
 0x401   : > { %2205 = vmax.index.xlane.f32.xlu0 %v2203_v44 }
 0x402   : > { %v1936_v29 = vpop.f32.mrf.mxu2  ;;  %v2001_v38 = vpop.f32.mrf.mxu3 }
 0x403   : > { %v2068_v17 = vsub.f32 %v1936_v29, %v6471_v8  ;;  %v1809_v5 = vpop.f32.mrf.mxu0  ;;  %v1874_v12 = vpop.f32.mrf.mxu1  ;;  %v2069_v33 = vsub.f32 %v2001_v38, %v6473_v1 }
 0x404   : > { %v2070_v19 = vsub.f32 %v1809_v5, %v6465_v43  ;;  %v2071_v50 = vsub.f32 %v1874_v12, %v6467_v55 }
 0x405   : > { %vm2213_vm5 = vcmp.ge.f32.partialorder %v2211_v30, %v2068_v17 }
 0x406   : > { %v2214_v52 = vsel %vm2213_vm5, %v2211_v30, %v2068_v17  ;;  %v2215_v48 = vsel %vm2213_vm5, %v2212_v23, %v8104_v3  ;;  %vm2224_vm9 = vcmp.ge.f32.partialorder %v2070_v19, %v2071_v50 }
 0x407   : > { %vm2216_vm8 = vcmp.ge.f32.partialorder %v2214_v52, %v2069_v33  ;;  %v2226_v46 = vsel %vm2224_vm9, %v8103_v15, %v8102_v13  ;;  %v2225_v24 = vsel %vm2224_vm9, %v2070_v19, %v2071_v50 }
 0x408   : > { %v2217_v22 = vsel %vm2216_vm8, %v2214_v52, %v2069_v33  ;;  %v6563_v34 = vsel %vm2216_vm8, %v2215_v48, %v8105_v27 }
 0x409   : > { %2219 = vmax.index.xlane.f32.xlu2 %v2217_v22 }
 0x40a   : > { %v1939_v41 = vpop.f32.mrf.mxu2  ;;  %v2004_v42 = vpop.f32.mrf.mxu3 }
 0x40b   : > { %v2072_v54 = vsub.f32 %v1939_v41, %v6471_v8  ;;  %v1812_v49 = vpop.f32.mrf.mxu0  ;;  %v1877_v37 = vpop.f32.mrf.mxu1  ;;  %v2073_v59 = vsub.f32 %v2004_v42, %v6473_v1 }
 0x40c   : > { %v2074_v9 = vsub.f32 %v1812_v49, %v6465_v43  ;;  %v2075_v20 = vsub.f32 %v1877_v37, %v6467_v55 }
 0x40d   : > { %vm2227_vm10 = vcmp.ge.f32.partialorder %v2225_v24, %v2072_v54 }
 0x40e   : > { %v2228_v26 = vsel %vm2227_vm10, %v2225_v24, %v2072_v54  ;;  %v2229_v25 = vsel %vm2227_vm10, %v2226_v46, %v8104_v3  ;;  %vm2238_vm13 = vcmp.ge.f32.partialorder %v2074_v9, %v2075_v20 }
 0x40f   : > { %vm2230_vm11 = vcmp.ge.f32.partialorder %v2228_v26, %v2073_v59  ;;  %v2240_v38 = vsel %vm2238_vm13, %v8103_v15, %v8102_v13  ;;  %v2239_v17 = vsel %vm2238_vm13, %v2074_v9, %v2075_v20 }
 0x410   : > { %v2231_v36 = vsel %vm2230_vm11, %v2228_v26, %v2073_v59  ;;  %v6573_v45 = vsel %vm2230_vm11, %v2229_v25, %v8105_v27 }
 0x411   : > { %2233 = vmax.index.xlane.f32.xlu2 %v2231_v36 }
 0x412   : > { %v1942_v51 = vpop.f32.mrf.mxu2  ;;  %v2007_v7 = vpop.f32.mrf.mxu3 }
 0x413   : > { %v2076_v47 = vsub.f32 %v1942_v51, %v6471_v8  ;;  %v1815_v44 = vpop.f32.mrf.mxu0  ;;  %v1880_v29 = vpop.f32.mrf.mxu1  ;;  %v2077_v5 = vsub.f32 %v2007_v7, %v6473_v1 }
 0x414   : > { %v2078_v12 = vsub.f32 %v1815_v44, %v6465_v43  ;;  %v2079_v23 = vsub.f32 %v1880_v29, %v6467_v55 }
 0x415   : > { %vm2241_vm14 = vcmp.ge.f32.partialorder %v2239_v17, %v2076_v47 }
 0x416   : > { %v2242_v30 = vsel %vm2241_vm14, %v2239_v17, %v2076_v47  ;;  %v2243_v33 = vsel %vm2241_vm14, %v2240_v38, %v8104_v3  ;;  %vm2252_vm3 = vcmp.ge.f32.partialorder %v2078_v12, %v2079_v23 }
 0x417   : > { %vm2244_vm15 = vcmp.ge.f32.partialorder %v2242_v30, %v2077_v5  ;;  %v2254_v54 = vsel %vm2252_vm3, %v8103_v15, %v8102_v13  ;;  %v2253_v49 = vsel %vm2252_vm3, %v2078_v12, %v2079_v23 }
 0x418   : > { %v2245_v19 = vsel %vm2244_vm15, %v2242_v30, %v2077_v5  ;;  %v6583_v50 = vsel %vm2244_vm15, %v2243_v33, %v8105_v27 }
 0x419   : > { %2247 = vmax.index.xlane.f32.xlu2 %v2245_v19 }
 0x41a   : > { %v1945_v52 = vpop.f32.mrf.mxu2  ;;  %v2010_v48 = vpop.f32.mrf.mxu3 }
 0x41b   : > { %v2080_v22 = vsub.f32 %v1945_v52, %v6471_v8  ;;  %v1818_v41 = vpop.f32.mrf.mxu0  ;;  %v1883_v42 = vpop.f32.mrf.mxu1  ;;  %v2081_v37 = vsub.f32 %v2010_v48, %v6473_v1 }
 0x41c   : > { %v2082_v46 = vsub.f32 %v1818_v41, %v6465_v43  ;;  %v2083_v24 = vsub.f32 %v1883_v42, %v6467_v55 }
 0x41d   : > { %vm2255_vm12 = vcmp.ge.f32.partialorder %v2253_v49, %v2080_v22 }
 0x41e   : > { %v2256_v59 = vsel %vm2255_vm12, %v2253_v49, %v2080_v22  ;;  %v2257_v9 = vsel %vm2255_vm12, %v2254_v54, %v8104_v3  ;;  %vm2266_vm7 = vcmp.ge.f32.partialorder %v2082_v46, %v2083_v24 }
 0x41f   : > { %vm2258_vm6 = vcmp.ge.f32.partialorder %v2256_v59, %v2081_v37  ;;  %v2268_v44 = vsel %vm2266_vm7, %v8103_v15, %v8102_v13  ;;  %v2267_v29 = vsel %vm2266_vm7, %v2082_v46, %v2083_v24 }
 0x420   : > { %v2259_v20 = vsel %vm2258_vm6, %v2256_v59, %v2081_v37  ;;  %v6593_v26 = vsel %vm2258_vm6, %v2257_v9, %v8105_v27 }
 0x421   : > { %2261 = vmax.index.xlane.f32.xlu1 %v2259_v20 }
 0x422   : > { %v1948_v25 = vpop.f32.mrf.mxu2  ;;  %v2013_v36 = vpop.f32.mrf.mxu3 }
 0x423   : > { %v2084_v51 = vsub.f32 %v1948_v25, %v6471_v8  ;;  %v1821_v7 = vpop.f32.mrf.mxu0  ;;  %v1886_v47 = vpop.f32.mrf.mxu1  ;;  %v6599_v38 = vsub.f32 %v2013_v36, %v6473_v1 }
 0x424   : > { %v2086_v17 = vsub.f32 %v1821_v7, %v6465_v43  ;;  %v2087_v5 = vsub.f32 %v1886_v47, %v6467_v55 }
 0x425   : > { %vm2269_vm4 = vcmp.ge.f32.partialorder %v2267_v29, %v2084_v51 }
 0x426   : > { %v6603_v12 = vsel %vm2269_vm4, %v2267_v29, %v2084_v51  ;;  %v2271_v23 = vsel %vm2269_vm4, %v2268_v44, %v8104_v3  ;;  %vm2280_vm1 = vcmp.ge.f32.partialorder %v2086_v17, %v2087_v5 }
 0x427   : > { %vm2272_vm0 = vcmp.ge.f32.partialorder %v6603_v12, %v6599_v38  ;;  %v2282_v41 = vsel %vm2280_vm1, %v8103_v15, %v8102_v13  ;;  %v2281_v42 = vsel %vm2280_vm1, %v2086_v17, %v2087_v5 }
 0x428   : > { %v6612_v30 = vsel %vm2272_vm0, %v2271_v23, %v8105_v27 }
 0x42a   : > { %v1951_v33 = vpop.f32.mrf.mxu2  ;;  %v2016_v19 = vpop.f32.mrf.mxu3 }
 0x42b   : > { %v2088_v52 = vsub.f32 %v1951_v33, %v6471_v8  ;;  %v1824_v48 = vpop.f32.mrf.mxu0  ;;  %v1889_v22 = vpop.f32.mrf.mxu1  ;;  %v2089_v54 = vsub.f32 %v2016_v19, %v6473_v1 }
 0x42c   : > { %v2090_v49 = vsub.f32 %v1824_v48, %v6465_v43  ;;  %v2091_v37 = vsub.f32 %v1889_v22, %v6467_v55 }
 0x42d   : > { %vm2283_vm2 = vcmp.ge.f32.partialorder %v2281_v42, %v2088_v52 }
 0x42e   : > { %v2284_v46 = vsel %vm2283_vm2, %v2281_v42, %v2088_v52  ;;  %v2285_v24 = vsel %vm2283_vm2, %v2282_v41, %v8104_v3  ;;  %vm2294_vm8 = vcmp.ge.f32.partialorder %v2090_v49, %v2091_v37 }
 0x42f   : > { %vm2286_vm5 = vcmp.ge.f32.partialorder %v2284_v46, %v2089_v54  ;;  %v2296_v7 = vsel %vm2294_vm8, %v8103_v15, %v8102_v13  ;;  %v2295_v47 = vsel %vm2294_vm8, %v2090_v49, %v2091_v37 }
 0x430   : > { %v6623_v59 = vsel %vm2286_vm5, %v2285_v24, %v8105_v27 }
 0x432   : > { %v1954_v9 = vpop.f32.mrf.mxu2  ;;  %v2019_v20 = vpop.f32.mrf.mxu3 }
 0x433   : > { %v2092_v25 = vsub.f32 %v1954_v9, %v6471_v8  ;;  %v1827_v36 = vpop.f32.mrf.mxu0  ;;  %v1892_v51 = vpop.f32.mrf.mxu1  ;;  %v2093_v44 = vsub.f32 %v2019_v20, %v6473_v1 }
 0x434   : > { %v2094_v29 = vsub.f32 %v1827_v36, %v6465_v43  ;;  %v2095_v17 = vsub.f32 %v1892_v51, %v6467_v55 }
 0x435   : > { %vm2297_vm9 = vcmp.ge.f32.partialorder %v2295_v47, %v2092_v25 }
 0x436   : > { %v2298_v5 = vsel %vm2297_vm9, %v2295_v47, %v2092_v25  ;;  %v2299_v23 = vsel %vm2297_vm9, %v2296_v7, %v8104_v3  ;;  %vm2308_vm11 = vcmp.ge.f32.partialorder %v2094_v29, %v2095_v17 }
 0x437   : > { %vm2300_vm10 = vcmp.ge.f32.partialorder %v2298_v5, %v2093_v44  ;;  %v2309_v22 = vsel %vm2308_vm11, %v2094_v29, %v2095_v17  ;;  %v2310_v43 = vsel %vm2308_vm11, %v8103_v15, %v8102_v13 }
 0x438   : > { %v6634_v33 = vsel %vm2300_vm10, %v2299_v23, %v8105_v27 }
 0x43a   : > { %v1957_v19 = vpop.f32.mrf.mxu2  ;;  %v2022_v52 = vpop.f32.mrf.mxu3 }
 0x43b   : > { %v2096_v48 = vsub.f32 %v1957_v19, %v6471_v8  ;;  %v6640_v55 = vsub.f32 %v2022_v52, %v6473_v1 }
 0x43c   : > { %v2108_v41 = vpop.xlane.xlu2 %2107 }
 0x43d   : > { %vm2311_vm13 = vcmp.ge.f32.partialorder %v2309_v22, %v2096_v48  ;;  %4032 = vset.pattern.permute.xlu1 %v2108_v41 }
 0x43e   : > { %v6642_v42 = vsel %vm2311_vm13, %v2309_v22, %v2096_v48  ;;  %v2313_v49 = vsel %vm2311_vm13, %v2310_v43, %v8104_v3 }
 0x43f   : > { %vm2314_vm14 = vcmp.ge.f32.partialorder %v6642_v42, %v6640_v55 }
 0x440   : > { %v6651_v8 = vsel %vm2314_vm14, %v2313_v49, %v8105_v27 }
 0x444   : > { %v2122_v37 = vpop.xlane.xlu0 %2121 }
 0x445   : > { %2110 = vperm.xlu1 %4032, %v6483_v61  }
 0x44c   : > { %v2136_v24 = vpop.xlane.xlu1 %2135 }
 0x44d   : > { %4034 = vset.pattern.permute.xlu2 %v2136_v24  ;;  %4033 = vset.pattern.permute.xlu1 %v2122_v37 }
 0x454   : > { %v2150_v1 = vpop.xlane.xlu0 %2149 }
 0x455   : > { %4035 = vset.pattern.permute.xlu0 %v2150_v1  ;;  %2138 = vperm.xlu2 %4034, %v6503_v53   ;;  %v2273_v53 = vsel %vm2272_vm0, %v6603_v12, %v6599_v38 }
 0x456   : > { %2124 = vperm.xlu1 %4033, %v6493_v4  }
 0x45c   : > { %v2164_v9 = vpop.xlane.xlu1 %2163 }
 0x45d   : > { %2152 = vperm.xlu0 %4035, %v6513_v40   ;;  %v2287_v40 = vsel %vm2286_vm5, %v2284_v46, %v2089_v54 }
 0x45e   : > { %4036 = vset.pattern.permute.xlu1 %v2164_v9 }
 0x464   : > { %v2178_v20 = vpop.xlane.xlu2 %2177 }
 0x465   : > { %4037 = vset.pattern.permute.xlu2 %v2178_v20 }
 0x46c   : > { %v2192_v25 = vpop.xlane.xlu1 %2191 }
 0x46d   : > { %4038 = vset.pattern.permute.xlu0 %v2192_v25  ;;  %2180 = vperm.xlu2 %4037, %v6533_v28   ;;  %v2301_v28 = vsel %vm2300_vm10, %v2298_v5, %v2093_v44 }
 0x475   : > { %2194 = vperm.xlu0 %4038, %v6543_v32   ;;  %v2206_v32 = vpop.xlane.xlu0 %2205 }
 0x47c   : > { %v2220_v61 = vpop.xlane.xlu2 %2219 }
 0x480   : > { %2275 = vmax.index.xlane.f32.xlu1 %v2273_v53 }
 0x484   : > { %v2234_v4 = vpop.xlane.xlu2 %2233 }
 0x48c   : > { %v2248_v36 = vpop.xlane.xlu2 %2247 }
 0x48d   : > { %4042 = vset.pattern.permute.xlu2 %v2248_v36 }
 0x494   : > { %v2262_v51 = vpop.xlane.xlu1 %2261 }
 0x496   : > { %2289 = vmax.index.xlane.f32.xlu2 %v2287_v40 }
 0x499   : > { %2166 = vperm.xlu1 %4036, %v6523_v18   ;;  %v8106_v18 = vmov 1.0  }
 0x49f   : > { %2303 = vmax.index.xlane.f32.xlu0 %v2301_v28 }
 0x4a1   : > { %4039 = vset.pattern.permute.xlu1 %v2206_v32 }
 0x4a9   : > { %2208 = vperm.xlu1 %4039, %v6553_v62  }
 0x4ae   : > { %2250 = vperm.xlu2 %4042, %v6583_v50   ;;  %v2315_v50 = vsel %vm2314_vm14, %v6642_v42, %v6640_v55 }
 0x4b1   : > { %4040 = vset.pattern.permute.xlu1 %v2220_v61 }
 0x4b6   : > { %4043 = vset.pattern.permute.xlu2 %v2262_v51 }
 0x4b7   : > { %v6669_v38 = vpop.permute.xlu1 %2110 }
 0x4b8   : > { %vm7896_vm15 = vcmp.eq.s32.totalorder %v8103_v15, %v6669_v38  ;;  %vm7895_vm3 = vcmp.eq.s32.totalorder %v8102_v13, %v6669_v38  ;;  %vm7894_vm12 = vcmp.eq.s32.totalorder %v8104_v3, %v6669_v38  ;;  %vm7893_vm6 = vcmp.eq.s32.totalorder %v8105_v27, %v6669_v38 }
 0x4b9   : > { %2222 = vperm.xlu1 %4040, %v6563_v34   ;;  %3802 = vmatmul.msk.f32.vlgmr.msrb.gmra.mxu0 %vm7896_vm15, %v8106_v18  ;;  %v6724_v34 = vpop.permute.xlu2 %2138 }
 0x4ba   : > { %3818 = vmatmul.msk.f32.vlgmr.msrb.gmra.mxu1 %vm7895_vm3, %v8106_v18  ;;  %3834 = vmatmul.msk.f32.vlgmr.msrb.gmra.mxu2 %vm7894_vm12, %v8106_v18  ;;  %vm7904_vm2 = vcmp.eq.s32.totalorder %v8103_v15, %v6724_v34  ;;  %vm7903_vm5 = vcmp.eq.s32.totalorder %v8102_v13, %v6724_v34  ;;  %vm7902_vm8 = vcmp.eq.s32.totalorder %v8104_v3, %v6724_v34 }
 0x4bb   : > { %3850 = vmatmul.msk.f32.vlgmr.msrb.gmra.mxu3 %vm7893_vm6, %v8106_v18  ;;  %vm7901_vm9 = vcmp.eq.s32.totalorder %v8105_v27, %v6724_v34 }
 0x4be   : > { %2264 = vperm.xlu2 %4043, %v6593_v26  }
 0x4c1   : > { %4041 = vset.pattern.permute.xlu1 %v2234_v4 }
 0x4c7   : > { %v6782_v12 = vpop.permute.xlu2 %2180 }
 0x4c8   : > { %v6697_v62 = vpop.permute.xlu1 %2124 }
 0x4c9   : > { %2236 = vperm.xlu1 %4041, %v6573_v45   ;;  %vm7900_vm7 = vcmp.eq.s32.totalorder %v8103_v15, %v6697_v62  ;;  %vm7899_vm4 = vcmp.eq.s32.totalorder %v8102_v13, %v6697_v62  ;;  %vm7898_vm0 = vcmp.eq.s32.totalorder %v8104_v3, %v6697_v62  ;;  %vm7897_vm1 = vcmp.eq.s32.totalorder %v8105_v27, %v6697_v62 }
 0x4ca   : > { %3803 = vmatmul.msk.f32.gmra.mxu0 %vm7900_vm7, %v8106_v18  ;;  %3819 = vmatmul.msk.f32.gmra.mxu1 %vm7899_vm4, %v8106_v18  ;;  %vm7914_vm4 = vcmp.eq.s32.totalorder %v8104_v3, %v6782_v12  ;;  %vm7913_vm7 = vcmp.eq.s32.totalorder %v8105_v27, %v6782_v12 }
 0x4cb   : > { %3835 = vmatmul.msk.f32.gmra.mxu2 %vm7898_vm0, %v8106_v18  ;;  %3851 = vmatmul.msk.f32.gmra.mxu3 %vm7897_vm1, %v8106_v18  ;;  %vm7916_vm1 = vcmp.eq.s32.totalorder %v8103_v15, %v6782_v12  ;;  %vm7915_vm0 = vcmp.eq.s32.totalorder %v8102_v13, %v6782_v12 }
 0x4cf   : > { %v6750_v45 = vpop.permute.xlu0 %2152 }
 0x4d0   : > { %vm7908_vm10 = vcmp.eq.s32.totalorder %v8103_v15, %v6750_v45  ;;  %vm7907_vm11 = vcmp.eq.s32.totalorder %v8102_v13, %v6750_v45  ;;  %vm7906_vm13 = vcmp.eq.s32.totalorder %v8104_v3, %v6750_v45  ;;  %vm7905_vm6 = vcmp.eq.s32.totalorder %v8105_v27, %v6750_v45 }
 0x4d2   : > { %3804 = vmatmul.msk.f32.gmra.mxu0 %vm7904_vm2, %v8106_v18  ;;  %3820 = vmatmul.msk.f32.gmra.mxu1 %vm7903_vm5, %v8106_v18 }
 0x4d3   : > { %3836 = vmatmul.msk.f32.gmra.mxu2 %vm7902_vm8, %v8106_v18  ;;  %3852 = vmatmul.msk.f32.gmra.mxu3 %vm7901_vm9, %v8106_v18 }
 0x4da   : > { %3805 = vmatmul.msk.f32.gmra.mxu0 %vm7908_vm10, %v8106_v18  ;;  %3821 = vmatmul.msk.f32.gmra.mxu1 %vm7907_vm11, %v8106_v18 }
 0x4db   : > { %3837 = vmatmul.msk.f32.gmra.mxu2 %vm7906_vm13, %v8106_v18  ;;  %3853 = vmatmul.msk.f32.gmra.mxu3 %vm7905_vm6, %v8106_v18 }
 0x4e7   : > { %v6784_v46 = vpop.permute.xlu0 %2194 }
 0x4e8   : > { %vm7920_vm9 = vcmp.eq.s32.totalorder %v8103_v15, %v6784_v46  ;;  %vm7919_vm8 = vcmp.eq.s32.totalorder %v8102_v13, %v6784_v46  ;;  %vm7918_vm5 = vcmp.eq.s32.totalorder %v8104_v3, %v6784_v46  ;;  %vm7917_vm2 = vcmp.eq.s32.totalorder %v8105_v27, %v6784_v46 }
 0x4f3   : > { %v2276_v26 = vpop.xlane.xlu1 %2275  ;;  %2317 = vmax.index.xlane.f32.xlu1 %v2315_v50 }
 0x4f4   : > { %4044 = vset.pattern.permute.xlu0 %v2276_v26 }
 0x4fc   : > { %2278 = vperm.xlu0 %4044, %v6612_v30  }
 0x509   : > { %v2290_v54 = vpop.xlane.xlu2 %2289 }
 0x50a   : > { %4045 = vset.pattern.permute.xlu2 %v2290_v54 }
 0x50b   : > { %v6786_v7 = vpop.permute.xlu1 %2166 }
 0x50c   : > { %vm7912_vm12 = vcmp.eq.s32.totalorder %v8103_v15, %v6786_v7  ;;  %vm7911_vm3 = vcmp.eq.s32.totalorder %v8102_v13, %v6786_v7  ;;  %vm7910_vm14 = vcmp.eq.s32.totalorder %v8104_v3, %v6786_v7  ;;  %vm7909_vm15 = vcmp.eq.s32.totalorder %v8105_v27, %v6786_v7 }
 0x50d   : > { %3806 = vmatmul.msk.f32.gmra.mxu0 %vm7912_vm12, %v8106_v18  ;;  %3822 = vmatmul.msk.f32.gmra.mxu1 %vm7911_vm3, %v8106_v18 }
 0x50e   : > { %3838 = vmatmul.msk.f32.gmra.mxu2 %vm7910_vm14, %v8106_v18  ;;  %3854 = vmatmul.msk.f32.gmra.mxu3 %vm7909_vm15, %v8106_v18 }
 0x511   : > { %v6940_v19 = vpop.permute.xlu2 %2250 }
 0x512   : > { %2292 = vperm.xlu2 %4045, %v6623_v59   ;;  %v2304_v30 = vpop.xlane.xlu0 %2303 }
 0x513   : > { %4046 = vset.pattern.permute.xlu1 %v2304_v30 }
 0x515   : > { %3807 = vmatmul.msk.f32.gmra.mxu0 %vm7916_vm1, %v8106_v18  ;;  %3823 = vmatmul.msk.f32.gmra.mxu1 %vm7915_vm0, %v8106_v18 }
 0x516   : > { %3839 = vmatmul.msk.f32.gmra.mxu2 %vm7914_vm4, %v8106_v18  ;;  %3855 = vmatmul.msk.f32.gmra.mxu3 %vm7913_vm7, %v8106_v18 }
 0x519   : > { %v6973_v43 = vpop.permute.xlu2 %2264 }
 0x51b   : > { %2306 = vperm.xlu1 %4046, %v6634_v33   ;;  %v6862_v59 = vpop.permute.xlu1 %2208 }
 0x51c   : > { %vm7924_vm6 = vcmp.eq.s32.totalorder %v8103_v15, %v6862_v59  ;;  %vm7923_vm13 = vcmp.eq.s32.totalorder %v8102_v13, %v6862_v59  ;;  %vm7922_vm11 = vcmp.eq.s32.totalorder %v8104_v3, %v6862_v59  ;;  %vm7921_vm10 = vcmp.eq.s32.totalorder %v8105_v27, %v6862_v59 }
 0x51d   : > { %3808 = vmatmul.msk.f32.gmra.mxu0 %vm7920_vm9, %v8106_v18  ;;  %3824 = vmatmul.msk.f32.gmra.mxu1 %vm7919_vm8, %v8106_v18  ;;  %vm7934_vm8 = vcmp.eq.s32.totalorder %v8104_v3, %v6940_v19  ;;  %vm7933_vm9 = vcmp.eq.s32.totalorder %v8105_v27, %v6940_v19 }
 0x51e   : > { %3840 = vmatmul.msk.f32.gmra.mxu2 %vm7918_vm5, %v8106_v18  ;;  %3856 = vmatmul.msk.f32.gmra.mxu3 %vm7917_vm2, %v8106_v18  ;;  %vm7936_vm2 = vcmp.eq.s32.totalorder %v8103_v15, %v6940_v19  ;;  %vm7935_vm5 = vcmp.eq.s32.totalorder %v8102_v13, %v6940_v19 }
 0x525   : > { %3809 = vmatmul.msk.f32.gmra.mxu0 %vm7924_vm6, %v8106_v18  ;;  %3825 = vmatmul.msk.f32.gmra.mxu1 %vm7923_vm13, %v8106_v18  ;;  %vm7942_vm13 = vcmp.eq.s32.totalorder %v8104_v3, %v6973_v43  ;;  %vm7941_vm6 = vcmp.eq.s32.totalorder %v8105_v27, %v6973_v43 }
 0x526   : > { %3841 = vmatmul.msk.f32.gmra.mxu2 %vm7922_vm11, %v8106_v18  ;;  %3857 = vmatmul.msk.f32.gmra.mxu3 %vm7921_vm10, %v8106_v18  ;;  %vm7944_vm10 = vcmp.eq.s32.totalorder %v8103_v15, %v6973_v43  ;;  %vm7943_vm11 = vcmp.eq.s32.totalorder %v8102_v13, %v6973_v43 }
 0x52b   : > { %v6888_v47 = vpop.permute.xlu1 %2222 }
 0x52c   : > { %vm7928_vm15 = vcmp.eq.s32.totalorder %v8103_v15, %v6888_v47  ;;  %vm7927_vm14 = vcmp.eq.s32.totalorder %v8102_v13, %v6888_v47  ;;  %vm7926_vm3 = vcmp.eq.s32.totalorder %v8104_v3, %v6888_v47  ;;  %vm7925_vm12 = vcmp.eq.s32.totalorder %v8105_v27, %v6888_v47 }
 0x52d   : > { %3810 = vmatmul.msk.f32.gmra.mxu0 %vm7928_vm15, %v8106_v18  ;;  %3826 = vmatmul.msk.f32.gmra.mxu1 %vm7927_vm14, %v8106_v18 }
 0x52e   : > { %3842 = vmatmul.msk.f32.gmra.mxu2 %vm7926_vm3, %v8106_v18  ;;  %3858 = vmatmul.msk.f32.gmra.mxu3 %vm7925_vm12, %v8106_v18 }
 0x536   : > { %v2531_v44 = vpop.f32.mrf.mxu0 }
 0x537   : > { %v2596_v29 = vpop.f32.mrf.mxu1 }
 0x538   : > { %v2597_v17 = vadd.f32 %v2596_v29, %v2531_v44 }
 0x53b   : > { %v6914_v5 = vpop.permute.xlu1 %2236 }
 0x53c   : > { %vm7932_vm7 = vcmp.eq.s32.totalorder %v8103_v15, %v6914_v5  ;;  %vm7931_vm4 = vcmp.eq.s32.totalorder %v8102_v13, %v6914_v5  ;;  %vm7930_vm0 = vcmp.eq.s32.totalorder %v8104_v3, %v6914_v5  ;;  %vm7929_vm1 = vcmp.eq.s32.totalorder %v8105_v27, %v6914_v5 }
 0x53d   : > { %3811 = vmatmul.msk.f32.gmra.mxu0 %vm7932_vm7, %v8106_v18  ;;  %3827 = vmatmul.msk.f32.gmra.mxu1 %vm7931_vm4, %v8106_v18  ;;  %v2661_v23 = vpop.f32.mrf.mxu2 }
 0x53e   : > { %v2662_v33 = vadd.f32 %v2661_v23, %v2597_v17  ;;  %3843 = vmatmul.msk.f32.gmra.mxu2 %vm7930_vm0, %v8106_v18  ;;  %3859 = vmatmul.msk.f32.gmra.mxu3 %vm7929_vm1, %v8106_v18  ;;  %v2726_v52 = vpop.f32.mrf.mxu3 }
 0x540   : > { %v2727_v48 = vadd.f32 %v2726_v52, %v2662_v33 }
 0x542   : > { %2953 = vst [vmem:[%s6946_s25] sm:$0xff] %v2727_v48  ;;  %v3118_v55 = vsub.f32 %v6262_v57, %v2727_v48 }
 0x544   : > { %v3134_v24 = vmul.f32 %v3118_v55, %v3118_v55 }
 0x545   : > { %3812 = vmatmul.msk.f32.gmra.mxu0 %vm7936_vm2, %v8106_v18  ;;  %3828 = vmatmul.msk.f32.gmra.mxu1 %vm7935_vm5, %v8106_v18 }
 0x546   : > { %3844 = vmatmul.msk.f32.gmra.mxu2 %vm7934_vm8, %v8106_v18  ;;  %3860 = vmatmul.msk.f32.gmra.mxu3 %vm7933_vm9, %v8106_v18  ;;  %v3150_v61 = vpack.c.bf16 %v3134_v24, %v3134_v24 }
 0x547   : > { %v2534_v22 = vpop.f32.mrf.mxu0  ;;  %v2599_v41 = vpop.f32.mrf.mxu1 }
 0x548   : > { %v2600_v42 = vadd.f32 %v2599_v41, %v2534_v22  ;;  %v3166_v32 = vunpack.c.l.bf16 %v3150_v61  ;;  %v3235_v30 = vunpack.c.l.b16 %v3150_v61 }
 0x54a   : > { %v7002_v23 = vsub.f32 %v3134_v24, %v3166_v32 }
 0x54c   : > { %8107 = vst [vmem:[#allocation22_spill] sm:$0xff] %v7002_v23 }
 0x54d   : > { %3813 = vmatmul.msk.f32.gmra.mxu0 %vm7944_vm10, %v8106_v18  ;;  %3829 = vmatmul.msk.f32.gmra.mxu1 %vm7943_vm11, %v8106_v18 }
 0x54e   : > { %v2664_v49 = vpop.f32.mrf.mxu2  ;;  %3845 = vmatmul.msk.f32.gmra.mxu2 %vm7942_vm13, %v8106_v18  ;;  %v2729_v37 = vpop.f32.mrf.mxu3  ;;  %3861 = vmatmul.msk.f32.gmra.mxu3 %vm7941_vm6, %v8106_v18 }
 0x54f   : > { %v2665_v1 = vadd.f32 %v2664_v49, %v2600_v42  ;;  %v2537_v9 = vpop.f32.mrf.mxu0  ;;  %v2602_v20 = vpop.f32.mrf.mxu1 }
 0x550   : > { %v2603_v36 = vadd.f32 %v2602_v20, %v2537_v9 }
 0x551   : > { %v2730_v25 = vadd.f32 %v2729_v37, %v2665_v1 }
 0x553   : > { %2954 = vst [vmem:[%s6946_s25 + $0x8] sm:$0xff] %v2730_v25  ;;  %v3119_v53 = vsub.f32 %v6282_v0, %v2730_v25 }
 0x555   : > { %v3135_v4 = vmul.f32 %v3119_v53, %v3119_v53 }
 0x556   : > { %v2667_v40 = vpop.f32.mrf.mxu2  ;;  %v2732_v28 = vpop.f32.mrf.mxu3 }
 0x557   : > { %v3151_v51 = vpack.c.bf16 %v3135_v4, %v3135_v4  ;;  %v2668_v50 = vadd.f32 %v2667_v40, %v2603_v36  ;;  %v2540_v29 = vpop.f32.mrf.mxu0  ;;  %v2605_v17 = vpop.f32.mrf.mxu1 }
 0x558   : > { %v2606_v22 = vadd.f32 %v2605_v17, %v2540_v29 }
 0x559   : > { %v3167_v26 = vunpack.c.l.bf16 %v3151_v51  ;;  %v2733_v54 = vadd.f32 %v2732_v28, %v2668_v50  ;;  %v3236_v44 = vunpack.c.l.b16 %v3151_v51 }
 0x55b   : > { %v7004_v33 = vsub.f32 %v3135_v4, %v3167_v26  ;;  %2955 = vst [vmem:[%s6946_s25 + $0x10] sm:$0xff] %v2733_v54  ;;  %v7007_v52 = vpack.c.b16 %v3236_v44, %v3235_v30  ;;  %v3120_v48 = vsub.f32 %v6302_v2, %v2733_v54 }
 0x55d   : > { %8108 = vst [vmem:[#allocation23_spill] sm:$0xff] %v7004_v33  ;;  %v3136_v49 = vmul.f32 %v3120_v48, %v3120_v48 }
 0x55e   : > { %8109 = vst [vmem:[#allocation24_spill] sm:$0xff] %v7007_v52  ;;  %v2670_v55 = vpop.f32.mrf.mxu2  ;;  %v2735_v37 = vpop.f32.mrf.mxu3 }
 0x55f   : > { %v2671_v42 = vadd.f32 %v2670_v55, %v2606_v22  ;;  %v3152_v9 = vpack.c.bf16 %v3136_v49, %v3136_v49 }
 0x561   : > { %v2736_v1 = vadd.f32 %v2735_v37, %v2671_v42  ;;  %v3168_v53 = vunpack.c.l.bf16 %v3152_v9  ;;  %v3237_v36 = vunpack.c.l.b16 %v3152_v9 }
 0x563   : > { %2956 = vst [vmem:[%s6946_s25 + $0x18] sm:$0xff] %v2736_v1  ;;  %v3121_v24 = vsub.f32 %v6322_v10, %v2736_v1  ;;  %v7018_v51 = vsub.f32 %v3136_v49, %v3168_v53 }
 0x565   : > { %v3137_v20 = vmul.f32 %v3121_v24, %v3121_v24  ;;  %8111 = vst [vmem:[#allocation27_spill] sm:$0xff] %v7018_v51 }
 0x566   : > { %v2318_v25 = vpop.xlane.xlu1 %2317 }
 0x567   : > { %v3153_v61 = vpack.c.bf16 %v3137_v20, %v3137_v20  ;;  %4048 = vset.pattern.permute.xlu0 %v2318_v25  ;;  %4047 = vset.pattern.permute.xlu2 %v2318_v25 }
 0x569   : > { %v3169_v4 = vunpack.c.l.bf16 %v3153_v61  ;;  %v3238_v40 = vunpack.c.l.b16 %v3153_v61 }
 0x56b   : > { %v7014_v28 = vsub.f32 %v3137_v20, %v3169_v4  ;;  %v7016_v32 = vpack.c.b16 %v3238_v40, %v3237_v36 }
 0x56d   : > { %8110 = vst [vmem:[#allocation26_spill] sm:$0xff] %v7014_v28 }
 0x56e   : > { %v7020_v50 = vpop.permute.xlu0 %2278 }
 0x56f   : > { %2320 = vperm.xlu2 %4047, %v6651_v8   ;;  %vm7948_vm12 = vcmp.eq.s32.totalorder %v8103_v15, %v7020_v50  ;;  %vm7945_vm3 = vcmp.eq.s32.totalorder %v8102_v13, %v7020_v50  ;;  %vm7946_vm14 = vcmp.eq.s32.totalorder %v8104_v3, %v7020_v50  ;;  %vm7947_vm15 = vcmp.eq.s32.totalorder %v8105_v27, %v7020_v50  ;;  %v7049_v8 = vpop.permute.xlu2 %2292 }
 0x570   : > { %3814 = vmatmul.msk.f32.gmra.mxu0 %vm7948_vm12, %v8106_v18  ;;  %3830 = vmatmul.msk.f32.gmra.mxu1 %vm7945_vm3, %v8106_v18  ;;  %vm2374_vm1 = vcmp.eq.s32.totalorder %v8103_v15, %v7049_v8  ;;  %vm2375_vm0 = vcmp.eq.s32.totalorder %v8102_v13, %v7049_v8  ;;  %vm2376_vm4 = vcmp.eq.s32.totalorder %v8104_v3, %v7049_v8 }
 0x571   : > { %3846 = vmatmul.msk.f32.gmra.mxu2 %vm7946_vm14, %v8106_v18  ;;  %3862 = vmatmul.msk.f32.gmra.mxu3 %vm7947_vm15, %v8106_v18  ;;  %vm7949_vm7 = vcmp.eq.s32.totalorder %v8105_v27, %v7049_v8 }
 0x578   : > { %3815 = vmatmul.msk.f32.gmra.mxu0 %vm2374_vm1, %v8106_v18  ;;  %3831 = vmatmul.msk.f32.gmra.mxu1 %vm2375_vm0, %v8106_v18 }
 0x579   : > { %3847 = vmatmul.msk.f32.gmra.mxu2 %vm2376_vm4, %v8106_v18  ;;  %3863 = vmatmul.msk.f32.gmra.mxu3 %vm7949_vm7, %v8106_v18 }
 0x58a   : > { %v2543_v54 = vpop.f32.mrf.mxu0  ;;  %v2608_v30 = vpop.f32.mrf.mxu1 }
 0x58b   : > { %v2609_v29 = vadd.f32 %v2608_v30, %v2543_v54 }
 0x58d   : > { %v7075_v44 = vpop.permute.xlu1 %2306 }
 0x58e   : > { %vm2378_vm9 = vcmp.eq.s32.totalorder %v8103_v15, %v7075_v44  ;;  %vm2379_vm8 = vcmp.eq.s32.totalorder %v8102_v13, %v7075_v44  ;;  %vm2380_vm5 = vcmp.eq.s32.totalorder %v8104_v3, %v7075_v44  ;;  %vm2381_vm2 = vcmp.eq.s32.totalorder %v8105_v27, %v7075_v44 }
 0x58f   : > { %3816 = vmatmul.msk.f32.gmra.mxu0 %vm2378_vm9, %v8106_v18  ;;  %3832 = vmatmul.msk.f32.gmra.mxu1 %vm2379_vm8, %v8106_v18 }
 0x590   : > { %3848 = vmatmul.msk.f32.gmra.mxu2 %vm2380_vm5, %v8106_v18  ;;  %3864 = vmatmul.msk.f32.gmra.mxu3 %vm2381_vm2, %v8106_v18 }
 0x591   : > { %v2673_v17 = vpop.f32.mrf.mxu2  ;;  %v2738_v48 = vpop.f32.mrf.mxu3 }
 0x592   : > { %v2674_v22 = vadd.f32 %v2673_v17, %v2609_v29  ;;  %v2546_v55 = vpop.f32.mrf.mxu0  ;;  %v2611_v42 = vpop.f32.mrf.mxu1 }
 0x593   : > { %v2612_v1 = vadd.f32 %v2611_v42, %v2546_v55 }
 0x594   : > { %v2739_v49 = vadd.f32 %v2738_v48, %v2674_v22 }
 0x596   : > { %2957 = vst [vmem:[%s6946_s25 + $0x20] sm:$0xff] %v2739_v49  ;;  %v3122_v37 = vsub.f32 %v6342_v16, %v2739_v49 }
 0x598   : > { %v3138_v20 = vmul.f32 %v3122_v37, %v3122_v37 }
 0x599   : > { %v2676_v24 = vpop.f32.mrf.mxu2  ;;  %v2741_v9 = vpop.f32.mrf.mxu3 }
 0x59a   : > { %v2677_v25 = vadd.f32 %v2676_v24, %v2612_v1  ;;  %v2549_v61 = vpop.f32.mrf.mxu0  ;;  %v2614_v53 = vpop.f32.mrf.mxu1  ;;  %v3154_v36 = vpack.c.bf16 %v3138_v20, %v3138_v20 }
 0x59b   : > { %v2615_v30 = vadd.f32 %v2614_v53, %v2549_v61 }
 0x59c   : > { %v2742_v4 = vadd.f32 %v2741_v9, %v2677_v25  ;;  %v3170_v48 = vunpack.c.l.bf16 %v3154_v36  ;;  %v3239_v1 = vunpack.c.l.b16 %v3154_v36 }
 0x59e   : > { %2958 = vst [vmem:[%s6946_s25 + $0x28] sm:$0xff] %v2742_v4  ;;  %v3123_v40 = vsub.f32 %v6362_v14, %v2742_v4  ;;  %v7105_v9 = vsub.f32 %v3138_v20, %v3170_v48 }
 0x5a0   : > { %v3139_v54 = vmul.f32 %v3123_v40, %v3123_v40 }
 0x5a1   : > { %v2679_v29 = vpop.f32.mrf.mxu2  ;;  %v2744_v17 = vpop.f32.mrf.mxu3 }
 0x5a2   : > { %v3155_v22 = vpack.c.bf16 %v3139_v54, %v3139_v54  ;;  %v2680_v49 = vadd.f32 %v2679_v29, %v2615_v30  ;;  %v2552_v55 = vpop.f32.mrf.mxu0  ;;  %v2617_v42 = vpop.f32.mrf.mxu1 }
 0x5a3   : > { %v2618_v53 = vadd.f32 %v2617_v42, %v2552_v55 }
 0x5a4   : > { %v3171_v41 = vunpack.c.l.bf16 %v3155_v22  ;;  %v2745_v37 = vadd.f32 %v2744_v17, %v2680_v49  ;;  %v3240_v24 = vunpack.c.l.b16 %v3155_v22 }
 0x5a6   : > { %v7107_v25 = vsub.f32 %v3139_v54, %v3171_v41  ;;  %2959 = vst [vmem:[%s6946_s25 + $0x30] sm:$0xff] %v2745_v37  ;;  %v3124_v4 = vsub.f32 %v6376_v63, %v2745_v37  ;;  %v7111_v61 = vpack.c.b16 %v3240_v24, %v3239_v1 }
 0x5a8   : > { %v3140_v26 = vmul.f32 %v3124_v4, %v3124_v4 }
 0x5a9   : > { %v2682_v30 = vpop.f32.mrf.mxu2  ;;  %v2747_v29 = vpop.f32.mrf.mxu3 }
 0x5aa   : > { %v2683_v17 = vadd.f32 %v2682_v30, %v2618_v53  ;;  %v2555_v22 = vpop.f32.mrf.mxu0  ;;  %v2620_v49 = vpop.f32.mrf.mxu1  ;;  %v3156_v20 = vpack.c.bf16 %v3140_v26, %v3140_v26 }
 0x5ab   : > { %v2621_v48 = vadd.f32 %v2620_v49, %v2555_v22 }
 0x5ac   : > { %v2748_v36 = vadd.f32 %v2747_v29, %v2683_v17  ;;  %v3172_v1 = vunpack.c.l.bf16 %v3156_v20  ;;  %v3241_v33 = vunpack.c.l.b16 %v3156_v20 }
 0x5ae   : > { %2960 = vst [vmem:[%s6946_s25 + $0x38] sm:$0xff] %v2748_v36  ;;  %v3125_v41 = vsub.f32 %v6384_v11, %v2748_v36  ;;  %v7117_v53 = vsub.f32 %v3140_v26, %v3172_v1 }
 0x5b0   : > { %v3141_v54 = vmul.f32 %v3125_v41, %v3125_v41 }
 0x5b1   : > { %v2685_v37 = vpop.f32.mrf.mxu2  ;;  %v2750_v24 = vpop.f32.mrf.mxu3 }
 0x5b2   : > { %v3157_v55 = vpack.c.bf16 %v3141_v54, %v3141_v54  ;;  %v2686_v42 = vadd.f32 %v2685_v37, %v2621_v48 }
 0x5b4   : > { %v3173_v40 = vunpack.c.l.bf16 %v3157_v55  ;;  %v2751_v23 = vadd.f32 %v2750_v24, %v2686_v42  ;;  %v3242_v4 = vunpack.c.l.b16 %v3157_v55 }
 0x5b6   : > { %v7119_v30 = vsub.f32 %v3141_v54, %v3173_v40  ;;  %2961 = vst [vmem:[%s6946_s25 + $0x40] sm:$0xff] %v2751_v23  ;;  %v7122_v29 = vpack.c.b16 %v3242_v4, %v3241_v33  ;;  %v3126_v49 = vsub.f32 %v6392_v39, %v2751_v23 }
 0x5b8   : > { %v3142_v48 = vmul.f32 %v3126_v49, %v3126_v49 }
 0x5ba   : > { %v2558_v36 = vpop.f32.mrf.mxu0  ;;  %v2623_v22 = vpop.f32.mrf.mxu1  ;;  %v3158_v54 = vpack.c.bf16 %v3142_v48, %v3142_v48 }
 0x5bb   : > { %v2624_v41 = vadd.f32 %v2623_v22, %v2558_v36 }
 0x5bc   : > { %v3174_v4 = vunpack.c.l.bf16 %v3158_v54 }
 0x5c1   : > { %v2688_v37 = vpop.f32.mrf.mxu2  ;;  %v2753_v20 = vpop.f32.mrf.mxu3 }
 0x5c2   : > { %v2689_v55 = vadd.f32 %v2688_v37, %v2624_v41  ;;  %v2561_v26 = vpop.f32.mrf.mxu0  ;;  %v2626_v1 = vpop.f32.mrf.mxu1  ;;  %v7147_v41 = vsub.f32 %v3142_v48, %v3174_v4 }
 0x5c3   : > { %v2627_v24 = vadd.f32 %v2626_v1, %v2561_v26 }
 0x5c4   : > { %v2754_v40 = vadd.f32 %v2753_v20, %v2689_v55 }
 0x5c6   : > { %2962 = vst [vmem:[%s6946_s25 + $0x48] sm:$0xff] %v2754_v40  ;;  %v3127_v33 = vsub.f32 %v6400_v60, %v2754_v40 }
 0x5c8   : > { %v3143_v42 = vmul.f32 %v3127_v33, %v3127_v33 }
 0x5c9   : > { %v2691_v17 = vpop.f32.mrf.mxu2  ;;  %v2756_v52 = vpop.f32.mrf.mxu3 }
 0x5ca   : > { %v3159_v51 = vpack.c.bf16 %v3143_v42, %v3143_v42  ;;  %v2692_v28 = vadd.f32 %v2691_v17, %v2627_v24  ;;  %v7129_v23 = vpop.permute.xlu2 %2320  ;;  %v3243_v17 = vunpack.c.l.b16 %v3158_v54  ;;  %v2564_v37 = vpop.f32.mrf.mxu0 }
 0x5cb   : > { %vm2382_vm6 = vcmp.eq.s32.totalorder %v8103_v15, %v7129_v23  ;;  %vm2383_vm13 = vcmp.eq.s32.totalorder %v8102_v13, %v7129_v23  ;;  %vm2384_vm11 = vcmp.eq.s32.totalorder %v8104_v3, %v7129_v23  ;;  %vm2385_vm10 = vcmp.eq.s32.totalorder %v8105_v27, %v7129_v23  ;;  %v2629_v20 = vpop.f32.mrf.mxu1 }
 0x5cc   : > { %v3175_v36 = vunpack.c.l.bf16 %v3159_v51  ;;  %v2757_v22 = vadd.f32 %v2756_v52, %v2692_v28  ;;  %3817 = vmatmul.msk.f32.gmra.mxu0 %vm2382_vm6, %v8106_v18  ;;  %3833 = vmatmul.msk.f32.gmra.mxu1 %vm2383_vm13, %v8106_v18  ;;  %v3244_v49 = vunpack.c.l.b16 %v3159_v51  ;;  %v2630_v48 = vadd.f32 %v2629_v20, %v2564_v37 }
 0x5cd   : > { %3849 = vmatmul.msk.f32.gmra.mxu2 %vm2384_vm11, %v8106_v18  ;;  %3865 = vmatmul.msk.f32.gmra.mxu3 %vm2385_vm10, %v8106_v18 }
 0x5ce   : > { %v7157_v52 = vsub.f32 %v3143_v42, %v3175_v36  ;;  %2963 = vst [vmem:[%s6946_s25 + $0x50] sm:$0xff] %v2757_v22  ;;  %v3128_v28 = vsub.f32 %v6412_v6, %v2757_v22  ;;  %3866 = vmatpush.xpose.msk.msra.mxu0 %vm2382_vm6, %v8106_v18  ;;  %3882 = vmatpush.xpose.msk.msra.mxu1 %vm2383_vm13, %v8106_v18 }
 0x5cf   : > { %v7169_v51 = vpack.c.b16 %v3244_v49, %v3243_v17  ;;  %3898 = vmatpush.xpose.msk.msra.mxu2 %vm2384_vm11, %v8106_v18  ;;  %3914 = vmatpush.xpose.msk.msra.mxu3 %vm2385_vm10, %v8106_v18 }
 0x5d0   : > { %v3202_v55 = vpack.c.bf16 %v7157_v52, %v7147_v41  ;;  %v3144_v1 = vmul.f32 %v3128_v28, %v3128_v28  ;;  %v8222_v41 = vpack.c.bf16 %v7107_v25, %v7105_v9  ;;  %v4074_v52 = vmov 1065369472  }
 0x5d1   : > { %v2694_v26 = vpop.f32.mrf.mxu2  ;;  %v2759_v54 = vpop.f32.mrf.mxu3 }
 0x5d2   : > { %3867 = vmatpush.xpose.msk.msra.mxu0 %vm2378_vm9, %v8106_v18  ;;  %3883 = vmatpush.xpose.msk.msra.mxu1 %vm2379_vm8, %v8106_v18  ;;  %v2695_v40 = vadd.f32 %v2694_v26, %v2630_v48  ;;  %v3160_v42 = vpack.c.bf16 %v3144_v1, %v3144_v1 }
 0x5d3   : > { %3899 = vmatpush.xpose.msk.msra.mxu2 %vm2380_vm5, %v8106_v18  ;;  %3915 = vmatpush.xpose.msk.msra.mxu3 %vm2381_vm2, %v8106_v18 }
 0x5d4   : > { %v2760_v33 = vadd.f32 %v2759_v54, %v2695_v40  ;;  %v3176_v36 = vunpack.c.l.bf16 %v3160_v42  ;;  %v3245_v49 = vunpack.c.l.b16 %v3160_v42 }
 0x5d6   : > { %2964 = vst [vmem:[%s6946_s25 + $0x58] sm:$0xff] %v2760_v33  ;;  %v3129_v24 = vsub.f32 %v6424_v35, %v2760_v33  ;;  %3868 = vmatpush.xpose.msk.msra.mxu0 %vm2374_vm1, %v8106_v18  ;;  %3884 = vmatpush.xpose.msk.msra.mxu1 %vm2375_vm0, %v8106_v18  ;;  %v7231_v20 = vsub.f32 %v3144_v1, %v3176_v36 }
 0x5d7   : > { %3900 = vmatpush.xpose.msk.msra.mxu2 %vm2376_vm4, %v8106_v18  ;;  %3916 = vmatpush.xpose.msk.msra.mxu3 %vm7949_vm7, %v8106_v18  ;;  %vm8120_vm7 = vcmp.eq.s32.totalorder %v8103_v15, %v6914_v5 }
 0x5d8   : > { %v3145_v4 = vmul.f32 %v3129_v24, %v3129_v24 }
 0x5da   : > { %v3161_v22 = vpack.c.bf16 %v3145_v4, %v3145_v4  ;;  %3869 = vmatpush.xpose.msk.msra.mxu0 %vm7948_vm12, %v8106_v18  ;;  %3885 = vmatpush.xpose.msk.msra.mxu1 %vm7945_vm3, %v8106_v18  ;;  %vm8112_vm3 = vcmp.eq.s32.totalorder %v8103_v15, %v6973_v43  ;;  %vm8115_vm12 = vcmp.eq.s32.totalorder %v8105_v27, %v6973_v43 }
 0x5db   : > { %3901 = vmatpush.xpose.msk.msra.mxu2 %vm7946_vm14, %v8106_v18  ;;  %3917 = vmatpush.xpose.msk.msra.mxu3 %vm7947_vm15, %v8106_v18  ;;  %vm8113_vm14 = vcmp.eq.s32.totalorder %v8102_v13, %v6973_v43  ;;  %vm8114_vm15 = vcmp.eq.s32.totalorder %v8104_v3, %v6973_v43 }
 0x5dc   : > { %v3177_v17 = vunpack.c.l.bf16 %v3161_v22  ;;  %v3246_v37 = vunpack.c.l.b16 %v3161_v22 }
 0x5de   : > { %v7233_v28 = vsub.f32 %v3145_v4, %v3177_v17  ;;  %3870 = vmatpush.xpose.msk.msra.mxu0 %vm8112_vm3, %v8106_v18  ;;  %3886 = vmatpush.xpose.msk.msra.mxu1 %vm8113_vm14, %v8106_v18  ;;  %v7243_v48 = vpack.c.b16 %v3246_v37, %v3245_v49  ;;  %vm8116_vm3 = vcmp.eq.s32.totalorder %v8103_v15, %v6940_v19 }
 0x5df   : > { %3902 = vmatpush.xpose.msk.msra.mxu2 %vm8114_vm15, %v8106_v18  ;;  %3918 = vmatpush.xpose.msk.msra.mxu3 %vm8115_vm12, %v8106_v18  ;;  %vm8117_vm14 = vcmp.eq.s32.totalorder %v8102_v13, %v6940_v19  ;;  %vm8118_vm15 = vcmp.eq.s32.totalorder %v8104_v3, %v6940_v19  ;;  %vm8119_vm12 = vcmp.eq.s32.totalorder %v8105_v27, %v6940_v19 }
 0x5e0   : > { %v3203_v26 = vpack.c.bf16 %v7233_v28, %v7231_v20 }
 0x5e2   : > { %3871 = vmatpush.xpose.msk.msra.mxu0 %vm8116_vm3, %v8106_v18  ;;  %3887 = vmatpush.xpose.msk.msra.mxu1 %vm8117_vm14, %v8106_v18  ;;  %vm8121_vm3 = vcmp.eq.s32.totalorder %v8102_v13, %v6914_v5  ;;  %vm8122_vm14 = vcmp.eq.s32.totalorder %v8104_v3, %v6914_v5 }
 0x5e3   : > { %3903 = vmatpush.xpose.msk.msra.mxu2 %vm8118_vm15, %v8106_v18  ;;  %3919 = vmatpush.xpose.msk.msra.mxu3 %vm8119_vm12, %v8106_v18  ;;  %vm8123_vm15 = vcmp.eq.s32.totalorder %v8105_v27, %v6914_v5  ;;  %vm8124_vm12 = vcmp.eq.s32.totalorder %v8103_v15, %v6888_v47 }
 0x5e6   : > { %3872 = vmatpush.xpose.msk.msra.mxu0 %vm8120_vm7, %v8106_v18  ;;  %3888 = vmatpush.xpose.msk.msra.mxu1 %vm8121_vm3, %v8106_v18  ;;  %vm8125_vm7 = vcmp.eq.s32.totalorder %v8102_v13, %v6888_v47  ;;  %vm8126_vm3 = vcmp.eq.s32.totalorder %v8104_v3, %v6888_v47 }
 0x5e7   : > { %3904 = vmatpush.xpose.msk.msra.mxu2 %vm8122_vm14, %v8106_v18  ;;  %3920 = vmatpush.xpose.msk.msra.mxu3 %vm8123_vm15, %v8106_v18  ;;  %vm8127_vm14 = vcmp.eq.s32.totalorder %v8105_v27, %v6888_v47  ;;  %vm8128_vm15 = vcmp.eq.s32.totalorder %v8103_v15, %v6862_v59 }
 0x5ea   : > { %3873 = vmatpush.xpose.msk.msra.mxu0 %vm8124_vm12, %v8106_v18  ;;  %3889 = vmatpush.xpose.msk.msra.mxu1 %vm8125_vm7, %v8106_v18  ;;  %vm8129_vm12 = vcmp.eq.s32.totalorder %v8102_v13, %v6862_v59  ;;  %vm8130_vm7 = vcmp.eq.s32.totalorder %v8104_v3, %v6862_v59 }
 0x5eb   : > { %3905 = vmatpush.xpose.msk.msra.mxu2 %vm8126_vm3, %v8106_v18  ;;  %3921 = vmatpush.xpose.msk.msra.mxu3 %vm8127_vm14, %v8106_v18  ;;  %vm8131_vm3 = vcmp.eq.s32.totalorder %v8105_v27, %v6862_v59  ;;  %vm8132_vm14 = vcmp.eq.s32.totalorder %v8103_v15, %v6784_v46 }
 0x5ed   : > { %v2567_v1 = vpop.f32.mrf.mxu0  ;;  %v2632_v40 = vpop.f32.mrf.mxu1 }
 0x5ee   : > { %3874 = vmatpush.xpose.msk.msra.mxu0 %vm8128_vm15, %v8106_v18  ;;  %3890 = vmatpush.xpose.msk.msra.mxu1 %vm8129_vm12, %v8106_v18  ;;  %vm8133_vm15 = vcmp.eq.s32.totalorder %v8102_v13, %v6784_v46  ;;  %v2633_v54 = vadd.f32 %v2632_v40, %v2567_v1  ;;  %vm8134_vm12 = vcmp.eq.s32.totalorder %v8104_v3, %v6784_v46 }
 0x5ef   : > { %3906 = vmatpush.xpose.msk.msra.mxu2 %vm8130_vm7, %v8106_v18  ;;  %3922 = vmatpush.xpose.msk.msra.mxu3 %vm8131_vm3, %v8106_v18  ;;  %vm8135_vm7 = vcmp.eq.s32.totalorder %v8105_v27, %v6784_v46  ;;  %vm8136_vm3 = vcmp.eq.s32.totalorder %v8103_v15, %v6782_v12 }
 0x5f2   : > { %3875 = vmatpush.xpose.msk.msra.mxu0 %vm8132_vm14, %v8106_v18  ;;  %3891 = vmatpush.xpose.msk.msra.mxu1 %vm8133_vm15, %v8106_v18  ;;  %vm8137_vm14 = vcmp.eq.s32.totalorder %v8102_v13, %v6782_v12  ;;  %vm8138_vm15 = vcmp.eq.s32.totalorder %v8104_v3, %v6782_v12 }
 0x5f3   : > { %3907 = vmatpush.xpose.msk.msra.mxu2 %vm8134_vm12, %v8106_v18  ;;  %3923 = vmatpush.xpose.msk.msra.mxu3 %vm8135_vm7, %v8106_v18  ;;  %vm8139_vm12 = vcmp.eq.s32.totalorder %v8105_v27, %v6782_v12  ;;  %vm8140_vm7 = vcmp.eq.s32.totalorder %v8103_v15, %v6786_v7 }
 0x5f4   : > { %v2697_v33 = vpop.f32.mrf.mxu2  ;;  %v2762_v42 = vpop.f32.mrf.mxu3 }
 0x5f5   : > { %v2698_v24 = vadd.f32 %v2697_v33, %v2633_v54  ;;  %v2570_v36 = vpop.f32.mrf.mxu0  ;;  %v2635_v22 = vpop.f32.mrf.mxu1 }
 0x5f6   : > { %3876 = vmatpush.xpose.msk.msra.mxu0 %vm8136_vm3, %v8106_v18  ;;  %3892 = vmatpush.xpose.msk.msra.mxu1 %vm8137_vm14, %v8106_v18  ;;  %vm8141_vm3 = vcmp.eq.s32.totalorder %v8102_v13, %v6786_v7  ;;  %v2636_v49 = vadd.f32 %v2635_v22, %v2570_v36  ;;  %vm8142_vm14 = vcmp.eq.s32.totalorder %v8104_v3, %v6786_v7 }
 0x5f7   : > { %v2763_v4 = vadd.f32 %v2762_v42, %v2698_v24  ;;  %3908 = vmatpush.xpose.msk.msra.mxu2 %vm8138_vm15, %v8106_v18  ;;  %3924 = vmatpush.xpose.msk.msra.mxu3 %vm8139_vm12, %v8106_v18  ;;  %vm8143_vm15 = vcmp.eq.s32.totalorder %v8105_v27, %v6786_v7  ;;  %vm8144_vm12 = vcmp.eq.s32.totalorder %v8103_v15, %v6750_v45 }
 0x5f9   : > { %2965 = vst [vmem:[%s6946_s25 + $0x60] sm:$0xff] %v2763_v4  ;;  %v3130_v17 = vsub.f32 %v6432_v31, %v2763_v4 }
 0x5fa   : > { %3877 = vmatpush.xpose.msk.msra.mxu0 %vm8140_vm7, %v8106_v18  ;;  %3893 = vmatpush.xpose.msk.msra.mxu1 %vm8141_vm3, %v8106_v18  ;;  %vm8145_vm7 = vcmp.eq.s32.totalorder %v8102_v13, %v6750_v45  ;;  %vm8146_vm3 = vcmp.eq.s32.totalorder %v8104_v3, %v6750_v45 }
 0x5fb   : > { %3909 = vmatpush.xpose.msk.msra.mxu2 %vm8142_vm14, %v8106_v18  ;;  %3925 = vmatpush.xpose.msk.msra.mxu3 %vm8143_vm15, %v8106_v18  ;;  %v3146_v1 = vmul.f32 %v3130_v17, %v3130_v17  ;;  %vm8147_vm14 = vcmp.eq.s32.totalorder %v8105_v27, %v6750_v45  ;;  %vm8148_vm15 = vcmp.eq.s32.totalorder %v8103_v15, %v6724_v34 }
 0x5fc   : > { %v2700_v37 = vpop.f32.mrf.mxu2  ;;  %v2765_v54 = vpop.f32.mrf.mxu3 }
 0x5fd   : > { %v2701_v40 = vadd.f32 %v2700_v37, %v2636_v49  ;;  %v3162_v42 = vpack.c.bf16 %v3146_v1, %v3146_v1 }
 0x5fe   : > { %3878 = vmatpush.xpose.msk.msra.mxu0 %vm8144_vm12, %v8106_v18  ;;  %3894 = vmatpush.xpose.msk.msra.mxu1 %vm8145_vm7, %v8106_v18  ;;  %vm8149_vm12 = vcmp.eq.s32.totalorder %v8102_v13, %v6724_v34  ;;  %vm8150_vm7 = vcmp.eq.s32.totalorder %v8104_v3, %v6724_v34 }
 0x5ff   : > { %v2766_v33 = vadd.f32 %v2765_v54, %v2701_v40  ;;  %3910 = vmatpush.xpose.msk.msra.mxu2 %vm8146_vm3, %v8106_v18  ;;  %3926 = vmatpush.xpose.msk.msra.mxu3 %vm8147_vm14, %v8106_v18  ;;  %vm8151_vm3 = vcmp.eq.s32.totalorder %v8105_v27, %v6724_v34  ;;  %v3178_v36 = vunpack.c.l.bf16 %v3162_v42  ;;  %vm8152_vm14 = vcmp.eq.s32.totalorder %v8103_v15, %v6697_v62 }
 0x600   : > { %v3247_v49 = vunpack.c.l.b16 %v3162_v42  ;;  %v8160_v42 = vld [vmem:[#allocation13_spill] sm:$0xff] }
 0x601   : > { %2966 = vst [vmem:[%s6946_s25 + $0x68] sm:$0xff] %v2766_v33  ;;  %v3131_v24 = vsub.f32 %v6440_v21, %v2766_v33  ;;  %v7419_v40 = vsub.f32 %v3146_v1, %v3178_v36 }
 0x602   : > { %3879 = vmatpush.xpose.msk.msra.mxu0 %vm8148_vm15, %v8106_v18  ;;  %3895 = vmatpush.xpose.msk.msra.mxu1 %vm8149_vm12, %v8106_v18  ;;  %vm8153_vm15 = vcmp.eq.s32.totalorder %v8102_v13, %v6697_v62  ;;  %vm8154_vm12 = vcmp.eq.s32.totalorder %v8104_v3, %v6697_v62 }
 0x603   : > { %v3147_v4 = vmul.f32 %v3131_v24, %v3131_v24  ;;  %3911 = vmatpush.xpose.msk.msra.mxu2 %vm8150_vm7, %v8106_v18  ;;  %3927 = vmatpush.xpose.msk.msra.mxu3 %vm8151_vm3, %v8106_v18  ;;  %vm8155_vm7 = vcmp.eq.s32.totalorder %v8105_v27, %v6697_v62  ;;  %vm8156_vm3 = vcmp.eq.s32.totalorder %v8103_v15, %v6669_v38  ;;  %v8161_v24 = vld [vmem:[#allocation14_spill] sm:$0xff] }
 0x605   : > { %v3163_v22 = vpack.c.bf16 %v3147_v4, %v3147_v4 }
 0x606   : > { %3880 = vmatpush.xpose.msk.msra.mxu0 %vm8152_vm14, %v8106_v18  ;;  %3896 = vmatpush.xpose.msk.msra.mxu1 %vm8153_vm15, %v8106_v18  ;;  %vm8157_vm14 = vcmp.eq.s32.totalorder %v8102_v13, %v6669_v38  ;;  %vm8158_vm15 = vcmp.eq.s32.totalorder %v8104_v3, %v6669_v38 }
 0x607   : > { %v3179_v17 = vunpack.c.l.bf16 %v3163_v22  ;;  %3912 = vmatpush.xpose.msk.msra.mxu2 %vm8154_vm12, %v8106_v18  ;;  %3928 = vmatpush.xpose.msk.msra.mxu3 %vm8155_vm7, %v8106_v18  ;;  %v3248_v37 = vunpack.c.l.b16 %v3163_v22  ;;  %vm8159_vm12 = vcmp.eq.s32.totalorder %v8105_v27, %v6669_v38  ;;  %v8162_v22 = vld [vmem:[#allocation11_spill] sm:$0xff]  ;;  %vm8175_vm7 = vcmp.eq.s32.totalorder %v8104_v3, %v6940_v19 }
 0x609   : > { %v7421_v54 = vsub.f32 %v3147_v4, %v3179_v17  ;;  %v7423_v33 = vpack.c.b16 %v3248_v37, %v3247_v49  ;;  %v8163_v17 = vld [vmem:[#allocation12_spill] sm:$0xff] }
 0x60a   : > { %3881 = vmatpush.xpose.msk.msra.mxu0 %vm8156_vm3, %v8106_v18  ;;  %3897 = vmatpush.xpose.msk.msra.mxu1 %vm8157_vm14, %v8106_v18  ;;  %vm8176_vm3 = vcmp.eq.s32.totalorder %v8105_v27, %v6940_v19  ;;  %vm8177_vm14 = vcmp.eq.s32.totalorder %v8103_v15, %v6914_v5 }
 0x60b   : > { %3913 = vmatpush.xpose.msk.msra.mxu2 %vm8158_vm15, %v8106_v18  ;;  %3929 = vmatpush.xpose.msk.msra.mxu3 %vm8159_vm12, %v8106_v18  ;;  %v3204_v1 = vpack.c.bf16 %v7421_v54, %v7419_v40  ;;  %vm8178_vm15 = vcmp.eq.s32.totalorder %v8102_v13, %v6914_v5  ;;  %vm8179_vm12 = vcmp.eq.s32.totalorder %v8104_v3, %v6914_v5 }
 0x60c   : > { %v2573_v4 = vpop.f32.mrf.mxu0  ;;  %v2638_v36 = vpop.f32.mrf.mxu1  ;;  %v2972_v40 = vmul.f32 %v6282_v0, %v6282_v0  ;;  %v2971_v54 = vmul.f32 %v6262_v57, %v6262_v57 }
 0x60d   : > { %2790 = vmatmul.f32.vlgmr.msra.gmra.mxu0 %v8160_v42  ;;  %2810 = vmatmul.f32.vlgmr.msra.gmra.mxu1 %v8161_v24  ;;  %v2639_v23 = vadd.f32 %v2638_v36, %v2573_v4 }
 0x60e   : > { %3930 = vmatpush.xpose.msk.msrb.mxu0 %vm2382_vm6, %v8106_v18  ;;  %3946 = vmatpush.xpose.msk.msrb.mxu1 %vm2383_vm13, %v8106_v18  ;;  %vm8164_vm6 = vcmp.eq.s32.totalorder %v8105_v27, %v7049_v8  ;;  %vm8174_vm13 = vcmp.eq.s32.totalorder %v8102_v13, %v6940_v19 }
 0x60f   : > { %3962 = vmatpush.xpose.msk.msrb.mxu2 %vm2384_vm11, %v8106_v18  ;;  %3978 = vmatpush.xpose.msk.msrb.mxu3 %vm2385_vm10, %v8106_v18  ;;  %vm8172_vm10 = vcmp.eq.s32.totalorder %v8105_v27, %v6973_v43  ;;  %vm8173_vm11 = vcmp.eq.s32.totalorder %v8103_v15, %v6940_v19  ;;  %v2983_v19 = vmul.f32 %v6432_v31, %v6432_v31 }
 0x610   : > { %2830 = vmatmul.f32.vlgmr.msra.gmra.mxu2 %v8162_v22  ;;  %2850 = vmatmul.f32.vlgmr.msra.gmra.mxu3 %v8163_v17  ;;  %v2981_v22 = vmul.f32 %v6412_v6, %v6412_v6  ;;  %v8217_v17 = vcvt.s32.f32 %v8103_v15 }
 0x611   : > { %v2999_v8 = vpack.c.bf16 %v2983_v19, %v2983_v19 }
 0x612   : > { %3931 = vmatpush.xpose.msk.msrb.mxu0 %vm2378_vm9, %v8106_v18  ;;  %3947 = vmatpush.xpose.msk.msrb.mxu1 %vm2379_vm8, %v8106_v18  ;;  %vm8170_vm8 = vcmp.eq.s32.totalorder %v8102_v13, %v6973_v43  ;;  %vm8171_vm9 = vcmp.eq.s32.totalorder %v8104_v3, %v6973_v43  ;;  %v2997_v6 = vpack.c.bf16 %v2981_v22, %v2981_v22 }
 0x613   : > { %3963 = vmatpush.xpose.msk.msrb.mxu2 %vm2380_vm5, %v8106_v18  ;;  %3979 = vmatpush.xpose.msk.msrb.mxu3 %vm2381_vm2, %v8106_v18  ;;  %v2703_v49 = vpop.f32.mrf.mxu2  ;;  %v2768_v44 = vpop.f32.mrf.mxu3  ;;  %vm8168_vm2 = vcmp.eq.s32.totalorder %v8105_v27, %v7020_v50  ;;  %vm8169_vm5 = vcmp.eq.s32.totalorder %v8103_v15, %v6973_v43 }
 0x614   : > { %v2704_v37 = vadd.f32 %v2703_v49, %v2639_v23 }
 0x616   : > { %3932 = vmatpush.xpose.msk.msrb.mxu0 %vm2374_vm1, %v8106_v18  ;;  %3948 = vmatpush.xpose.msk.msrb.mxu1 %vm2375_vm0, %v8106_v18  ;;  %v7495_v42 = vadd.f32 %v2768_v44, %v2704_v37  ;;  %vm8165_vm0 = vcmp.eq.s32.totalorder %v8103_v15, %v7020_v50  ;;  %vm8166_vm1 = vcmp.eq.s32.totalorder %v8102_v13, %v7020_v50 }
 0x617   : > { %3964 = vmatpush.xpose.msk.msrb.mxu2 %vm2376_vm4, %v8106_v18  ;;  %3980 = vmatpush.xpose.msk.msrb.mxu3 %vm8164_vm6, %v8106_v18  ;;  %vm8167_vm4 = vcmp.eq.s32.totalorder %v8104_v3, %v7020_v50  ;;  %vm8180_vm6 = vcmp.eq.s32.totalorder %v8105_v27, %v6914_v5  ;;  %v2984_v5 = vmul.f32 %v6440_v21, %v6440_v21 }
 0x618   : > { %2967 = vst [vmem:[%s6946_s25 + $0x70] sm:$0xff] %v7495_v42 }
 0x619   : > { %v3000_v50 = vpack.c.bf16 %v2984_v5, %v2984_v5 }
 0x61a   : > { %3933 = vmatpush.xpose.msk.msrb.mxu0 %vm8165_vm0, %v8106_v18  ;;  %3949 = vmatpush.xpose.msk.msrb.mxu1 %vm8166_vm1, %v8106_v18  ;;  %vm8181_vm0 = vcmp.eq.s32.totalorder %v8103_v15, %v6888_v47  ;;  %vm8182_vm1 = vcmp.eq.s32.totalorder %v8102_v13, %v6888_v47 }
 0x61b   : > { %3965 = vmatpush.xpose.msk.msrb.mxu2 %vm8167_vm4, %v8106_v18  ;;  %3981 = vmatpush.xpose.msk.msrb.mxu3 %vm8168_vm2, %v8106_v18  ;;  %vm8183_vm4 = vcmp.eq.s32.totalorder %v8104_v3, %v6888_v47  ;;  %vm8184_vm2 = vcmp.eq.s32.totalorder %v8105_v27, %v6888_v47  ;;  %v3016_v36 = vunpack.c.l.bf16 %v3000_v50  ;;  %v3085_v37 = vunpack.c.l.b16 %v3000_v50 }
 0x61e   : > { %3934 = vmatpush.xpose.msk.msrb.mxu0 %vm8169_vm5, %v8106_v18  ;;  %3950 = vmatpush.xpose.msk.msrb.mxu1 %vm8170_vm8, %v8106_v18  ;;  %vm8185_vm5 = vcmp.eq.s32.totalorder %v8103_v15, %v6862_v59  ;;  %vm8186_vm8 = vcmp.eq.s32.totalorder %v8102_v13, %v6862_v59 }
 0x61f   : > { %3966 = vmatpush.xpose.msk.msrb.mxu2 %vm8171_vm9, %v8106_v18  ;;  %3982 = vmatpush.xpose.msk.msrb.mxu3 %vm8172_vm10, %v8106_v18  ;;  %vm8187_vm9 = vcmp.eq.s32.totalorder %v8104_v3, %v6862_v59  ;;  %vm8188_vm10 = vcmp.eq.s32.totalorder %v8105_v27, %v6862_v59 }
 0x622   : > { %3935 = vmatpush.xpose.msk.msrb.mxu0 %vm8173_vm11, %v8106_v18  ;;  %3951 = vmatpush.xpose.msk.msrb.mxu1 %vm8174_vm13, %v8106_v18  ;;  %vm8189_vm11 = vcmp.eq.s32.totalorder %v8103_v15, %v6784_v46  ;;  %vm8190_vm13 = vcmp.eq.s32.totalorder %v8102_v13, %v6784_v46 }
 0x623   : > { %3967 = vmatpush.xpose.msk.msrb.mxu2 %vm8175_vm7, %v8106_v18  ;;  %3983 = vmatpush.xpose.msk.msrb.mxu3 %vm8176_vm3, %v8106_v18  ;;  %vm8191_vm7 = vcmp.eq.s32.totalorder %v8104_v3, %v6784_v46  ;;  %vm8192_vm3 = vcmp.eq.s32.totalorder %v8105_v27, %v6784_v46  ;;  %v2986_v46 = vmul.f32 %v6456_v58, %v6456_v58 }
 0x625   : > { %v3002_v59 = vpack.c.bf16 %v2986_v46, %v2986_v46 }
 0x626   : > { %3936 = vmatpush.xpose.msk.msrb.mxu0 %vm8177_vm14, %v8106_v18  ;;  %3952 = vmatpush.xpose.msk.msrb.mxu1 %vm8178_vm15, %v8106_v18  ;;  %vm8193_vm14 = vcmp.eq.s32.totalorder %v8103_v15, %v6782_v12  ;;  %vm8194_vm15 = vcmp.eq.s32.totalorder %v8102_v13, %v6782_v12 }
 0x627   : > { %3968 = vmatpush.xpose.msk.msrb.mxu2 %vm8179_vm12, %v8106_v18  ;;  %3984 = vmatpush.xpose.msk.msrb.mxu3 %vm8180_vm6, %v8106_v18  ;;  %vm8195_vm12 = vcmp.eq.s32.totalorder %v8104_v3, %v6782_v12  ;;  %vm8196_vm6 = vcmp.eq.s32.totalorder %v8105_v27, %v6782_v12  ;;  %v2985_v12 = vmul.f32 %v6448_v56, %v6448_v56  ;;  %v3018_v47 = vunpack.c.l.bf16 %v3002_v59 }
 0x628   : > { %v3087_v43 = vunpack.c.l.b16 %v3002_v59 }
 0x629   : > { %v3034_v21 = vsub.f32 %v2986_v46, %v3018_v47  ;;  %v8219_v46 = vld [vmem:[#allocation15_spill] sm:$0xff] }
 0x62a   : > { %3937 = vmatpush.xpose.msk.msrb.mxu0 %vm8181_vm0, %v8106_v18  ;;  %3953 = vmatpush.xpose.msk.msrb.mxu1 %vm8182_vm1, %v8106_v18  ;;  %vm8197_vm0 = vcmp.eq.s32.totalorder %v8103_v15, %v6786_v7  ;;  %vm8198_vm1 = vcmp.eq.s32.totalorder %v8102_v13, %v6786_v7 }
 0x62b   : > { %3969 = vmatpush.xpose.msk.msrb.mxu2 %vm8183_vm4, %v8106_v18  ;;  %3985 = vmatpush.xpose.msk.msrb.mxu3 %vm8184_vm2, %v8106_v18  ;;  %vm8199_vm4 = vcmp.eq.s32.totalorder %v8104_v3, %v6786_v7  ;;  %vm8200_vm2 = vcmp.eq.s32.totalorder %v8105_v27, %v6786_v7  ;;  %v3001_v7 = vpack.c.bf16 %v2985_v12, %v2985_v12 }
 0x62e   : > { %3938 = vmatpush.xpose.msk.msrb.mxu0 %vm8185_vm5, %v8106_v18  ;;  %3954 = vmatpush.xpose.msk.msrb.mxu1 %vm8186_vm8, %v8106_v18  ;;  %vm8201_vm5 = vcmp.eq.s32.totalorder %v8103_v15, %v6750_v45  ;;  %vm8202_vm8 = vcmp.eq.s32.totalorder %v8102_v13, %v6750_v45 }
 0x62f   : > { %3970 = vmatpush.xpose.msk.msrb.mxu2 %vm8187_vm9, %v8106_v18  ;;  %3986 = vmatpush.xpose.msk.msrb.mxu3 %vm8188_vm10, %v8106_v18  ;;  %vm8203_vm9 = vcmp.eq.s32.totalorder %v8104_v3, %v6750_v45  ;;  %vm8204_vm10 = vcmp.eq.s32.totalorder %v8105_v27, %v6750_v45  ;;  %v3017_v45 = vunpack.c.l.bf16 %v3001_v7 }
 0x631   : > { %v3033_v31 = vsub.f32 %v2985_v12, %v3017_v45  ;;  %v3084_v12 = vunpack.c.l.b16 %v2999_v8 }
 0x632   : > { %3939 = vmatpush.xpose.msk.msrb.mxu0 %vm8189_vm11, %v8106_v18  ;;  %3955 = vmatpush.xpose.msk.msrb.mxu1 %vm8190_vm13, %v8106_v18  ;;  %vm8205_vm11 = vcmp.eq.s32.totalorder %v8103_v15, %v6724_v34  ;;  %vm8206_vm13 = vcmp.eq.s32.totalorder %v8102_v13, %v6724_v34 }
 0x633   : > { %3971 = vmatpush.xpose.msk.msrb.mxu2 %vm8191_vm7, %v8106_v18  ;;  %3987 = vmatpush.xpose.msk.msrb.mxu3 %vm8192_vm3, %v8106_v18  ;;  %vm8207_vm7 = vcmp.eq.s32.totalorder %v8104_v3, %v6724_v34  ;;  %vm8208_vm3 = vcmp.eq.s32.totalorder %v8105_v27, %v6724_v34  ;;  %v3086_v34 = vunpack.c.l.b16 %v3001_v7  ;;  %v3042_v24 = vpack.c.bf16 %v3034_v21, %v3033_v31 }
 0x634   : > { %v3094_v7 = vpack.c.b16 %v3085_v37, %v3084_v12  ;;  %v3013_v31 = vunpack.c.l.bf16 %v2997_v6 }
 0x635   : > { %v3095_v4 = vpack.c.b16 %v3087_v43, %v3086_v34 }
 0x636   : > { %3940 = vmatpush.xpose.msk.msrb.mxu0 %vm8193_vm14, %v8106_v18  ;;  %3956 = vmatpush.xpose.msk.msrb.mxu1 %vm8194_vm15, %v8106_v18  ;;  %vm8209_vm14 = vcmp.eq.s32.totalorder %v8103_v15, %v6697_v62  ;;  %vm8210_vm15 = vcmp.eq.s32.totalorder %v8102_v13, %v6697_v62 }
 0x637   : > { %3972 = vmatpush.xpose.msk.msrb.mxu2 %vm8195_vm12, %v8106_v18  ;;  %3988 = vmatpush.xpose.msk.msrb.mxu3 %vm8196_vm6, %v8106_v18  ;;  %vm8211_vm12 = vcmp.eq.s32.totalorder %v8104_v3, %v6697_v62  ;;  %vm8212_vm6 = vcmp.eq.s32.totalorder %v8105_v27, %v6697_v62  ;;  %v2982_v62 = vmul.f32 %v6424_v35, %v6424_v35  ;;  %v8218_v35 = vld [vmem:[#allocation17_spill] sm:$0xff] }
 0x639   : > { %v2998_v44 = vpack.c.bf16 %v2982_v62, %v2982_v62 }
 0x63a   : > { %3941 = vmatpush.xpose.msk.msrb.mxu0 %vm8197_vm0, %v8106_v18  ;;  %3957 = vmatpush.xpose.msk.msrb.mxu1 %vm8198_vm1, %v8106_v18  ;;  %vm8213_vm0 = vcmp.eq.s32.totalorder %v8103_v15, %v6669_v38  ;;  %vm8214_vm1 = vcmp.eq.s32.totalorder %v8102_v13, %v6669_v38  ;;  %v3015_v13 = vunpack.c.l.bf16 %v2999_v8 }
 0x63b   : > { %3973 = vmatpush.xpose.msk.msrb.mxu2 %vm8199_vm4, %v8106_v18  ;;  %3989 = vmatpush.xpose.msk.msrb.mxu3 %vm8200_vm2, %v8106_v18  ;;  %vm8215_vm4 = vcmp.eq.s32.totalorder %v8104_v3, %v6669_v38  ;;  %vm8216_vm2 = vcmp.eq.s32.totalorder %v8105_v27, %v6669_v38  ;;  %v3032_v3 = vsub.f32 %v2984_v5, %v3016_v36  ;;  %v8220_v27 = vld [vmem:[#allocation16_spill] sm:$0xff]  ;;  %v3014_v45 = vunpack.c.l.bf16 %v2998_v44 }
 0x63c   : > { %v3132_v38 = vsub.f32 %v6448_v56, %v7495_v42  ;;  %v2980_v5 = vmul.f32 %v6400_v60, %v6400_v60  ;;  %v2979_v56 = vmul.f32 %v6392_v39, %v6392_v39  ;;  %v3083_v34 = vunpack.c.l.b16 %v2998_v44 }
 0x63d   : > { %v3029_v36 = vsub.f32 %v2981_v22, %v3013_v31  ;;  %v2977_v44 = vmul.f32 %v6376_v63, %v6376_v63  ;;  %v2976_v63 = vmul.f32 %v6362_v14, %v6362_v14  ;;  %v2974_v14 = vmul.f32 %v6322_v10, %v6322_v10 }
 0x63e   : > { %3942 = vmatpush.xpose.msk.msrb.mxu0 %vm8201_vm5, %v8106_v18  ;;  %3958 = vmatpush.xpose.msk.msrb.mxu1 %vm8202_vm8, %v8106_v18  ;;  %v3148_v21 = vmul.f32 %v3132_v38, %v3132_v38  ;;  %v2996_v8 = vpack.c.bf16 %v2980_v5, %v2980_v5  ;;  %v2995_v60 = vpack.c.bf16 %v2979_v56, %v2979_v56 }
 0x63f   : > { %3974 = vmatpush.xpose.msk.msrb.mxu2 %vm8203_vm9, %v8106_v18  ;;  %3990 = vmatpush.xpose.msk.msrb.mxu3 %vm8204_vm10, %v8106_v18 }
 0x640   : > { %v3081_v38 = vunpack.c.l.b16 %v2996_v8 }
 0x642   : > { %3943 = vmatpush.xpose.msk.msrb.mxu0 %vm8205_vm11, %v8106_v18  ;;  %3959 = vmatpush.xpose.msk.msrb.mxu1 %vm8206_vm13, %v8106_v18 }
 0x643   : > { %3975 = vmatpush.xpose.msk.msrb.mxu2 %vm8207_vm7, %v8106_v18  ;;  %3991 = vmatpush.xpose.msk.msrb.mxu3 %vm8208_vm3, %v8106_v18 }
 0x646   : > { %3944 = vmatpush.xpose.msk.msrb.mxu0 %vm8209_vm14, %v8106_v18  ;;  %3960 = vmatpush.xpose.msk.msrb.mxu1 %vm8210_vm15, %v8106_v18 }
 0x647   : > { %3976 = vmatpush.xpose.msk.msrb.mxu2 %vm8211_vm12, %v8106_v18  ;;  %3992 = vmatpush.xpose.msk.msrb.mxu3 %vm8212_vm6, %v8106_v18 }
 0x649   : > { %v2576_v23 = vpop.f32.mrf.mxu0  ;;  %v2641_v49 = vpop.f32.mrf.mxu1 }
 0x64a   : > { %3945 = vmatpush.xpose.msk.msrb.mxu0 %vm8213_vm0, %v8106_v18  ;;  %3961 = vmatpush.xpose.msk.msrb.mxu1 %vm8214_vm1, %v8106_v18  ;;  %v2642_v59 = vadd.f32 %v2641_v49, %v2576_v23  ;;  %v3012_v49 = vunpack.c.l.bf16 %v2996_v8 }
 0x64b   : > { %3977 = vmatpush.xpose.msk.msrb.mxu2 %vm8215_vm4, %v8106_v18  ;;  %3993 = vmatpush.xpose.msk.msrb.mxu3 %vm8216_vm2, %v8106_v18  ;;  %v3031_v18 = vsub.f32 %v2983_v19, %v3015_v13  ;;  %v3030_v19 = vsub.f32 %v2982_v62, %v3014_v45  ;;  %v3082_v13 = vunpack.c.l.b16 %v2997_v6  ;;  %v3011_v62 = vunpack.c.l.bf16 %v2995_v60 }
 0x64d   : > { %2870 = vmatmul.f32.vlgmr.msrb.gmra.mxu0 %v8217_v17  ;;  %2890 = vmatmul.f32.vlgmr.msrb.gmra.mxu1 %v8218_v35  ;;  %v3041_v15 = vpack.c.bf16 %v3032_v3, %v3031_v18  ;;  %v3040_v35 = vpack.c.bf16 %v3030_v19, %v3029_v36  ;;  %v3093_v23 = vpack.c.b16 %v3083_v34, %v3082_v13 }
 0x64e   : > { %3043 = vmatpush.bf16.xpose.msra.mxu0 %v3042_v24  ;;  %3104 = vmatpush.bf16.xpose.msra.mxu1 %v3095_v4  ;;  %v3164_v24 = vpack.c.bf16 %v3148_v21, %v3148_v21  ;;  %v2978_v3 = vmul.f32 %v6384_v11, %v6384_v11  ;;  %v2993_v11 = vpack.c.bf16 %v2977_v44, %v2977_v44 }
 0x64f   : > { %2910 = vmatmul.f32.vlgmr.msrb.gmra.mxu2 %v8219_v46  ;;  %2930 = vmatmul.f32.vlgmr.msrb.gmra.mxu3 %v8220_v27  ;;  %v3028_v27 = vsub.f32 %v2980_v5, %v3012_v49  ;;  %v2973_v13 = vmul.f32 %v6302_v2, %v6302_v2 }
 0x650   : > { %v2706_v47 = vpop.f32.mrf.mxu2  ;;  %v2771_v50 = vpop.f32.mrf.mxu3  ;;  %v3180_v37 = vunpack.c.l.bf16 %v3164_v24  ;;  %v3249_v46 = vunpack.c.l.b16 %v3164_v24  ;;  %v2994_v18 = vpack.c.bf16 %v2978_v3, %v2978_v3  ;;  %v3009_v5 = vunpack.c.l.bf16 %v2993_v11 }
 0x651   : > { %v2707_v43 = vadd.f32 %v2706_v47, %v2642_v59  ;;  %v3078_v34 = vunpack.c.l.b16 %v2993_v11  ;;  %v2989_v49 = vpack.c.bf16 %v2973_v13, %v2973_v13 }
 0x652   : > { %v3196_v12 = vsub.f32 %v3148_v21, %v3180_v37  ;;  %v2975_v21 = vmul.f32 %v6342_v16, %v6342_v16  ;;  %v3025_v19 = vsub.f32 %v2977_v44, %v3009_v5 }
 0x653   : > { %v2772_v42 = vadd.f32 %v2771_v50, %v2707_v43  ;;  %v3010_v50 = vunpack.c.l.bf16 %v2994_v18  ;;  %v3005_v2 = vunpack.c.l.bf16 %v2989_v49  ;;  %v3074_v44 = vunpack.c.l.b16 %v2989_v49 }
 0x654   : > { %v2991_v8 = vpack.c.bf16 %v2975_v21, %v2975_v21 }
 0x655   : > { %2968 = vst [vmem:[%s6946_s25 + $0x78] sm:$0xff] %v2772_v42  ;;  %v3133_v4 = vsub.f32 %v6456_v58, %v2772_v42  ;;  %v3026_v31 = vsub.f32 %v2978_v3, %v3010_v50  ;;  %v3079_v42 = vunpack.c.l.b16 %v2994_v18 }
 0x656   : > { %3044 = vmatpush.bf16.xpose.msra.mxu0 %v3041_v15  ;;  %3105 = vmatpush.bf16.xpose.msra.mxu1 %v3094_v7  ;;  %v3027_v15 = vsub.f32 %v2979_v56, %v3011_v62  ;;  %v3080_v7 = vunpack.c.l.b16 %v2995_v60  ;;  %v2992_v56 = vpack.c.bf16 %v2976_v63, %v2976_v63  ;;  %v3007_v16 = vunpack.c.l.bf16 %v2991_v8 }
 0x657   : > { %v3149_v17 = vmul.f32 %v3133_v4, %v3133_v4  ;;  %v3038_v24 = vpack.c.bf16 %v3026_v31, %v3025_v19  ;;  %v3091_v4 = vpack.c.b16 %v3079_v42, %v3078_v34  ;;  %v2988_v62 = vpack.c.bf16 %v2972_v40, %v2972_v40 }
 0x658   : > { %v3039_v45 = vpack.c.bf16 %v3028_v27, %v3027_v15  ;;  %v3092_v43 = vpack.c.b16 %v3081_v38, %v3080_v7  ;;  %v3008_v36 = vunpack.c.l.bf16 %v2992_v56 }
 0x659   : > { %v3165_v39 = vpack.c.bf16 %v3149_v17, %v3149_v17  ;;  %v3073_v57 = vunpack.c.l.b16 %v2988_v62 }
 0x65a   : > { %v3024_v60 = vsub.f32 %v2976_v63, %v3008_v36 }
 0x65b   : > { %v3181_v58 = vunpack.c.l.bf16 %v3165_v39  ;;  %v3250_v22 = vunpack.c.l.b16 %v3165_v39 }
 0x65d   : > { %v3197_v6 = vsub.f32 %v3149_v17, %v3181_v58  ;;  %v3258_v59 = vpack.c.b16 %v3250_v22, %v3249_v46  ;;  %v3077_v17 = vunpack.c.l.b16 %v2992_v56  ;;  %v2987_v46 = vpack.c.bf16 %v2971_v54, %v2971_v54 }
 0x65e   : > { %3045 = vmatpush.bf16.xpose.msra.mxu0 %v3040_v35  ;;  %3106 = vmatpush.bf16.xpose.msra.mxu1 %v3093_v23  ;;  %v2990_v35 = vpack.c.bf16 %v2974_v14, %v2974_v14  ;;  %v3076_v23 = vunpack.c.l.b16 %v2991_v8  ;;  %v3004_v22 = vunpack.c.l.bf16 %v2988_v62 }
 0x65f   : > { %v3205_v47 = vpack.c.bf16 %v3197_v6, %v3196_v12  ;;  %3267 = vmatpush.bf16.xpose.msra.mxu3 %v3258_v59  ;;  %v3003_v20 = vunpack.c.l.bf16 %v2987_v46  ;;  %v3072_v27 = vunpack.c.l.b16 %v2987_v46  ;;  %v8226_v6 = vld [vmem:[#allocation24_spill] sm:$0xff] }
 0x660   : > { %v3090_v10 = vpack.c.b16 %v3077_v17, %v3076_v23  ;;  %v3006_v37 = vunpack.c.l.bf16 %v2990_v35  ;;  %v3075_v39 = vunpack.c.l.b16 %v2990_v35  ;;  %v3020_v28 = vsub.f32 %v2972_v40, %v3004_v22 }
 0x661   : > { %3206 = vmatpush.bf16.xpose.msra.mxu2 %v3205_v47  ;;  %v3088_v18 = vpack.c.b16 %v3073_v57, %v3072_v27 }
 0x662   : > { %v3089_v0 = vpack.c.b16 %v3075_v39, %v3074_v44 }
 0x666   : > { %3046 = vmatpush.bf16.xpose.msra.mxu0 %v3039_v45  ;;  %3107 = vmatpush.bf16.xpose.msra.mxu1 %v3092_v43 }
 0x667   : > { %3268 = vmatpush.bf16.xpose.msra.mxu3 %v7423_v33  ;;  %v3023_v33 = vsub.f32 %v2975_v21, %v3007_v16 }
 0x669   : > { %3207 = vmatpush.bf16.xpose.msra.mxu2 %v3204_v1  ;;  %v3037_v3 = vpack.c.bf16 %v3024_v60, %v3023_v33  ;;  %v3022_v1 = vsub.f32 %v2974_v14, %v3006_v37 }
 0x66e   : > { %3047 = vmatpush.bf16.xpose.msra.mxu0 %v3038_v24  ;;  %3108 = vmatpush.bf16.xpose.msra.mxu1 %v3091_v4 }
 0x66f   : > { %3269 = vmatpush.bf16.xpose.msra.mxu3 %v7243_v48  ;;  %v3021_v48 = vsub.f32 %v2973_v13, %v3005_v2 }
 0x671   : > { %3208 = vmatpush.bf16.xpose.msra.mxu2 %v3203_v26  ;;  %v3036_v58 = vpack.c.bf16 %v3022_v1, %v3021_v48  ;;  %v3019_v26 = vsub.f32 %v2971_v54, %v3003_v20 }
 0x673   : > { %v3035_v38 = vpack.c.bf16 %v3020_v28, %v3019_v26 }
 0x676   : > { %3048 = vmatpush.bf16.xpose.msra.mxu0 %v3037_v3  ;;  %3109 = vmatpush.bf16.xpose.msra.mxu1 %v3090_v10 }
 0x677   : > { %3270 = vmatpush.bf16.xpose.msra.mxu3 %v7169_v51  ;;  %v8221_v51 = vpack.c.bf16 %v7119_v30, %v7117_v53  ;;  %v8227_v53 = vld [vmem:[#allocation23_spill] sm:$0xff]  ;;  %v8228_v30 = vld [vmem:[#allocation22_spill] sm:$0xff] }
 0x678   : > { %v8229_v59 = vpack.c.bf16 %v8227_v53, %v8228_v30 }
 0x679   : > { %3209 = vmatpush.bf16.xpose.msra.mxu2 %v3202_v55  ;;  %v8224_v55 = vld [vmem:[#allocation27_spill] sm:$0xff] }
 0x67e   : > { %3049 = vmatpush.bf16.xpose.msra.mxu0 %v3036_v58  ;;  %3110 = vmatpush.bf16.xpose.msra.mxu1 %v3089_v0 }
 0x67f   : > { %3271 = vmatpush.bf16.xpose.msra.mxu3 %v7122_v29  ;;  %v8223_v29 = vld [vmem:[#allocation26_spill] sm:$0xff] }
 0x680   : > { %v8225_v12 = vpack.c.bf16 %v8223_v29, %v8224_v55 }
 0x681   : > { %3210 = vmatpush.bf16.xpose.msra.mxu2 %v8221_v51 }
 0x686   : > { %3050 = vmatpush.bf16.xpose.msra.mxu0 %v3035_v38  ;;  %3111 = vmatpush.bf16.xpose.msra.mxu1 %v3088_v18 }
 0x687   : > { %3272 = vmatpush.bf16.xpose.msra.mxu3 %v7111_v61 }
 0x689   : > { %3211 = vmatpush.bf16.xpose.msra.mxu2 %v8222_v41 }
 0x68a   : > { %v2791_v61 = vpop.f32.mrf.mxu0  ;;  %v2811_v9 = vpop.f32.mrf.mxu1 }
 0x68b   : > { %v2812_v25 = vadd.f32 %v2811_v9, %v2791_v61 }
 0x68d   : > { %3051 = vmatmul.bf16.vlgmr.msra.gmra.mxu0 %v4074_v52  ;;  %3112 = vmatmul.bf16.vlgmr.msra.gmra.mxu1 %v4074_v52 }
 0x68f   : > { %3273 = vmatpush.bf16.xpose.msra.mxu3 %v7016_v32 }
 0x691   : > { %3212 = vmatpush.bf16.xpose.msra.mxu2 %v8225_v12 }
 0x693   : > { %v2831_v15 = vpop.f32.mrf.mxu2  ;;  %v2851_v7 = vpop.f32.mrf.mxu3 }
 0x694   : > { %v2832_v11 = vadd.f32 %v2831_v15, %v2812_v25 }
 0x696   : > { %v2852_v45 = vadd.f32 %v2851_v7, %v2832_v11 }
 0x697   : > { %3274 = vmatpush.bf16.xpose.msra.mxu3 %v8226_v6 }
 0x698   : > { %v2934_v5 = vmul.f32 128.0, %v2852_v45 }
 0x699   : > { %3213 = vmatpush.bf16.xpose.msra.mxu2 %v8229_v59 }
 0x69e   : > { %3275 = vmatmul.bf16.vlgmr.msra.gmra.mxu3 %v4074_v52 }
 0x6a0   : > { %3214 = vmatmul.bf16.vlgmr.msra.gmra.mxu2 %v4074_v52 }
 0x6ca   : > { %v2871_v32 = vpop.f32.mrf.mxu0  ;;  %v2891_v47 = vpop.f32.mrf.mxu1 }
 0x6cb   : > { %v2892_v43 = vadd.f32 %v2891_v47, %v2871_v32 }
 0x6d2   : > { %v2911_v50 = vpop.f32.mrf.mxu2  ;;  %v2931_v63 = vpop.f32.mrf.mxu3 }
 0x6d3   : > { %v2912_v21 = vadd.f32 %v2911_v50, %v2892_v43 }
 0x6d5   : > { %v2932_v31 = vadd.f32 %v2931_v63, %v2912_v21 }
 0x6d7   : > { %v2935_v42 = vadd.f32 %v2934_v5, %v2932_v31 }
 0x6d9   : > { %vm4001_vm5 = vcmp.lt.s32.totalorder %v2935_v42, 0  ;;  %v4002_v56 = vceil.f32 %v2935_v42  ;;  %v4003_v19 = vfloor.f32 %v2935_v42 }
 0x6db   : > { %v4004_v34 = vsel %vm4001_vm5, %v4002_v56, %v4003_v19 }
 0x6dc   : > { %v4005_v8 = vcvt.f32.s32 %v4004_v34 }
 0x6de   : > { %2970 = vst [vmem:[%s402_s28] sm:$0x1] %v4005_v8 }
 0x70a   : > { %v3052_v24 = vpop.f32.mrf.mxu0  ;;  %v3113_v4 = vpop.f32.mrf.mxu1 }
 0x70b   : > { %v3114_v36 = vadd.f32 %v3113_v4, %v3052_v24 }
 0x70d   : > { %3117 = vst [vmem:[%s405_s12] sm:$0x1] %v3114_v36 }
 0x712   : > { %v3054_v14 = vpop.f32.mrf.mxu0  ;;  %v3115_v16 = vpop.f32.mrf.mxu1 }
 0x721   : > { %v3276_v13 = vpop.f32.mrf.mxu3 }
 0x723   : > { %v3215_v60 = vpop.f32.mrf.mxu2 }
 0x724   : > { %v3277_v17 = vadd.f32 %v3276_v13, %v3215_v60 }
 0x726   : > { %3280 = vst [vmem:[%s408_s16] sm:$0x1] %v3277_v17 }
 0x729   : > { %v3278_v35 = vpop.f32.mrf.mxu3 }
 0x72b   : > { %v3217_v33 = vpop.f32.mrf.mxu2 }
 0x72c PF: > { %s21_s13 = sadd.s32 1, %s4071_s13  }
 0x72d   : > { %p18_p5 = scmp.ge.s32.totalorder %s21_s13, 5  }
 0x72f   :  { %20 = sbr.rel (!%p18_p5) target bundleno = 1 (0x1), region = 130 }

</bundles_post_ra>
